<compile_context>
chip_gen: v7x
topology: tpu7x:2x2x1
jax: 0.10.0
libtpu: 0.0.40
codegen_flags: <defaults>
</compile_context>

<pallas_src>
import functools

import jax
import jax.numpy as jnp
from jax import lax
from jax.experimental import pallas as pl
from jax.experimental.pallas import tpu as pltpu


def _round_up(x, m):
    return (x + m - 1) // m * m


def _vmem_limit_bytes():
    # Explicit scoped-VMEM budget: ~100 MiB on 128 MiB parts (v5e/v6e),
    # capped at 7/8 of capacity (~56 MiB) on v7x.  Conservative fallback if
    # the hardware query is unavailable.
    try:
        cap = pltpu.get_tpu_info().vmem_capacity_bytes
        return int(min(cap * 7 // 8, 100 * 1024 * 1024))
    except Exception:
        return 48 * 1024 * 1024


# ----------------------------- Pallas kernel -----------------------------

def _bigru_kernel(gxf_ref, gxb_ref, len_ref, whf_ref, bhnf_ref,
                  whb_ref, bhnb_ref,
                  outf_ref, outb_ref, hid_ref,
                  hf_scr, hb_scr, *, Tc, Nc, unroll):
    """One grid step = one time chunk: fwd chunk i, bwd chunk Nc-1-i."""
    Bp = len_ref.shape[0]
    Hp = hid_ref.shape[-1]
    i = pl.program_id(0)

    @pl.when(i == 0)
    def _():
        hf_scr[...] = jnp.zeros_like(hf_scr)
        hb_scr[...] = jnp.zeros_like(hb_scr)

    lens = len_ref[...]                      # (Bp, 1) int32
    w_hh_f = whf_ref[...]                    # (Hp, 3Hp) bf16
    w_hh_b = whb_ref[...]
    b_hn_f = bhnf_ref[...]                   # (1, Hp) f32
    b_hn_b = bhnb_ref[...]

    t0_f = i * Tc                            # global start time of fwd chunk
    t0_b = (Nc - 1 - i) * Tc                 # global start time of bwd chunk

    def gru_step(gx, h, w_hh, b_hn):
        # PyTorch GRU (gate order r, z, n); b_ir+b_hr / b_iz+b_hz already
        # folded into gx.  bf16 MXU operands, f32 accumulation + gate math.
        gh = jnp.dot(h.astype(jnp.bfloat16), w_hh,
                     preferred_element_type=jnp.float32)
        r = jax.nn.sigmoid(gx[:, 0:Hp] + gh[:, 0:Hp])
        z = jax.nn.sigmoid(gx[:, Hp:2 * Hp] + gh[:, Hp:2 * Hp])
        n = jnp.tanh(gx[:, 2 * Hp:] + r * (gh[:, 2 * Hp:] + b_hn))
        return (1.0 - z) * n + z * h

    def body(k, carry):
        h_f, h_b = carry
        kb = Tc - 1 - k                                  # bwd local (reverse) step
        row_f = pl.multiple_of(k * Bp, Bp)
        row_b = pl.multiple_of(kb * Bp, Bp)

        gx_f = gxf_ref[pl.ds(row_f, Bp), :].astype(jnp.float32)
        gx_b = gxb_ref[pl.ds(row_b, Bp), :].astype(jnp.float32)

        # Two independent recurrences interleaved -> their MXU pushes overlap.
        # TODO(synk): at large Hp (~1024) compute the gate nonlinearities in
        # 256-512-lane chunks (or sequence the directions) to bound vreg
        # pressure from the interleaved live sets.
        h_f_new = gru_step(gx_f, h_f, w_hh_f, b_hn_f)
        h_b_new = gru_step(gx_b, h_b, w_hh_b, b_hn_b)

        mask_f = lens > (t0_f + k)                       # packed-seq validity
        mask_b = lens > (t0_b + kb)

        # pad_packed semantics: zeros at padded steps.
        outf_ref[pl.ds(row_f, Bp), :] = jnp.where(mask_f, h_f_new, 0.0)
        outb_ref[pl.ds(row_b, Bp), :] = jnp.where(mask_b, h_b_new, 0.0)

        # Carry-through at padded steps (hidden=None -> zero init).
        return (jnp.where(mask_f, h_f_new, h_f),
                jnp.where(mask_b, h_b_new, h_b))

    h_f, h_b = lax.fori_loop(0, Tc, body, (hf_scr[...], hb_scr[...]),
                             unroll=unroll)
    hf_scr[...] = h_f
    hb_scr[...] = h_b

    @pl.when(i == Nc - 1)
    def _():
        hid_ref[0] = h_f                     # fwd final (last valid step)
        hid_ref[1] = h_b                     # bwd final (state at t=0)


# ------------------------------- wrapper ----------------------------------

def prepare_params(params, gate_align=128):
    """One-time packing (out of the per-call path).

    Folds embedding @ W_ih + b_ih (+ b_hr, b_hz) into per-token gate lookup
    tables, pads per-gate to `gate_align` lanes, and casts MXU operands to
    bf16.  Use gate_align=256 on v6e/v7x when H is large (256x256 MXU tiles).
    """
    V, H = params["embedding"].shape
    Hp = _round_up(H, gate_align)

    def pad_gates(x):                         # (R, 3H) -> (R, 3Hp)
        R = x.shape[0]
        return jnp.pad(x.reshape(R, 3, H),
                       ((0, 0), (0, 0), (0, Hp - H))).reshape(R, 3 * Hp)

    def fuse_bias(b_ih, b_hh):
        # Fold b_hr, b_hz into the table bias; only b_hn must stay per step
        # because of r * (W_hn h + b_hn).
        return b_ih + jnp.concatenate(
            [b_hh[:, :2 * H], jnp.zeros((1, H), jnp.float32)], axis=1)

    emb = params["embedding"].astype(jnp.float32)

    def gate_table(w_ih, b_ih, b_hh):         # (V, 3Hp) bf16
        g = emb @ w_ih + fuse_bias(b_ih, b_hh)
        return pad_gates(g).astype(jnp.bfloat16)

    def pad_whh(w):                           # (H, 3H) -> (Hp, 3Hp) bf16
        w3 = jnp.pad(w.reshape(H, 3, H),
                     ((0, Hp - H), (0, 0), (0, Hp - H)))
        return w3.reshape(Hp, 3 * Hp).astype(jnp.bfloat16)

    def pad_bhn(b_hh):                        # (1, Hp) f32
        return jnp.pad(b_hh[:, 2 * H:], ((0, 0), (0, Hp - H)))

    return {
        "H": H, "Hp": Hp,
        "gx_table_f": gate_table(params["w_ih_f"], params["b_ih_f"], params["b_hh_f"]),
        "gx_table_b": gate_table(params["w_ih_b"], params["b_ih_b"], params["b_hh_b"]),
        "w_hh_f": pad_whh(params["w_hh_f"]),
        "w_hh_b": pad_whh(params["w_hh_b"]),
        "b_hn_f": pad_bhn(params["b_hh_f"]),
        "b_hn_b": pad_bhn(params["b_hh_b"]),
    }


def encoder_rnn_forward(input_seqs, input_lengths, prep, *, time_chunk=8):
    """Forward pass equivalent to EncoderRNN.forward (n_layers=1)."""
    T, B = input_seqs.shape
    H, Hp = prep["H"], prep["Hp"]
    Bp = _round_up(B, 8)                      # sublane-aligned batch
    Tc = min(time_chunk, T) if T > 0 else 1
    Tp = _round_up(T, Tc)
    Nc = Tp // Tc
    GF = 3 * Hp
    unroll = True if Tc <= 16 else 4          # gate unroll on chunk length

    # Token-id gather from the precomputed gate tables (replaces the embedding
    # lookup AND the x @ W_ih matmul).  Padded tokens/batch rows are masked by
    # `lens`, so padding with id 0 is safe.
    # TODO(synk): fuse this gather into the kernel via scalar-prefetched token
    # ids + in-kernel DMA gather to avoid materializing the gx slabs in HBM.
    ids = jnp.pad(input_seqs.astype(jnp.int32),
                  ((0, Tp - T), (0, Bp - B))).reshape(-1)
    gx_f = jnp.take(prep["gx_table_f"], ids, axis=0)      # (Tp*Bp, 3Hp) bf16
    gx_b = jnp.take(prep["gx_table_b"], ids, axis=0)
    lens = jnp.pad(input_lengths.astype(jnp.int32), (0, Bp - B)).reshape(Bp, 1)

    kernel = functools.partial(_bigru_kernel, Tc=Tc, Nc=Nc, unroll=unroll)
    const2 = lambda i: (0, 0)

    def run(single_buffer):
        def resident(shape):
            if single_buffer:
                return pl.BlockSpec(shape, const2, pipeline_mode=pl.Buffered(1))
            return pl.BlockSpec(shape, const2)

        in_specs = [
            pl.BlockSpec((Tc * Bp, GF), lambda i: (i, 0)),           # fwd gates, chunk i
            pl.BlockSpec((Tc * Bp, GF), lambda i: (Nc - 1 - i, 0)),  # bwd gates, chunk Nc-1-i
            pl.BlockSpec((Bp, 1), const2),                           # lengths
            resident((Hp, GF)),                                      # W_hh fwd (bf16)
            resident((1, Hp)),                                       # b_hn fwd
            resident((Hp, GF)),                                      # W_hh bwd (bf16)
            resident((1, Hp)),                                       # b_hn bwd
        ]
        out_specs = [
            pl.BlockSpec((Tc * Bp, Hp), lambda i: (i, 0)),           # fwd outputs
            pl.BlockSpec((Tc * Bp, Hp), lambda i: (Nc - 1 - i, 0)),  # bwd outputs
            pl.BlockSpec((2, Bp, Hp), lambda i: (0, 0, 0)),          # final hidden
        ]
        grid_spec = pltpu.PrefetchScalarGridSpec(
            num_scalar_prefetch=0,
            grid=(Nc,),
            in_specs=in_specs,
            out_specs=out_specs,
            scratch_shapes=[pltpu.VMEM((Bp, Hp), jnp.float32),   # fwd carry
                            pltpu.VMEM((Bp, Hp), jnp.float32)],  # bwd carry
        )
        return pl.pallas_call(
            kernel,
            out_shape=(jax.ShapeDtypeStruct((Tp * Bp, Hp), jnp.float32),
                       jax.ShapeDtypeStruct((Tp * Bp, Hp), jnp.float32),
                       jax.ShapeDtypeStruct((2, Bp, Hp), jnp.float32)),
            grid_spec=grid_spec,
            compiler_params=pltpu.CompilerParams(
                dimension_semantics=("arbitrary",),       # sequential: carry dep
                vmem_limit_bytes=_vmem_limit_bytes()),
        )(gx_f, gx_b, lens, prep["w_hh_f"], prep["b_hn_f"],
          prep["w_hh_b"], prep["b_hn_b"])

    # TODO(synk): on v7x, shard the two directions across the two TensorCores
    # (leading parallel grid axis of size 2 / pl.core_map); kept interleaved
    # here to preserve the per-step MXU overlap on single-core v5e/v6e.
    try:
        out_f, out_b, hid = run(single_buffer=True)
    except Exception:
        # Fallback if this Pallas version rejects pl.Buffered(1) single
        # buffering (only costs extra VMEM, never correctness).
        out_f, out_b, hid = run(single_buffer=False)

    outputs = (out_f + out_b).reshape(Tp, Bp, Hp)[:T, :B, :H]
    hidden = hid[:, :B, :H]                   # (num_layers*2, B, H)
    return outputs, hidden


# --------------------------- pure-JAX reference ----------------------------

def encoder_rnn_reference(input_seqs, input_lengths, params):
    emb = jnp.take(params["embedding"], input_seqs, axis=0).astype(jnp.float32)
    T, B, H = emb.shape
    lengths = input_lengths.astype(jnp.int32)

    def cell(x, h, wih, whh, bih, bhh):
        gx = x @ wih + bih
        gh = h @ whh + bhh
        r = jax.nn.sigmoid(gx[:, :H] + gh[:, :H])
        z = jax.nn.sigmoid(gx[:, H:2 * H] + gh[:, H:2 * H])
        n = jnp.tanh(gx[:, 2 * H:] + r * gh[:, 2 * H:])
        return (1.0 - z) * n + z * h

    def fwd_step(h, xt):
        x, t = xt
        hn = cell(x, h, params["w_ih_f"], params["w_hh_f"],
                  params["b_ih_f"], params["b_hh_f"])
        m = (lengths > t)[:, None]
        h2 = jnp.where(m, hn, h)
        return h2, jnp.where(m, h2, 0.0)

    def bwd_step(h, xt):
        x, t = xt
        hn = cell(x, h, params["w_ih_b"], params["w_hh_b"],
                  params["b_ih_b"], params["b_hh_b"])
        m = (lengths > t)[:, None]
        h2 = jnp.where(m, hn, h)
        return h2, jnp.where(m, h2, 0.0)

    h0 = jnp.zeros((B, H), jnp.float32)
    hF, outF = lax.scan(fwd_step, h0, (emb, jnp.arange(T)))
    hB, outB_rev = lax.scan(bwd_step, h0, (emb[::-1], jnp.arange(T)[::-1]))
    outB = outB_rev[::-1]
    return outF + outB, jnp.stack([hF, hB], axis=0)


# --------------------------------- main ------------------------------------

def init_params(key, input_size, hidden_size):
    ks = jax.random.split(key, 9)
    H = hidden_size
    bound = 1.0 / jnp.sqrt(H)
    u = lambda k, shape: jax.random.uniform(k, shape, jnp.float32, -bound, bound)
    return {
        "embedding": jax.random.normal(ks[0], (input_size, H), jnp.float32),
        # Stored pre-transposed as (H, 3H) so the math is x @ W.
        "w_ih_f": u(ks[1], (H, 3 * H)), "w_hh_f": u(ks[2], (H, 3 * H)),
        "b_ih_f": u(ks[3], (1, 3 * H)), "b_hh_f": u(ks[4], (1, 3 * H)),
        "w_ih_b": u(ks[5], (H, 3 * H)), "w_hh_b": u(ks[6], (H, 3 * H)),
        "b_ih_b": u(ks[7], (1, 3 * H)), "b_hh_b": u(ks[8], (1, 3 * H)),
    }
    # Note: dropout=0.1 is inert in the PyTorch module for n_layers=1 (it is
    # only applied between stacked GRU layers) and for inference.


if __name__ == "__main__":
    INPUT_SIZE = 16   # vocab
    HIDDEN = 32
    T, B = 10, 4

    key = jax.random.PRNGKey(0)
    k_param, k_tok = jax.random.split(key)
    params = init_params(k_param, INPUT_SIZE, HIDDEN)
    prep = prepare_params(params)     # one-time packing, out of per-call path

    input_seqs = jax.random.randint(k_tok, (T, B), 0, INPUT_SIZE, jnp.int32)
    # pack_padded_sequence requires descending lengths; max length == T.
    input_lengths = jnp.array([10, 8, 6, 3], dtype=jnp.int32)

    outputs, hidden = encoder_rnn_forward(input_seqs, input_lengths, prep,
                                          time_chunk=4)   # Nc=3 chunks
    outputs = jax.block_until_ready(outputs)
    hidden = jax.block_until_ready(hidden)

    ref_out, ref_hid = encoder_rnn_reference(input_seqs, input_lengths, params)
    assert outputs.shape == (T, B, HIDDEN)
    assert hidden.shape == (2, B, HIDDEN)
    # bf16 MXU operands (f32 accumulation): relaxed tolerances per review.
    assert jnp.allclose(outputs, ref_out, atol=2e-2, rtol=2e-2), \
        float(jnp.max(jnp.abs(outputs - ref_out)))
    assert jnp.allclose(hidden, ref_hid, atol=2e-2, rtol=2e-2), \
        float(jnp.max(jnp.abs(hidden - ref_hid)))

    print("KERNEL_OK")
</pallas_src>

<mosaic_0001>
module attributes {stable_mosaic.version = 11 : i64} {
  func.func @_bigru_kernel(%arg0: i32, %arg1: memref<32x384xbf16, #tpu.memory_space<vmem>>, %arg2: memref<32x384xbf16, #tpu.memory_space<vmem>>, %arg3: memref<8x1xi32, #tpu.memory_space<vmem>>, %arg4: memref<128x384xbf16, #tpu.memory_space<vmem>>, %arg5: memref<1x128xf32, #tpu.memory_space<vmem>>, %arg6: memref<128x384xbf16, #tpu.memory_space<vmem>>, %arg7: memref<1x128xf32, #tpu.memory_space<vmem>>, %arg8: memref<32x128xf32, #tpu.memory_space<vmem>>, %arg9: memref<32x128xf32, #tpu.memory_space<vmem>>, %arg10: memref<2x8x128xf32, #tpu.memory_space<vmem>>, %arg11: memref<8x128xf32, #tpu.memory_space<vmem>>, %arg12: memref<8x128xf32, #tpu.memory_space<vmem>>) attributes {dimension_semantics = [#tpu.dimension_semantics<arbitrary>], iteration_bounds = array<i64: 3>, scalar_prefetch = 0 : i64, scratch_operands = 2 : i64, tpu.core_type = #tpu.core_type<tc>, window_params = [{transform_indices = @transform_0, window_bounds = array<i64: 32, 384>}, {transform_indices = @transform_1, window_bounds = array<i64: 32, 384>}, {pipeline_mode = #tpu.pipeline_mode<synchronous>, transform_indices = @transform_2, window_bounds = array<i64: 8, 1>}, {pipeline_mode = #tpu.pipeline_mode<synchronous>, transform_indices = @transform_3, window_bounds = array<i64: 128, 384>}, {pipeline_mode = #tpu.pipeline_mode<synchronous>, transform_indices = @transform_4, window_bounds = array<i64: 1, 128>}, {pipeline_mode = #tpu.pipeline_mode<synchronous>, transform_indices = @transform_5, window_bounds = array<i64: 128, 384>}, {pipeline_mode = #tpu.pipeline_mode<synchronous>, transform_indices = @transform_6, window_bounds = array<i64: 1, 128>}, {transform_indices = @transform_7, window_bounds = array<i64: 32, 128>}, {transform_indices = @transform_8, window_bounds = array<i64: 32, 128>}, {pipeline_mode = #tpu.pipeline_mode<synchronous>, transform_indices = @transform_9, window_bounds = array<i64: 2, 8, 128>}]} {
    %c0_i32 = arith.constant 0 : i32
    %0 = arith.cmpi eq, %arg0, %c0_i32 : i32
    %1 = arith.extui %0 : i1 to i32
    %c0_i32_0 = arith.constant 0 : i32
    %2 = arith.cmpi ne, %1, %c0_i32_0 : i32
    scf.if %2 {
      %cst_90 = arith.constant 0.000000e+00 : f32
      %398 = vector.broadcast %cst_90 : f32 to vector<8x128xf32>
      %c0_91 = arith.constant 0 : index
      %c0_92 = arith.constant 0 : index
      %399 = vector.load %arg11[%c0_91, %c0_92] : memref<8x128xf32, #tpu.memory_space<vmem>>, vector<8x128xf32>
      tpu.vector_store %arg11[%c0_91, %c0_92], %398 {strides = array<i32>} : memref<8x128xf32, #tpu.memory_space<vmem>>, vector<8x128xf32>,
      %cst_93 = arith.constant 0.000000e+00 : f32
      %400 = vector.broadcast %cst_93 : f32 to vector<8x128xf32>
      %c0_94 = arith.constant 0 : index
      %c0_95 = arith.constant 0 : index
      %401 = vector.load %arg12[%c0_94, %c0_95] : memref<8x128xf32, #tpu.memory_space<vmem>>, vector<8x128xf32>
      tpu.vector_store %arg12[%c0_94, %c0_95], %400 {strides = array<i32>} : memref<8x128xf32, #tpu.memory_space<vmem>>, vector<8x128xf32>,
    } else {
    }
    %c0 = arith.constant 0 : index
    %c0_1 = arith.constant 0 : index
    %3 = vector.load %arg3[%c0, %c0_1] : memref<8x1xi32, #tpu.memory_space<vmem>>, vector<8x1xi32>
    %c0_2 = arith.constant 0 : index
    %c0_3 = arith.constant 0 : index
    %4 = vector.load %arg4[%c0_2, %c0_3] : memref<128x384xbf16, #tpu.memory_space<vmem>>, vector<128x384xbf16>
    %c0_4 = arith.constant 0 : index
    %c0_5 = arith.constant 0 : index
    %5 = vector.load %arg6[%c0_4, %c0_5] : memref<128x384xbf16, #tpu.memory_space<vmem>>, vector<128x384xbf16>
    %c0_6 = arith.constant 0 : index
    %c0_7 = arith.constant 0 : index
    %6 = vector.load %arg5[%c0_6, %c0_7] : memref<1x128xf32, #tpu.memory_space<vmem>>, vector<1x128xf32>
    %c0_8 = arith.constant 0 : index
    %c0_9 = arith.constant 0 : index
    %7 = vector.load %arg7[%c0_8, %c0_9] : memref<1x128xf32, #tpu.memory_space<vmem>>, vector<1x128xf32>
    %c4_i32 = arith.constant 4 : i32
    %8 = arith.muli %arg0, %c4_i32 : i32
    %c2_i32 = arith.constant 2 : i32
    %9 = arith.subi %c2_i32, %arg0 : i32
    %c4_i32_10 = arith.constant 4 : i32
    %10 = arith.muli %9, %c4_i32_10 : i32
    %c0_11 = arith.constant 0 : index
    %c0_12 = arith.constant 0 : index
    %11 = vector.load %arg11[%c0_11, %c0_12] : memref<8x128xf32, #tpu.memory_space<vmem>>, vector<8x128xf32>
    %c0_13 = arith.constant 0 : index
    %c0_14 = arith.constant 0 : index
    %12 = vector.load %arg12[%c0_13, %c0_14] : memref<8x128xf32, #tpu.memory_space<vmem>>, vector<8x128xf32>
    %c0_i32_15 = arith.constant 0 : i32
    %c3_i32 = arith.constant 3 : i32
    %13 = arith.subi %c3_i32, %c0_i32_15 : i32
    %c8_i32 = arith.constant 8 : i32
    %14 = arith.muli %c0_i32_15, %c8_i32 : i32
    %15 = tpu.assume_multiple %14, 8 : i32
    %c8_i32_16 = arith.constant 8 : i32
    %16 = arith.muli %13, %c8_i32_16 : i32
    %17 = tpu.assume_multiple %16, 8 : i32
    %18 = arith.index_cast %15 : i32 to index
    %c0_17 = arith.constant 0 : index
    %19 = vector.load %arg1[%18, %c0_17] : memref<32x384xbf16, #tpu.memory_space<vmem>>, vector<8x384xbf16>
    %20 = arith.extf %19 : vector<8x384xbf16> to vector<8x384xf32>
    %21 = arith.index_cast %17 : i32 to index
    %c0_18 = arith.constant 0 : index
    %22 = vector.load %arg2[%21, %c0_18] : memref<32x384xbf16, #tpu.memory_space<vmem>>, vector<8x384xbf16>
    %23 = arith.extf %22 : vector<8x384xbf16> to vector<8x384xf32>
    %24 = arith.truncf %11 : vector<8x128xf32> to vector<8x128xbf16>
    %cst = arith.constant dense<0.000000e+00> : vector<8x384xf32>
    %25 = tpu.matmul %24, %4, %cst {dimension_numbers = #tpu.dot_dimension_numbers<[1], [0], [0], [1], [0, 0, 1, 1], [], []>} : vector<8x128xbf16>, vector<128x384xbf16>, vector<8x384xf32> -> vector<8x384xf32>
    %26 = vector.extract_strided_slice %20 {offsets = [0, 0], sizes = [8, 128], strides = [1, 1]} : vector<8x384xf32> to vector<8x128xf32>
    %27 = vector.extract_strided_slice %25 {offsets = [0, 0], sizes = [8, 128], strides = [1, 1]} : vector<8x384xf32> to vector<8x128xf32>
    %28 = arith.addf %26, %27 : vector<8x128xf32>
    %29 = arith.negf %28 : vector<8x128xf32>
    %30 = math.exp %29 : vector<8x128xf32>
    %cst_19 = arith.constant 1.000000e+00 : f32
    %31 = vector.broadcast %cst_19 : f32 to vector<8x128xf32>
    %32 = arith.addf %31, %30 : vector<8x128xf32>
    %33 = arith.divf %31, %32 : vector<8x128xf32>
    %34 = vector.extract_strided_slice %20 {offsets = [0, 128], sizes = [8, 128], strides = [1, 1]} : vector<8x384xf32> to vector<8x128xf32>
    %35 = vector.extract_strided_slice %25 {offsets = [0, 128], sizes = [8, 128], strides = [1, 1]} : vector<8x384xf32> to vector<8x128xf32>
    %36 = arith.addf %34, %35 : vector<8x128xf32>
    %37 = arith.negf %36 : vector<8x128xf32>
    %38 = math.exp %37 : vector<8x128xf32>
    %cst_20 = arith.constant 1.000000e+00 : f32
    %39 = vector.broadcast %cst_20 : f32 to vector<8x128xf32>
    %40 = arith.addf %39, %38 : vector<8x128xf32>
    %41 = arith.divf %39, %40 : vector<8x128xf32>
    %42 = vector.extract_strided_slice %20 {offsets = [0, 256], sizes = [8, 128], strides = [1, 1]} : vector<8x384xf32> to vector<8x128xf32>
    %43 = vector.extract_strided_slice %25 {offsets = [0, 256], sizes = [8, 128], strides = [1, 1]} : vector<8x384xf32> to vector<8x128xf32>
    %44 = vector.broadcast %6 : vector<1x128xf32> to vector<8x128xf32>
    %45 = arith.addf %43, %44 : vector<8x128xf32>
    %46 = arith.mulf %33, %45 : vector<8x128xf32>
    %47 = arith.addf %42, %46 : vector<8x128xf32>
    %48 = math.tanh %47 : vector<8x128xf32>
    %cst_21 = arith.constant 1.000000e+00 : f32
    %49 = vector.broadcast %cst_21 : f32 to vector<8x128xf32>
    %50 = arith.subf %49, %41 : vector<8x128xf32>
    %51 = arith.mulf %50, %48 : vector<8x128xf32>
    %52 = arith.mulf %41, %11 : vector<8x128xf32>
    %53 = arith.addf %51, %52 : vector<8x128xf32>
    %54 = arith.truncf %12 : vector<8x128xf32> to vector<8x128xbf16>
    %cst_22 = arith.constant dense<0.000000e+00> : vector<8x384xf32>
    %55 = tpu.matmul %54, %5, %cst_22 {dimension_numbers = #tpu.dot_dimension_numbers<[1], [0], [0], [1], [0, 0, 1, 1], [], []>} : vector<8x128xbf16>, vector<128x384xbf16>, vector<8x384xf32> -> vector<8x384xf32>
    %56 = vector.extract_strided_slice %23 {offsets = [0, 0], sizes = [8, 128], strides = [1, 1]} : vector<8x384xf32> to vector<8x128xf32>
    %57 = vector.extract_strided_slice %55 {offsets = [0, 0], sizes = [8, 128], strides = [1, 1]} : vector<8x384xf32> to vector<8x128xf32>
    %58 = arith.addf %56, %57 : vector<8x128xf32>
    %59 = arith.negf %58 : vector<8x128xf32>
    %60 = math.exp %59 : vector<8x128xf32>
    %cst_23 = arith.constant 1.000000e+00 : f32
    %61 = vector.broadcast %cst_23 : f32 to vector<8x128xf32>
    %62 = arith.addf %61, %60 : vector<8x128xf32>
    %63 = arith.divf %61, %62 : vector<8x128xf32>
    %64 = vector.extract_strided_slice %23 {offsets = [0, 128], sizes = [8, 128], strides = [1, 1]} : vector<8x384xf32> to vector<8x128xf32>
    %65 = vector.extract_strided_slice %55 {offsets = [0, 128], sizes = [8, 128], strides = [1, 1]} : vector<8x384xf32> to vector<8x128xf32>
    %66 = arith.addf %64, %65 : vector<8x128xf32>
    %67 = arith.negf %66 : vector<8x128xf32>
    %68 = math.exp %67 : vector<8x128xf32>
    %cst_24 = arith.constant 1.000000e+00 : f32
    %69 = vector.broadcast %cst_24 : f32 to vector<8x128xf32>
    %70 = arith.addf %69, %68 : vector<8x128xf32>
    %71 = arith.divf %69, %70 : vector<8x128xf32>
    %72 = vector.extract_strided_slice %23 {offsets = [0, 256], sizes = [8, 128], strides = [1, 1]} : vector<8x384xf32> to vector<8x128xf32>
    %73 = vector.extract_strided_slice %55 {offsets = [0, 256], sizes = [8, 128], strides = [1, 1]} : vector<8x384xf32> to vector<8x128xf32>
    %74 = vector.broadcast %7 : vector<1x128xf32> to vector<8x128xf32>
    %75 = arith.addf %73, %74 : vector<8x128xf32>
    %76 = arith.mulf %63, %75 : vector<8x128xf32>
    %77 = arith.addf %72, %76 : vector<8x128xf32>
    %78 = math.tanh %77 : vector<8x128xf32>
    %cst_25 = arith.constant 1.000000e+00 : f32
    %79 = vector.broadcast %cst_25 : f32 to vector<8x128xf32>
    %80 = arith.subf %79, %71 : vector<8x128xf32>
    %81 = arith.mulf %80, %78 : vector<8x128xf32>
    %82 = arith.mulf %71, %12 : vector<8x128xf32>
    %83 = arith.addf %81, %82 : vector<8x128xf32>
    %84 = arith.addi %8, %c0_i32_15 : i32
    %85 = vector.broadcast %84 : i32 to vector<8x1xi32>
    %86 = arith.cmpi sgt, %3, %85 : vector<8x1xi32>
    %87 = arith.addi %10, %13 : i32
    %88 = vector.broadcast %87 : i32 to vector<8x1xi32>
    %89 = arith.cmpi sgt, %3, %88 : vector<8x1xi32>
    %cst_26 = arith.constant 0.000000e+00 : f32
    %90 = vector.shape_cast %86 : vector<8x1xi1> to vector<8x1xi1>
    %91 = vector.broadcast %90 : vector<8x1xi1> to vector<8x128xi1>
    %92 = vector.broadcast %cst_26 : f32 to vector<8x128xf32>
    %93 = arith.select %91, %53, %92 : vector<8x128xi1>, vector<8x128xf32>
    %94 = arith.index_cast %15 : i32 to index
    %c0_27 = arith.constant 0 : index
    %95 = vector.load %arg8[%94, %c0_27] : memref<32x128xf32, #tpu.memory_space<vmem>>, vector<8x128xf32>
    tpu.vector_store %arg8[%94, %c0_27], %93 {strides = array<i32>} : memref<32x128xf32, #tpu.memory_space<vmem>>, vector<8x128xf32>,
    %cst_28 = arith.constant 0.000000e+00 : f32
    %96 = vector.shape_cast %89 : vector<8x1xi1> to vector<8x1xi1>
    %97 = vector.broadcast %96 : vector<8x1xi1> to vector<8x128xi1>
    %98 = vector.broadcast %cst_28 : f32 to vector<8x128xf32>
    %99 = arith.select %97, %83, %98 : vector<8x128xi1>, vector<8x128xf32>
    %100 = arith.index_cast %17 : i32 to index
    %c0_29 = arith.constant 0 : index
    %101 = vector.load %arg9[%100, %c0_29] : memref<32x128xf32, #tpu.memory_space<vmem>>, vector<8x128xf32>
    tpu.vector_store %arg9[%100, %c0_29], %99 {strides = array<i32>} : memref<32x128xf32, #tpu.memory_space<vmem>>, vector<8x128xf32>,
    %102 = vector.shape_cast %86 : vector<8x1xi1> to vector<8x1xi1>
    %103 = vector.broadcast %102 : vector<8x1xi1> to vector<8x128xi1>
    %104 = arith.select %103, %53, %11 : vector<8x128xi1>, vector<8x128xf32>
    %105 = vector.shape_cast %89 : vector<8x1xi1> to vector<8x1xi1>
    %106 = vector.broadcast %105 : vector<8x1xi1> to vector<8x128xi1>
    %107 = arith.select %106, %83, %12 : vector<8x128xi1>, vector<8x128xf32>
    %c1_i32 = arith.constant 1 : i32
    %c3_i32_30 = arith.constant 3 : i32
    %108 = arith.subi %c3_i32_30, %c1_i32 : i32
    %c8_i32_31 = arith.constant 8 : i32
    %109 = arith.muli %c1_i32, %c8_i32_31 : i32
    %110 = tpu.assume_multiple %109, 8 : i32
    %c8_i32_32 = arith.constant 8 : i32
    %111 = arith.muli %108, %c8_i32_32 : i32
    %112 = tpu.assume_multiple %111, 8 : i32
    %113 = arith.index_cast %110 : i32 to index
    %c0_33 = arith.constant 0 : index
    %114 = vector.load %arg1[%113, %c0_33] : memref<32x384xbf16, #tpu.memory_space<vmem>>, vector<8x384xbf16>
    %115 = arith.extf %114 : vector<8x384xbf16> to vector<8x384xf32>
    %116 = arith.index_cast %112 : i32 to index
    %c0_34 = arith.constant 0 : index
    %117 = vector.load %arg2[%116, %c0_34] : memref<32x384xbf16, #tpu.memory_space<vmem>>, vector<8x384xbf16>
    %118 = arith.extf %117 : vector<8x384xbf16> to vector<8x384xf32>
    %119 = arith.truncf %104 : vector<8x128xf32> to vector<8x128xbf16>
    %cst_35 = arith.constant dense<0.000000e+00> : vector<8x384xf32>
    %120 = tpu.matmul %119, %4, %cst_35 {dimension_numbers = #tpu.dot_dimension_numbers<[1], [0], [0], [1], [0, 0, 1, 1], [], []>} : vector<8x128xbf16>, vector<128x384xbf16>, vector<8x384xf32> -> vector<8x384xf32>
    %121 = vector.extract_strided_slice %115 {offsets = [0, 0], sizes = [8, 128], strides = [1, 1]} : vector<8x384xf32> to vector<8x128xf32>
    %122 = vector.extract_strided_slice %120 {offsets = [0, 0], sizes = [8, 128], strides = [1, 1]} : vector<8x384xf32> to vector<8x128xf32>
    %123 = arith.addf %121, %122 : vector<8x128xf32>
    %124 = arith.negf %123 : vector<8x128xf32>
    %125 = math.exp %124 : vector<8x128xf32>
    %cst_36 = arith.constant 1.000000e+00 : f32
    %126 = vector.broadcast %cst_36 : f32 to vector<8x128xf32>
    %127 = arith.addf %126, %125 : vector<8x128xf32>
    %128 = arith.divf %126, %127 : vector<8x128xf32>
    %129 = vector.extract_strided_slice %115 {offsets = [0, 128], sizes = [8, 128], strides = [1, 1]} : vector<8x384xf32> to vector<8x128xf32>
    %130 = vector.extract_strided_slice %120 {offsets = [0, 128], sizes = [8, 128], strides = [1, 1]} : vector<8x384xf32> to vector<8x128xf32>
    %131 = arith.addf %129, %130 : vector<8x128xf32>
    %132 = arith.negf %131 : vector<8x128xf32>
    %133 = math.exp %132 : vector<8x128xf32>
    %cst_37 = arith.constant 1.000000e+00 : f32
    %134 = vector.broadcast %cst_37 : f32 to vector<8x128xf32>
    %135 = arith.addf %134, %133 : vector<8x128xf32>
    %136 = arith.divf %134, %135 : vector<8x128xf32>
    %137 = vector.extract_strided_slice %115 {offsets = [0, 256], sizes = [8, 128], strides = [1, 1]} : vector<8x384xf32> to vector<8x128xf32>
    %138 = vector.extract_strided_slice %120 {offsets = [0, 256], sizes = [8, 128], strides = [1, 1]} : vector<8x384xf32> to vector<8x128xf32>
    %139 = vector.broadcast %6 : vector<1x128xf32> to vector<8x128xf32>
    %140 = arith.addf %138, %139 : vector<8x128xf32>
    %141 = arith.mulf %128, %140 : vector<8x128xf32>
    %142 = arith.addf %137, %141 : vector<8x128xf32>
    %143 = math.tanh %142 : vector<8x128xf32>
    %cst_38 = arith.constant 1.000000e+00 : f32
    %144 = vector.broadcast %cst_38 : f32 to vector<8x128xf32>
    %145 = arith.subf %144, %136 : vector<8x128xf32>
    %146 = arith.mulf %145, %143 : vector<8x128xf32>
    %147 = arith.mulf %136, %104 : vector<8x128xf32>
    %148 = arith.addf %146, %147 : vector<8x128xf32>
    %149 = arith.truncf %107 : vector<8x128xf32> to vector<8x128xbf16>
    %cst_39 = arith.constant dense<0.000000e+00> : vector<8x384xf32>
    %150 = tpu.matmul %149, %5, %cst_39 {dimension_numbers = #tpu.dot_dimension_numbers<[1], [0], [0], [1], [0, 0, 1, 1], [], []>} : vector<8x128xbf16>, vector<128x384xbf16>, vector<8x384xf32> -> vector<8x384xf32>
    %151 = vector.extract_strided_slice %118 {offsets = [0, 0], sizes = [8, 128], strides = [1, 1]} : vector<8x384xf32> to vector<8x128xf32>
    %152 = vector.extract_strided_slice %150 {offsets = [0, 0], sizes = [8, 128], strides = [1, 1]} : vector<8x384xf32> to vector<8x128xf32>
    %153 = arith.addf %151, %152 : vector<8x128xf32>
    %154 = arith.negf %153 : vector<8x128xf32>
    %155 = math.exp %154 : vector<8x128xf32>
    %cst_40 = arith.constant 1.000000e+00 : f32
    %156 = vector.broadcast %cst_40 : f32 to vector<8x128xf32>
    %157 = arith.addf %156, %155 : vector<8x128xf32>
    %158 = arith.divf %156, %157 : vector<8x128xf32>
    %159 = vector.extract_strided_slice %118 {offsets = [0, 128], sizes = [8, 128], strides = [1, 1]} : vector<8x384xf32> to vector<8x128xf32>
    %160 = vector.extract_strided_slice %150 {offsets = [0, 128], sizes = [8, 128], strides = [1, 1]} : vector<8x384xf32> to vector<8x128xf32>
    %161 = arith.addf %159, %160 : vector<8x128xf32>
    %162 = arith.negf %161 : vector<8x128xf32>
    %163 = math.exp %162 : vector<8x128xf32>
    %cst_41 = arith.constant 1.000000e+00 : f32
    %164 = vector.broadcast %cst_41 : f32 to vector<8x128xf32>
    %165 = arith.addf %164, %163 : vector<8x128xf32>
    %166 = arith.divf %164, %165 : vector<8x128xf32>
    %167 = vector.extract_strided_slice %118 {offsets = [0, 256], sizes = [8, 128], strides = [1, 1]} : vector<8x384xf32> to vector<8x128xf32>
    %168 = vector.extract_strided_slice %150 {offsets = [0, 256], sizes = [8, 128], strides = [1, 1]} : vector<8x384xf32> to vector<8x128xf32>
    %169 = vector.broadcast %7 : vector<1x128xf32> to vector<8x128xf32>
    %170 = arith.addf %168, %169 : vector<8x128xf32>
    %171 = arith.mulf %158, %170 : vector<8x128xf32>
    %172 = arith.addf %167, %171 : vector<8x128xf32>
    %173 = math.tanh %172 : vector<8x128xf32>
    %cst_42 = arith.constant 1.000000e+00 : f32
    %174 = vector.broadcast %cst_42 : f32 to vector<8x128xf32>
    %175 = arith.subf %174, %166 : vector<8x128xf32>
    %176 = arith.mulf %175, %173 : vector<8x128xf32>
    %177 = arith.mulf %166, %107 : vector<8x128xf32>
    %178 = arith.addf %176, %177 : vector<8x128xf32>
    %179 = arith.addi %8, %c1_i32 : i32
    %180 = vector.broadcast %179 : i32 to vector<8x1xi32>
    %181 = arith.cmpi sgt, %3, %180 : vector<8x1xi32>
    %182 = arith.addi %10, %108 : i32
    %183 = vector.broadcast %182 : i32 to vector<8x1xi32>
    %184 = arith.cmpi sgt, %3, %183 : vector<8x1xi32>
    %cst_43 = arith.constant 0.000000e+00 : f32
    %185 = vector.shape_cast %181 : vector<8x1xi1> to vector<8x1xi1>
    %186 = vector.broadcast %185 : vector<8x1xi1> to vector<8x128xi1>
    %187 = vector.broadcast %cst_43 : f32 to vector<8x128xf32>
    %188 = arith.select %186, %148, %187 : vector<8x128xi1>, vector<8x128xf32>
    %189 = arith.index_cast %110 : i32 to index
    %c0_44 = arith.constant 0 : index
    %190 = vector.load %arg8[%189, %c0_44] : memref<32x128xf32, #tpu.memory_space<vmem>>, vector<8x128xf32>
    tpu.vector_store %arg8[%189, %c0_44], %188 {strides = array<i32>} : memref<32x128xf32, #tpu.memory_space<vmem>>, vector<8x128xf32>,
    %cst_45 = arith.constant 0.000000e+00 : f32
    %191 = vector.shape_cast %184 : vector<8x1xi1> to vector<8x1xi1>
    %192 = vector.broadcast %191 : vector<8x1xi1> to vector<8x128xi1>
    %193 = vector.broadcast %cst_45 : f32 to vector<8x128xf32>
    %194 = arith.select %192, %178, %193 : vector<8x128xi1>, vector<8x128xf32>
    %195 = arith.index_cast %112 : i32 to index
    %c0_46 = arith.constant 0 : index
    %196 = vector.load %arg9[%195, %c0_46] : memref<32x128xf32, #tpu.memory_space<vmem>>, vector<8x128xf32>
    tpu.vector_store %arg9[%195, %c0_46], %194 {strides = array<i32>} : memref<32x128xf32, #tpu.memory_space<vmem>>, vector<8x128xf32>,
    %197 = vector.shape_cast %181 : vector<8x1xi1> to vector<8x1xi1>
    %198 = vector.broadcast %197 : vector<8x1xi1> to vector<8x128xi1>
    %199 = arith.select %198, %148, %104 : vector<8x128xi1>, vector<8x128xf32>
    %200 = vector.shape_cast %184 : vector<8x1xi1> to vector<8x1xi1>
    %201 = vector.broadcast %200 : vector<8x1xi1> to vector<8x128xi1>
    %202 = arith.select %201, %178, %107 : vector<8x128xi1>, vector<8x128xf32>
    %c2_i32_47 = arith.constant 2 : i32
    %c3_i32_48 = arith.constant 3 : i32
    %203 = arith.subi %c3_i32_48, %c2_i32_47 : i32
    %c8_i32_49 = arith.constant 8 : i32
    %204 = arith.muli %c2_i32_47, %c8_i32_49 : i32
    %205 = tpu.assume_multiple %204, 8 : i32
    %c8_i32_50 = arith.constant 8 : i32
    %206 = arith.muli %203, %c8_i32_50 : i32
    %207 = tpu.assume_multiple %206, 8 : i32
    %208 = arith.index_cast %205 : i32 to index
    %c0_51 = arith.constant 0 : index
    %209 = vector.load %arg1[%208, %c0_51] : memref<32x384xbf16, #tpu.memory_space<vmem>>, vector<8x384xbf16>
    %210 = arith.extf %209 : vector<8x384xbf16> to vector<8x384xf32>
    %211 = arith.index_cast %207 : i32 to index
    %c0_52 = arith.constant 0 : index
    %212 = vector.load %arg2[%211, %c0_52] : memref<32x384xbf16, #tpu.memory_space<vmem>>, vector<8x384xbf16>
    %213 = arith.extf %212 : vector<8x384xbf16> to vector<8x384xf32>
    %214 = arith.truncf %199 : vector<8x128xf32> to vector<8x128xbf16>
    %cst_53 = arith.constant dense<0.000000e+00> : vector<8x384xf32>
    %215 = tpu.matmul %214, %4, %cst_53 {dimension_numbers = #tpu.dot_dimension_numbers<[1], [0], [0], [1], [0, 0, 1, 1], [], []>} : vector<8x128xbf16>, vector<128x384xbf16>, vector<8x384xf32> -> vector<8x384xf32>
    %216 = vector.extract_strided_slice %210 {offsets = [0, 0], sizes = [8, 128], strides = [1, 1]} : vector<8x384xf32> to vector<8x128xf32>
    %217 = vector.extract_strided_slice %215 {offsets = [0, 0], sizes = [8, 128], strides = [1, 1]} : vector<8x384xf32> to vector<8x128xf32>
    %218 = arith.addf %216, %217 : vector<8x128xf32>
    %219 = arith.negf %218 : vector<8x128xf32>
    %220 = math.exp %219 : vector<8x128xf32>
    %cst_54 = arith.constant 1.000000e+00 : f32
    %221 = vector.broadcast %cst_54 : f32 to vector<8x128xf32>
    %222 = arith.addf %221, %220 : vector<8x128xf32>
    %223 = arith.divf %221, %222 : vector<8x128xf32>
    %224 = vector.extract_strided_slice %210 {offsets = [0, 128], sizes = [8, 128], strides = [1, 1]} : vector<8x384xf32> to vector<8x128xf32>
    %225 = vector.extract_strided_slice %215 {offsets = [0, 128], sizes = [8, 128], strides = [1, 1]} : vector<8x384xf32> to vector<8x128xf32>
    %226 = arith.addf %224, %225 : vector<8x128xf32>
    %227 = arith.negf %226 : vector<8x128xf32>
    %228 = math.exp %227 : vector<8x128xf32>
    %cst_55 = arith.constant 1.000000e+00 : f32
    %229 = vector.broadcast %cst_55 : f32 to vector<8x128xf32>
    %230 = arith.addf %229, %228 : vector<8x128xf32>
    %231 = arith.divf %229, %230 : vector<8x128xf32>
    %232 = vector.extract_strided_slice %210 {offsets = [0, 256], sizes = [8, 128], strides = [1, 1]} : vector<8x384xf32> to vector<8x128xf32>
    %233 = vector.extract_strided_slice %215 {offsets = [0, 256], sizes = [8, 128], strides = [1, 1]} : vector<8x384xf32> to vector<8x128xf32>
    %234 = vector.broadcast %6 : vector<1x128xf32> to vector<8x128xf32>
    %235 = arith.addf %233, %234 : vector<8x128xf32>
    %236 = arith.mulf %223, %235 : vector<8x128xf32>
    %237 = arith.addf %232, %236 : vector<8x128xf32>
    %238 = math.tanh %237 : vector<8x128xf32>
    %cst_56 = arith.constant 1.000000e+00 : f32
    %239 = vector.broadcast %cst_56 : f32 to vector<8x128xf32>
    %240 = arith.subf %239, %231 : vector<8x128xf32>
    %241 = arith.mulf %240, %238 : vector<8x128xf32>
    %242 = arith.mulf %231, %199 : vector<8x128xf32>
    %243 = arith.addf %241, %242 : vector<8x128xf32>
    %244 = arith.truncf %202 : vector<8x128xf32> to vector<8x128xbf16>
    %cst_57 = arith.constant dense<0.000000e+00> : vector<8x384xf32>
    %245 = tpu.matmul %244, %5, %cst_57 {dimension_numbers = #tpu.dot_dimension_numbers<[1], [0], [0], [1], [0, 0, 1, 1], [], []>} : vector<8x128xbf16>, vector<128x384xbf16>, vector<8x384xf32> -> vector<8x384xf32>
    %246 = vector.extract_strided_slice %213 {offsets = [0, 0], sizes = [8, 128], strides = [1, 1]} : vector<8x384xf32> to vector<8x128xf32>
    %247 = vector.extract_strided_slice %245 {offsets = [0, 0], sizes = [8, 128], strides = [1, 1]} : vector<8x384xf32> to vector<8x128xf32>
    %248 = arith.addf %246, %247 : vector<8x128xf32>
    %249 = arith.negf %248 : vector<8x128xf32>
    %250 = math.exp %249 : vector<8x128xf32>
    %cst_58 = arith.constant 1.000000e+00 : f32
    %251 = vector.broadcast %cst_58 : f32 to vector<8x128xf32>
    %252 = arith.addf %251, %250 : vector<8x128xf32>
    %253 = arith.divf %251, %252 : vector<8x128xf32>
    %254 = vector.extract_strided_slice %213 {offsets = [0, 128], sizes = [8, 128], strides = [1, 1]} : vector<8x384xf32> to vector<8x128xf32>
    %255 = vector.extract_strided_slice %245 {offsets = [0, 128], sizes = [8, 128], strides = [1, 1]} : vector<8x384xf32> to vector<8x128xf32>
    %256 = arith.addf %254, %255 : vector<8x128xf32>
    %257 = arith.negf %256 : vector<8x128xf32>
    %258 = math.exp %257 : vector<8x128xf32>
    %cst_59 = arith.constant 1.000000e+00 : f32
    %259 = vector.broadcast %cst_59 : f32 to vector<8x128xf32>
    %260 = arith.addf %259, %258 : vector<8x128xf32>
    %261 = arith.divf %259, %260 : vector<8x128xf32>
    %262 = vector.extract_strided_slice %213 {offsets = [0, 256], sizes = [8, 128], strides = [1, 1]} : vector<8x384xf32> to vector<8x128xf32>
    %263 = vector.extract_strided_slice %245 {offsets = [0, 256], sizes = [8, 128], strides = [1, 1]} : vector<8x384xf32> to vector<8x128xf32>
    %264 = vector.broadcast %7 : vector<1x128xf32> to vector<8x128xf32>
    %265 = arith.addf %263, %264 : vector<8x128xf32>
    %266 = arith.mulf %253, %265 : vector<8x128xf32>
    %267 = arith.addf %262, %266 : vector<8x128xf32>
    %268 = math.tanh %267 : vector<8x128xf32>
    %cst_60 = arith.constant 1.000000e+00 : f32
    %269 = vector.broadcast %cst_60 : f32 to vector<8x128xf32>
    %270 = arith.subf %269, %261 : vector<8x128xf32>
    %271 = arith.mulf %270, %268 : vector<8x128xf32>
    %272 = arith.mulf %261, %202 : vector<8x128xf32>
    %273 = arith.addf %271, %272 : vector<8x128xf32>
    %274 = arith.addi %8, %c2_i32_47 : i32
    %275 = vector.broadcast %274 : i32 to vector<8x1xi32>
    %276 = arith.cmpi sgt, %3, %275 : vector<8x1xi32>
    %277 = arith.addi %10, %203 : i32
    %278 = vector.broadcast %277 : i32 to vector<8x1xi32>
    %279 = arith.cmpi sgt, %3, %278 : vector<8x1xi32>
    %cst_61 = arith.constant 0.000000e+00 : f32
    %280 = vector.shape_cast %276 : vector<8x1xi1> to vector<8x1xi1>
    %281 = vector.broadcast %280 : vector<8x1xi1> to vector<8x128xi1>
    %282 = vector.broadcast %cst_61 : f32 to vector<8x128xf32>
    %283 = arith.select %281, %243, %282 : vector<8x128xi1>, vector<8x128xf32>
    %284 = arith.index_cast %205 : i32 to index
    %c0_62 = arith.constant 0 : index
    %285 = vector.load %arg8[%284, %c0_62] : memref<32x128xf32, #tpu.memory_space<vmem>>, vector<8x128xf32>
    tpu.vector_store %arg8[%284, %c0_62], %283 {strides = array<i32>} : memref<32x128xf32, #tpu.memory_space<vmem>>, vector<8x128xf32>,
    %cst_63 = arith.constant 0.000000e+00 : f32
    %286 = vector.shape_cast %279 : vector<8x1xi1> to vector<8x1xi1>
    %287 = vector.broadcast %286 : vector<8x1xi1> to vector<8x128xi1>
    %288 = vector.broadcast %cst_63 : f32 to vector<8x128xf32>
    %289 = arith.select %287, %273, %288 : vector<8x128xi1>, vector<8x128xf32>
    %290 = arith.index_cast %207 : i32 to index
    %c0_64 = arith.constant 0 : index
    %291 = vector.load %arg9[%290, %c0_64] : memref<32x128xf32, #tpu.memory_space<vmem>>, vector<8x128xf32>
    tpu.vector_store %arg9[%290, %c0_64], %289 {strides = array<i32>} : memref<32x128xf32, #tpu.memory_space<vmem>>, vector<8x128xf32>,
    %292 = vector.shape_cast %276 : vector<8x1xi1> to vector<8x1xi1>
    %293 = vector.broadcast %292 : vector<8x1xi1> to vector<8x128xi1>
    %294 = arith.select %293, %243, %199 : vector<8x128xi1>, vector<8x128xf32>
    %295 = vector.shape_cast %279 : vector<8x1xi1> to vector<8x1xi1>
    %296 = vector.broadcast %295 : vector<8x1xi1> to vector<8x128xi1>
    %297 = arith.select %296, %273, %202 : vector<8x128xi1>, vector<8x128xf32>
    %c3_i32_65 = arith.constant 3 : i32
    %c3_i32_66 = arith.constant 3 : i32
    %298 = arith.subi %c3_i32_66, %c3_i32_65 : i32
    %c8_i32_67 = arith.constant 8 : i32
    %299 = arith.muli %c3_i32_65, %c8_i32_67 : i32
    %300 = tpu.assume_multiple %299, 8 : i32
    %c8_i32_68 = arith.constant 8 : i32
    %301 = arith.muli %298, %c8_i32_68 : i32
    %302 = tpu.assume_multiple %301, 8 : i32
    %303 = arith.index_cast %300 : i32 to index
    %c0_69 = arith.constant 0 : index
    %304 = vector.load %arg1[%303, %c0_69] : memref<32x384xbf16, #tpu.memory_space<vmem>>, vector<8x384xbf16>
    %305 = arith.extf %304 : vector<8x384xbf16> to vector<8x384xf32>
    %306 = arith.index_cast %302 : i32 to index
    %c0_70 = arith.constant 0 : index
    %307 = vector.load %arg2[%306, %c0_70] : memref<32x384xbf16, #tpu.memory_space<vmem>>, vector<8x384xbf16>
    %308 = arith.extf %307 : vector<8x384xbf16> to vector<8x384xf32>
    %309 = arith.truncf %294 : vector<8x128xf32> to vector<8x128xbf16>
    %cst_71 = arith.constant dense<0.000000e+00> : vector<8x384xf32>
    %310 = tpu.matmul %309, %4, %cst_71 {dimension_numbers = #tpu.dot_dimension_numbers<[1], [0], [0], [1], [0, 0, 1, 1], [], []>} : vector<8x128xbf16>, vector<128x384xbf16>, vector<8x384xf32> -> vector<8x384xf32>
    %311 = vector.extract_strided_slice %305 {offsets = [0, 0], sizes = [8, 128], strides = [1, 1]} : vector<8x384xf32> to vector<8x128xf32>
    %312 = vector.extract_strided_slice %310 {offsets = [0, 0], sizes = [8, 128], strides = [1, 1]} : vector<8x384xf32> to vector<8x128xf32>
    %313 = arith.addf %311, %312 : vector<8x128xf32>
    %314 = arith.negf %313 : vector<8x128xf32>
    %315 = math.exp %314 : vector<8x128xf32>
    %cst_72 = arith.constant 1.000000e+00 : f32
    %316 = vector.broadcast %cst_72 : f32 to vector<8x128xf32>
    %317 = arith.addf %316, %315 : vector<8x128xf32>
    %318 = arith.divf %316, %317 : vector<8x128xf32>
    %319 = vector.extract_strided_slice %305 {offsets = [0, 128], sizes = [8, 128], strides = [1, 1]} : vector<8x384xf32> to vector<8x128xf32>
    %320 = vector.extract_strided_slice %310 {offsets = [0, 128], sizes = [8, 128], strides = [1, 1]} : vector<8x384xf32> to vector<8x128xf32>
    %321 = arith.addf %319, %320 : vector<8x128xf32>
    %322 = arith.negf %321 : vector<8x128xf32>
    %323 = math.exp %322 : vector<8x128xf32>
    %cst_73 = arith.constant 1.000000e+00 : f32
    %324 = vector.broadcast %cst_73 : f32 to vector<8x128xf32>
    %325 = arith.addf %324, %323 : vector<8x128xf32>
    %326 = arith.divf %324, %325 : vector<8x128xf32>
    %327 = vector.extract_strided_slice %305 {offsets = [0, 256], sizes = [8, 128], strides = [1, 1]} : vector<8x384xf32> to vector<8x128xf32>
    %328 = vector.extract_strided_slice %310 {offsets = [0, 256], sizes = [8, 128], strides = [1, 1]} : vector<8x384xf32> to vector<8x128xf32>
    %329 = vector.broadcast %6 : vector<1x128xf32> to vector<8x128xf32>
    %330 = arith.addf %328, %329 : vector<8x128xf32>
    %331 = arith.mulf %318, %330 : vector<8x128xf32>
    %332 = arith.addf %327, %331 : vector<8x128xf32>
    %333 = math.tanh %332 : vector<8x128xf32>
    %cst_74 = arith.constant 1.000000e+00 : f32
    %334 = vector.broadcast %cst_74 : f32 to vector<8x128xf32>
    %335 = arith.subf %334, %326 : vector<8x128xf32>
    %336 = arith.mulf %335, %333 : vector<8x128xf32>
    %337 = arith.mulf %326, %294 : vector<8x128xf32>
    %338 = arith.addf %336, %337 : vector<8x128xf32>
    %339 = arith.truncf %297 : vector<8x128xf32> to vector<8x128xbf16>
    %cst_75 = arith.constant dense<0.000000e+00> : vector<8x384xf32>
    %340 = tpu.matmul %339, %5, %cst_75 {dimension_numbers = #tpu.dot_dimension_numbers<[1], [0], [0], [1], [0, 0, 1, 1], [], []>} : vector<8x128xbf16>, vector<128x384xbf16>, vector<8x384xf32> -> vector<8x384xf32>
    %341 = vector.extract_strided_slice %308 {offsets = [0, 0], sizes = [8, 128], strides = [1, 1]} : vector<8x384xf32> to vector<8x128xf32>
    %342 = vector.extract_strided_slice %340 {offsets = [0, 0], sizes = [8, 128], strides = [1, 1]} : vector<8x384xf32> to vector<8x128xf32>
    %343 = arith.addf %341, %342 : vector<8x128xf32>
    %344 = arith.negf %343 : vector<8x128xf32>
    %345 = math.exp %344 : vector<8x128xf32>
    %cst_76 = arith.constant 1.000000e+00 : f32
    %346 = vector.broadcast %cst_76 : f32 to vector<8x128xf32>
    %347 = arith.addf %346, %345 : vector<8x128xf32>
    %348 = arith.divf %346, %347 : vector<8x128xf32>
    %349 = vector.extract_strided_slice %308 {offsets = [0, 128], sizes = [8, 128], strides = [1, 1]} : vector<8x384xf32> to vector<8x128xf32>
    %350 = vector.extract_strided_slice %340 {offsets = [0, 128], sizes = [8, 128], strides = [1, 1]} : vector<8x384xf32> to vector<8x128xf32>
    %351 = arith.addf %349, %350 : vector<8x128xf32>
    %352 = arith.negf %351 : vector<8x128xf32>
    %353 = math.exp %352 : vector<8x128xf32>
    %cst_77 = arith.constant 1.000000e+00 : f32
    %354 = vector.broadcast %cst_77 : f32 to vector<8x128xf32>
    %355 = arith.addf %354, %353 : vector<8x128xf32>
    %356 = arith.divf %354, %355 : vector<8x128xf32>
    %357 = vector.extract_strided_slice %308 {offsets = [0, 256], sizes = [8, 128], strides = [1, 1]} : vector<8x384xf32> to vector<8x128xf32>
    %358 = vector.extract_strided_slice %340 {offsets = [0, 256], sizes = [8, 128], strides = [1, 1]} : vector<8x384xf32> to vector<8x128xf32>
    %359 = vector.broadcast %7 : vector<1x128xf32> to vector<8x128xf32>
    %360 = arith.addf %358, %359 : vector<8x128xf32>
    %361 = arith.mulf %348, %360 : vector<8x128xf32>
    %362 = arith.addf %357, %361 : vector<8x128xf32>
    %363 = math.tanh %362 : vector<8x128xf32>
    %cst_78 = arith.constant 1.000000e+00 : f32
    %364 = vector.broadcast %cst_78 : f32 to vector<8x128xf32>
    %365 = arith.subf %364, %356 : vector<8x128xf32>
    %366 = arith.mulf %365, %363 : vector<8x128xf32>
    %367 = arith.mulf %356, %297 : vector<8x128xf32>
    %368 = arith.addf %366, %367 : vector<8x128xf32>
    %369 = arith.addi %8, %c3_i32_65 : i32
    %370 = vector.broadcast %369 : i32 to vector<8x1xi32>
    %371 = arith.cmpi sgt, %3, %370 : vector<8x1xi32>
    %372 = arith.addi %10, %298 : i32
    %373 = vector.broadcast %372 : i32 to vector<8x1xi32>
    %374 = arith.cmpi sgt, %3, %373 : vector<8x1xi32>
    %cst_79 = arith.constant 0.000000e+00 : f32
    %375 = vector.shape_cast %371 : vector<8x1xi1> to vector<8x1xi1>
    %376 = vector.broadcast %375 : vector<8x1xi1> to vector<8x128xi1>
    %377 = vector.broadcast %cst_79 : f32 to vector<8x128xf32>
    %378 = arith.select %376, %338, %377 : vector<8x128xi1>, vector<8x128xf32>
    %379 = arith.index_cast %300 : i32 to index
    %c0_80 = arith.constant 0 : index
    %380 = vector.load %arg8[%379, %c0_80] : memref<32x128xf32, #tpu.memory_space<vmem>>, vector<8x128xf32>
    tpu.vector_store %arg8[%379, %c0_80], %378 {strides = array<i32>} : memref<32x128xf32, #tpu.memory_space<vmem>>, vector<8x128xf32>,
    %cst_81 = arith.constant 0.000000e+00 : f32
    %381 = vector.shape_cast %374 : vector<8x1xi1> to vector<8x1xi1>
    %382 = vector.broadcast %381 : vector<8x1xi1> to vector<8x128xi1>
    %383 = vector.broadcast %cst_81 : f32 to vector<8x128xf32>
    %384 = arith.select %382, %368, %383 : vector<8x128xi1>, vector<8x128xf32>
    %385 = arith.index_cast %302 : i32 to index
    %c0_82 = arith.constant 0 : index
    %386 = vector.load %arg9[%385, %c0_82] : memref<32x128xf32, #tpu.memory_space<vmem>>, vector<8x128xf32>
    tpu.vector_store %arg9[%385, %c0_82], %384 {strides = array<i32>} : memref<32x128xf32, #tpu.memory_space<vmem>>, vector<8x128xf32>,
    %387 = vector.shape_cast %371 : vector<8x1xi1> to vector<8x1xi1>
    %388 = vector.broadcast %387 : vector<8x1xi1> to vector<8x128xi1>
    %389 = arith.select %388, %338, %294 : vector<8x128xi1>, vector<8x128xf32>
    %390 = vector.shape_cast %374 : vector<8x1xi1> to vector<8x1xi1>
    %391 = vector.broadcast %390 : vector<8x1xi1> to vector<8x128xi1>
    %392 = arith.select %391, %368, %297 : vector<8x128xi1>, vector<8x128xf32>
    %c4_i32_83 = arith.constant 4 : i32
    %c0_84 = arith.constant 0 : index
    %c0_85 = arith.constant 0 : index
    %393 = vector.load %arg11[%c0_84, %c0_85] : memref<8x128xf32, #tpu.memory_space<vmem>>, vector<8x128xf32>
    tpu.vector_store %arg11[%c0_84, %c0_85], %389 {strides = array<i32>} : memref<8x128xf32, #tpu.memory_space<vmem>>, vector<8x128xf32>,
    %c0_86 = arith.constant 0 : index
    %c0_87 = arith.constant 0 : index
    %394 = vector.load %arg12[%c0_86, %c0_87] : memref<8x128xf32, #tpu.memory_space<vmem>>, vector<8x128xf32>
    tpu.vector_store %arg12[%c0_86, %c0_87], %392 {strides = array<i32>} : memref<8x128xf32, #tpu.memory_space<vmem>>, vector<8x128xf32>,
    %c2_i32_88 = arith.constant 2 : i32
    %395 = arith.cmpi eq, %arg0, %c2_i32_88 : i32
    %396 = arith.extui %395 : i1 to i32
    %c0_i32_89 = arith.constant 0 : i32
    %397 = arith.cmpi ne, %396, %c0_i32_89 : i32
    scf.if %397 {
      %c0_90 = arith.constant 0 : index
      %c0_91 = arith.constant 0 : index
      %c0_92 = arith.constant 0 : index
      %398 = vector.load %arg10[%c0_90, %c0_91, %c0_92] : memref<2x8x128xf32, #tpu.memory_space<vmem>>, vector<1x8x128xf32>
      %399 = vector.shape_cast %398 : vector<1x8x128xf32> to vector<8x128xf32>
      %400 = vector.shape_cast %389 : vector<8x128xf32> to vector<1x8x128xf32>
      tpu.vector_store %arg10[%c0_90, %c0_91, %c0_92], %400 {strides = array<i32>} : memref<2x8x128xf32, #tpu.memory_space<vmem>>, vector<1x8x128xf32>,
      %c1 = arith.constant 1 : index
      %c0_93 = arith.constant 0 : index
      %c0_94 = arith.constant 0 : index
      %401 = vector.load %arg10[%c1, %c0_93, %c0_94] : memref<2x8x128xf32, #tpu.memory_space<vmem>>, vector<1x8x128xf32>
      %402 = vector.shape_cast %401 : vector<1x8x128xf32> to vector<8x128xf32>
      %403 = vector.shape_cast %392 : vector<8x128xf32> to vector<1x8x128xf32>
      tpu.vector_store %arg10[%c1, %c0_93, %c0_94], %403 {strides = array<i32>} : memref<2x8x128xf32, #tpu.memory_space<vmem>>, vector<1x8x128xf32>,
    } else {
    }
    return
  }
  func.func @transform_0(%arg0: i32) -> (i32, i32) {
    %c0_i32 = arith.constant 0 : i32
    %c0_i32_0 = arith.constant 0 : i32
    return %arg0, %c0_i32 : i32, i32
  }
  func.func @transform_1(%arg0: i32) -> (i32, i32) {
    %c2_i32 = arith.constant 2 : i32
    %0 = arith.subi %c2_i32, %arg0 : i32
    %c0_i32 = arith.constant 0 : i32
    %c0_i32_0 = arith.constant 0 : i32
    return %0, %c0_i32 : i32, i32
  }
  func.func @transform_2(%arg0: i32) -> (i32, i32) {
    %c0_i32 = arith.constant 0 : i32
    %c0_i32_0 = arith.constant 0 : i32
    %c0_i32_1 = arith.constant 0 : i32
    return %c0_i32, %c0_i32_0 : i32, i32
  }
  func.func @transform_3(%arg0: i32) -> (i32, i32) {
    %c0_i32 = arith.constant 0 : i32
    %c0_i32_0 = arith.constant 0 : i32
    %c0_i32_1 = arith.constant 0 : i32
    return %c0_i32, %c0_i32_0 : i32, i32
  }
  func.func @transform_4(%arg0: i32) -> (i32, i32) {
    %c0_i32 = arith.constant 0 : i32
    %c0_i32_0 = arith.constant 0 : i32
    %c0_i32_1 = arith.constant 0 : i32
    return %c0_i32, %c0_i32_0 : i32, i32
  }
  func.func @transform_5(%arg0: i32) -> (i32, i32) {
    %c0_i32 = arith.constant 0 : i32
    %c0_i32_0 = arith.constant 0 : i32
    %c0_i32_1 = arith.constant 0 : i32
    return %c0_i32, %c0_i32_0 : i32, i32
  }
  func.func @transform_6(%arg0: i32) -> (i32, i32) {
    %c0_i32 = arith.constant 0 : i32
    %c0_i32_0 = arith.constant 0 : i32
    %c0_i32_1 = arith.constant 0 : i32
    return %c0_i32, %c0_i32_0 : i32, i32
  }
  func.func @transform_7(%arg0: i32) -> (i32, i32) {
    %c0_i32 = arith.constant 0 : i32
    %c0_i32_0 = arith.constant 0 : i32
    return %arg0, %c0_i32 : i32, i32
  }
  func.func @transform_8(%arg0: i32) -> (i32, i32) {
    %c2_i32 = arith.constant 2 : i32
    %0 = arith.subi %c2_i32, %arg0 : i32
    %c0_i32 = arith.constant 0 : i32
    %c0_i32_0 = arith.constant 0 : i32
    return %0, %c0_i32 : i32, i32
  }
  func.func @transform_9(%arg0: i32) -> (i32, i32, i32) {
    %c0_i32 = arith.constant 0 : i32
    %c0_i32_0 = arith.constant 0 : i32
    %c0_i32_1 = arith.constant 0 : i32
    %c0_i32_2 = arith.constant 0 : i32
    return %c0_i32, %c0_i32_0, %c0_i32_1 : i32, i32, i32
  }
}

module attributes {stable_mosaic.version = 11 : i64} {
  func.func @_bigru_kernel(%arg0: i32, %arg1: memref<32x384xbf16, #tpu.memory_space<vmem>>, %arg2: memref<32x384xbf16, #tpu.memory_space<vmem>>, %arg3: memref<8x1xi32, #tpu.memory_space<vmem>>, %arg4: memref<128x384xbf16, #tpu.memory_space<vmem>>, %arg5: memref<1x128xf32, #tpu.memory_space<vmem>>, %arg6: memref<128x384xbf16, #tpu.memory_space<vmem>>, %arg7: memref<1x128xf32, #tpu.memory_space<vmem>>, %arg8: memref<32x128xf32, #tpu.memory_space<vmem>>, %arg9: memref<32x128xf32, #tpu.memory_space<vmem>>, %arg10: memref<2x8x128xf32, #tpu.memory_space<vmem>>, %arg11: memref<8x128xf32, #tpu.memory_space<vmem>>, %arg12: memref<8x128xf32, #tpu.memory_space<vmem>>) attributes {dimension_semantics = [#tpu.dimension_semantics<arbitrary>], iteration_bounds = array<i64: 3>, scalar_prefetch = 0 : i64, scratch_operands = 2 : i64, tpu.core_type = #tpu.core_type<tc>, window_params = [{transform_indices = @transform_0, window_bounds = array<i64: 32, 384>}, {transform_indices = @transform_1, window_bounds = array<i64: 32, 384>}, {pipeline_mode = #tpu.pipeline_mode<synchronous>, transform_indices = @transform_2, window_bounds = array<i64: 8, 1>}, {pipeline_mode = #tpu.pipeline_mode<synchronous>, transform_indices = @transform_3, window_bounds = array<i64: 128, 384>}, {pipeline_mode = #tpu.pipeline_mode<synchronous>, transform_indices = @transform_4, window_bounds = array<i64: 1, 128>}, {pipeline_mode = #tpu.pipeline_mode<synchronous>, transform_indices = @transform_5, window_bounds = array<i64: 128, 384>}, {pipeline_mode = #tpu.pipeline_mode<synchronous>, transform_indices = @transform_6, window_bounds = array<i64: 1, 128>}, {transform_indices = @transform_7, window_bounds = array<i64: 32, 128>}, {transform_indices = @transform_8, window_bounds = array<i64: 32, 128>}, {pipeline_mode = #tpu.pipeline_mode<synchronous>, transform_indices = @transform_9, window_bounds = array<i64: 2, 8, 128>}]} {
    %c0_i32 = arith.constant 0 : i32
    %0 = arith.cmpi eq, %arg0, %c0_i32 : i32
    %1 = arith.extui %0 : i1 to i32
    %c0_i32_0 = arith.constant 0 : i32
    %2 = arith.cmpi ne, %1, %c0_i32_0 : i32
    scf.if %2 {
      %cst_90 = arith.constant 0.000000e+00 : f32
      %398 = vector.broadcast %cst_90 : f32 to vector<8x128xf32>
      %c0_91 = arith.constant 0 : index
      %c0_92 = arith.constant 0 : index
      %399 = vector.load %arg11[%c0_91, %c0_92] : memref<8x128xf32, #tpu.memory_space<vmem>>, vector<8x128xf32>
      tpu.vector_store %arg11[%c0_91, %c0_92], %398 {strides = array<i32>} : memref<8x128xf32, #tpu.memory_space<vmem>>, vector<8x128xf32>,
      %cst_93 = arith.constant 0.000000e+00 : f32
      %400 = vector.broadcast %cst_93 : f32 to vector<8x128xf32>
      %c0_94 = arith.constant 0 : index
      %c0_95 = arith.constant 0 : index
      %401 = vector.load %arg12[%c0_94, %c0_95] : memref<8x128xf32, #tpu.memory_space<vmem>>, vector<8x128xf32>
      tpu.vector_store %arg12[%c0_94, %c0_95], %400 {strides = array<i32>} : memref<8x128xf32, #tpu.memory_space<vmem>>, vector<8x128xf32>,
    } else {
    }
    %c0 = arith.constant 0 : index
    %c0_1 = arith.constant 0 : index
    %3 = vector.load %arg3[%c0, %c0_1] : memref<8x1xi32, #tpu.memory_space<vmem>>, vector<8x1xi32>
    %c0_2 = arith.constant 0 : index
    %c0_3 = arith.constant 0 : index
    %4 = vector.load %arg4[%c0_2, %c0_3] : memref<128x384xbf16, #tpu.memory_space<vmem>>, vector<128x384xbf16>
    %c0_4 = arith.constant 0 : index
    %c0_5 = arith.constant 0 : index
    %5 = vector.load %arg6[%c0_4, %c0_5] : memref<128x384xbf16, #tpu.memory_space<vmem>>, vector<128x384xbf16>
    %c0_6 = arith.constant 0 : index
    %c0_7 = arith.constant 0 : index
    %6 = vector.load %arg5[%c0_6, %c0_7] : memref<1x128xf32, #tpu.memory_space<vmem>>, vector<1x128xf32>
    %c0_8 = arith.constant 0 : index
    %c0_9 = arith.constant 0 : index
    %7 = vector.load %arg7[%c0_8, %c0_9] : memref<1x128xf32, #tpu.memory_space<vmem>>, vector<1x128xf32>
    %c4_i32 = arith.constant 4 : i32
    %8 = arith.muli %arg0, %c4_i32 : i32
    %c2_i32 = arith.constant 2 : i32
    %9 = arith.subi %c2_i32, %arg0 : i32
    %c4_i32_10 = arith.constant 4 : i32
    %10 = arith.muli %9, %c4_i32_10 : i32
    %c0_11 = arith.constant 0 : index
    %c0_12 = arith.constant 0 : index
    %11 = vector.load %arg11[%c0_11, %c0_12] : memref<8x128xf32, #tpu.memory_space<vmem>>, vector<8x128xf32>
    %c0_13 = arith.constant 0 : index
    %c0_14 = arith.constant 0 : index
    %12 = vector.load %arg12[%c0_13, %c0_14] : memref<8x128xf32, #tpu.memory_space<vmem>>, vector<8x128xf32>
    %c0_i32_15 = arith.constant 0 : i32
    %c3_i32 = arith.constant 3 : i32
    %13 = arith.subi %c3_i32, %c0_i32_15 : i32
    %c8_i32 = arith.constant 8 : i32
    %14 = arith.muli %c0_i32_15, %c8_i32 : i32
    %15 = tpu.assume_multiple %14, 8 : i32
    %c8_i32_16 = arith.constant 8 : i32
    %16 = arith.muli %13, %c8_i32_16 : i32
    %17 = tpu.assume_multiple %16, 8 : i32
    %18 = arith.index_cast %15 : i32 to index
    %c0_17 = arith.constant 0 : index
    %19 = vector.load %arg1[%18, %c0_17] : memref<32x384xbf16, #tpu.memory_space<vmem>>, vector<8x384xbf16>
    %20 = arith.extf %19 : vector<8x384xbf16> to vector<8x384xf32>
    %21 = arith.index_cast %17 : i32 to index
    %c0_18 = arith.constant 0 : index
    %22 = vector.load %arg2[%21, %c0_18] : memref<32x384xbf16, #tpu.memory_space<vmem>>, vector<8x384xbf16>
    %23 = arith.extf %22 : vector<8x384xbf16> to vector<8x384xf32>
    %24 = arith.truncf %11 : vector<8x128xf32> to vector<8x128xbf16>
    %cst = arith.constant dense<0.000000e+00> : vector<8x384xf32>
    %25 = tpu.matmul %24, %4, %cst {dimension_numbers = #tpu.dot_dimension_numbers<[1], [0], [0], [1], [0, 0, 1, 1], [], []>} : vector<8x128xbf16>, vector<128x384xbf16>, vector<8x384xf32> -> vector<8x384xf32>
    %26 = vector.extract_strided_slice %20 {offsets = [0, 0], sizes = [8, 128], strides = [1, 1]} : vector<8x384xf32> to vector<8x128xf32>
    %27 = vector.extract_strided_slice %25 {offsets = [0, 0], sizes = [8, 128], strides = [1, 1]} : vector<8x384xf32> to vector<8x128xf32>
    %28 = arith.addf %26, %27 : vector<8x128xf32>
    %29 = arith.negf %28 : vector<8x128xf32>
    %30 = math.exp %29 : vector<8x128xf32>
    %cst_19 = arith.constant 1.000000e+00 : f32
    %31 = vector.broadcast %cst_19 : f32 to vector<8x128xf32>
    %32 = arith.addf %31, %30 : vector<8x128xf32>
    %33 = arith.divf %31, %32 : vector<8x128xf32>
    %34 = vector.extract_strided_slice %20 {offsets = [0, 128], sizes = [8, 128], strides = [1, 1]} : vector<8x384xf32> to vector<8x128xf32>
    %35 = vector.extract_strided_slice %25 {offsets = [0, 128], sizes = [8, 128], strides = [1, 1]} : vector<8x384xf32> to vector<8x128xf32>
    %36 = arith.addf %34, %35 : vector<8x128xf32>
    %37 = arith.negf %36 : vector<8x128xf32>
    %38 = math.exp %37 : vector<8x128xf32>
    %cst_20 = arith.constant 1.000000e+00 : f32
    %39 = vector.broadcast %cst_20 : f32 to vector<8x128xf32>
    %40 = arith.addf %39, %38 : vector<8x128xf32>
    %41 = arith.divf %39, %40 : vector<8x128xf32>
    %42 = vector.extract_strided_slice %20 {offsets = [0, 256], sizes = [8, 128], strides = [1, 1]} : vector<8x384xf32> to vector<8x128xf32>
    %43 = vector.extract_strided_slice %25 {offsets = [0, 256], sizes = [8, 128], strides = [1, 1]} : vector<8x384xf32> to vector<8x128xf32>
    %44 = vector.broadcast %6 : vector<1x128xf32> to vector<8x128xf32>
    %45 = arith.addf %43, %44 : vector<8x128xf32>
    %46 = arith.mulf %33, %45 : vector<8x128xf32>
    %47 = arith.addf %42, %46 : vector<8x128xf32>
    %48 = math.tanh %47 : vector<8x128xf32>
    %cst_21 = arith.constant 1.000000e+00 : f32
    %49 = vector.broadcast %cst_21 : f32 to vector<8x128xf32>
    %50 = arith.subf %49, %41 : vector<8x128xf32>
    %51 = arith.mulf %50, %48 : vector<8x128xf32>
    %52 = arith.mulf %41, %11 : vector<8x128xf32>
    %53 = arith.addf %51, %52 : vector<8x128xf32>
    %54 = arith.truncf %12 : vector<8x128xf32> to vector<8x128xbf16>
    %cst_22 = arith.constant dense<0.000000e+00> : vector<8x384xf32>
    %55 = tpu.matmul %54, %5, %cst_22 {dimension_numbers = #tpu.dot_dimension_numbers<[1], [0], [0], [1], [0, 0, 1, 1], [], []>} : vector<8x128xbf16>, vector<128x384xbf16>, vector<8x384xf32> -> vector<8x384xf32>
    %56 = vector.extract_strided_slice %23 {offsets = [0, 0], sizes = [8, 128], strides = [1, 1]} : vector<8x384xf32> to vector<8x128xf32>
    %57 = vector.extract_strided_slice %55 {offsets = [0, 0], sizes = [8, 128], strides = [1, 1]} : vector<8x384xf32> to vector<8x128xf32>
    %58 = arith.addf %56, %57 : vector<8x128xf32>
    %59 = arith.negf %58 : vector<8x128xf32>
    %60 = math.exp %59 : vector<8x128xf32>
    %cst_23 = arith.constant 1.000000e+00 : f32
    %61 = vector.broadcast %cst_23 : f32 to vector<8x128xf32>
    %62 = arith.addf %61, %60 : vector<8x128xf32>
    %63 = arith.divf %61, %62 : vector<8x128xf32>
    %64 = vector.extract_strided_slice %23 {offsets = [0, 128], sizes = [8, 128], strides = [1, 1]} : vector<8x384xf32> to vector<8x128xf32>
    %65 = vector.extract_strided_slice %55 {offsets = [0, 128], sizes = [8, 128], strides = [1, 1]} : vector<8x384xf32> to vector<8x128xf32>
    %66 = arith.addf %64, %65 : vector<8x128xf32>
    %67 = arith.negf %66 : vector<8x128xf32>
    %68 = math.exp %67 : vector<8x128xf32>
    %cst_24 = arith.constant 1.000000e+00 : f32
    %69 = vector.broadcast %cst_24 : f32 to vector<8x128xf32>
    %70 = arith.addf %69, %68 : vector<8x128xf32>
    %71 = arith.divf %69, %70 : vector<8x128xf32>
    %72 = vector.extract_strided_slice %23 {offsets = [0, 256], sizes = [8, 128], strides = [1, 1]} : vector<8x384xf32> to vector<8x128xf32>
    %73 = vector.extract_strided_slice %55 {offsets = [0, 256], sizes = [8, 128], strides = [1, 1]} : vector<8x384xf32> to vector<8x128xf32>
    %74 = vector.broadcast %7 : vector<1x128xf32> to vector<8x128xf32>
    %75 = arith.addf %73, %74 : vector<8x128xf32>
    %76 = arith.mulf %63, %75 : vector<8x128xf32>
    %77 = arith.addf %72, %76 : vector<8x128xf32>
    %78 = math.tanh %77 : vector<8x128xf32>
    %cst_25 = arith.constant 1.000000e+00 : f32
    %79 = vector.broadcast %cst_25 : f32 to vector<8x128xf32>
    %80 = arith.subf %79, %71 : vector<8x128xf32>
    %81 = arith.mulf %80, %78 : vector<8x128xf32>
    %82 = arith.mulf %71, %12 : vector<8x128xf32>
    %83 = arith.addf %81, %82 : vector<8x128xf32>
    %84 = arith.addi %8, %c0_i32_15 : i32
    %85 = vector.broadcast %84 : i32 to vector<8x1xi32>
    %86 = arith.cmpi sgt, %3, %85 : vector<8x1xi32>
    %87 = arith.addi %10, %13 : i32
    %88 = vector.broadcast %87 : i32 to vector<8x1xi32>
    %89 = arith.cmpi sgt, %3, %88 : vector<8x1xi32>
    %cst_26 = arith.constant 0.000000e+00 : f32
    %90 = vector.shape_cast %86 : vector<8x1xi1> to vector<8x1xi1>
    %91 = vector.broadcast %90 : vector<8x1xi1> to vector<8x128xi1>
    %92 = vector.broadcast %cst_26 : f32 to vector<8x128xf32>
    %93 = arith.select %91, %53, %92 : vector<8x128xi1>, vector<8x128xf32>
    %94 = arith.index_cast %15 : i32 to index
    %c0_27 = arith.constant 0 : index
    %95 = vector.load %arg8[%94, %c0_27] : memref<32x128xf32, #tpu.memory_space<vmem>>, vector<8x128xf32>
    tpu.vector_store %arg8[%94, %c0_27], %93 {strides = array<i32>} : memref<32x128xf32, #tpu.memory_space<vmem>>, vector<8x128xf32>,
    %cst_28 = arith.constant 0.000000e+00 : f32
    %96 = vector.shape_cast %89 : vector<8x1xi1> to vector<8x1xi1>
    %97 = vector.broadcast %96 : vector<8x1xi1> to vector<8x128xi1>
    %98 = vector.broadcast %cst_28 : f32 to vector<8x128xf32>
    %99 = arith.select %97, %83, %98 : vector<8x128xi1>, vector<8x128xf32>
    %100 = arith.index_cast %17 : i32 to index
    %c0_29 = arith.constant 0 : index
    %101 = vector.load %arg9[%100, %c0_29] : memref<32x128xf32, #tpu.memory_space<vmem>>, vector<8x128xf32>
    tpu.vector_store %arg9[%100, %c0_29], %99 {strides = array<i32>} : memref<32x128xf32, #tpu.memory_space<vmem>>, vector<8x128xf32>,
    %102 = vector.shape_cast %86 : vector<8x1xi1> to vector<8x1xi1>
    %103 = vector.broadcast %102 : vector<8x1xi1> to vector<8x128xi1>
    %104 = arith.select %103, %53, %11 : vector<8x128xi1>, vector<8x128xf32>
    %105 = vector.shape_cast %89 : vector<8x1xi1> to vector<8x1xi1>
    %106 = vector.broadcast %105 : vector<8x1xi1> to vector<8x128xi1>
    %107 = arith.select %106, %83, %12 : vector<8x128xi1>, vector<8x128xf32>
    %c1_i32 = arith.constant 1 : i32
    %c3_i32_30 = arith.constant 3 : i32
    %108 = arith.subi %c3_i32_30, %c1_i32 : i32
    %c8_i32_31 = arith.constant 8 : i32
    %109 = arith.muli %c1_i32, %c8_i32_31 : i32
    %110 = tpu.assume_multiple %109, 8 : i32
    %c8_i32_32 = arith.constant 8 : i32
    %111 = arith.muli %108, %c8_i32_32 : i32
    %112 = tpu.assume_multiple %111, 8 : i32
    %113 = arith.index_cast %110 : i32 to index
    %c0_33 = arith.constant 0 : index
    %114 = vector.load %arg1[%113, %c0_33] : memref<32x384xbf16, #tpu.memory_space<vmem>>, vector<8x384xbf16>
    %115 = arith.extf %114 : vector<8x384xbf16> to vector<8x384xf32>
    %116 = arith.index_cast %112 : i32 to index
    %c0_34 = arith.constant 0 : index
    %117 = vector.load %arg2[%116, %c0_34] : memref<32x384xbf16, #tpu.memory_space<vmem>>, vector<8x384xbf16>
    %118 = arith.extf %117 : vector<8x384xbf16> to vector<8x384xf32>
    %119 = arith.truncf %104 : vector<8x128xf32> to vector<8x128xbf16>
    %cst_35 = arith.constant dense<0.000000e+00> : vector<8x384xf32>
    %120 = tpu.matmul %119, %4, %cst_35 {dimension_numbers = #tpu.dot_dimension_numbers<[1], [0], [0], [1], [0, 0, 1, 1], [], []>} : vector<8x128xbf16>, vector<128x384xbf16>, vector<8x384xf32> -> vector<8x384xf32>
    %121 = vector.extract_strided_slice %115 {offsets = [0, 0], sizes = [8, 128], strides = [1, 1]} : vector<8x384xf32> to vector<8x128xf32>
    %122 = vector.extract_strided_slice %120 {offsets = [0, 0], sizes = [8, 128], strides = [1, 1]} : vector<8x384xf32> to vector<8x128xf32>
    %123 = arith.addf %121, %122 : vector<8x128xf32>
    %124 = arith.negf %123 : vector<8x128xf32>
    %125 = math.exp %124 : vector<8x128xf32>
    %cst_36 = arith.constant 1.000000e+00 : f32
    %126 = vector.broadcast %cst_36 : f32 to vector<8x128xf32>
    %127 = arith.addf %126, %125 : vector<8x128xf32>
    %128 = arith.divf %126, %127 : vector<8x128xf32>
    %129 = vector.extract_strided_slice %115 {offsets = [0, 128], sizes = [8, 128], strides = [1, 1]} : vector<8x384xf32> to vector<8x128xf32>
    %130 = vector.extract_strided_slice %120 {offsets = [0, 128], sizes = [8, 128], strides = [1, 1]} : vector<8x384xf32> to vector<8x128xf32>
    %131 = arith.addf %129, %130 : vector<8x128xf32>
    %132 = arith.negf %131 : vector<8x128xf32>
    %133 = math.exp %132 : vector<8x128xf32>
    %cst_37 = arith.constant 1.000000e+00 : f32
    %134 = vector.broadcast %cst_37 : f32 to vector<8x128xf32>
    %135 = arith.addf %134, %133 : vector<8x128xf32>
    %136 = arith.divf %134, %135 : vector<8x128xf32>
    %137 = vector.extract_strided_slice %115 {offsets = [0, 256], sizes = [8, 128], strides = [1, 1]} : vector<8x384xf32> to vector<8x128xf32>
    %138 = vector.extract_strided_slice %120 {offsets = [0, 256], sizes = [8, 128], strides = [1, 1]} : vector<8x384xf32> to vector<8x128xf32>
    %139 = vector.broadcast %6 : vector<1x128xf32> to vector<8x128xf32>
    %140 = arith.addf %138, %139 : vector<8x128xf32>
    %141 = arith.mulf %128, %140 : vector<8x128xf32>
    %142 = arith.addf %137, %141 : vector<8x128xf32>
    %143 = math.tanh %142 : vector<8x128xf32>
    %cst_38 = arith.constant 1.000000e+00 : f32
    %144 = vector.broadcast %cst_38 : f32 to vector<8x128xf32>
    %145 = arith.subf %144, %136 : vector<8x128xf32>
    %146 = arith.mulf %145, %143 : vector<8x128xf32>
    %147 = arith.mulf %136, %104 : vector<8x128xf32>
    %148 = arith.addf %146, %147 : vector<8x128xf32>
    %149 = arith.truncf %107 : vector<8x128xf32> to vector<8x128xbf16>
    %cst_39 = arith.constant dense<0.000000e+00> : vector<8x384xf32>
    %150 = tpu.matmul %149, %5, %cst_39 {dimension_numbers = #tpu.dot_dimension_numbers<[1], [0], [0], [1], [0, 0, 1, 1], [], []>} : vector<8x128xbf16>, vector<128x384xbf16>, vector<8x384xf32> -> vector<8x384xf32>
    %151 = vector.extract_strided_slice %118 {offsets = [0, 0], sizes = [8, 128], strides = [1, 1]} : vector<8x384xf32> to vector<8x128xf32>
    %152 = vector.extract_strided_slice %150 {offsets = [0, 0], sizes = [8, 128], strides = [1, 1]} : vector<8x384xf32> to vector<8x128xf32>
    %153 = arith.addf %151, %152 : vector<8x128xf32>
    %154 = arith.negf %153 : vector<8x128xf32>
    %155 = math.exp %154 : vector<8x128xf32>
    %cst_40 = arith.constant 1.000000e+00 : f32
    %156 = vector.broadcast %cst_40 : f32 to vector<8x128xf32>
    %157 = arith.addf %156, %155 : vector<8x128xf32>
    %158 = arith.divf %156, %157 : vector<8x128xf32>
    %159 = vector.extract_strided_slice %118 {offsets = [0, 128], sizes = [8, 128], strides = [1, 1]} : vector<8x384xf32> to vector<8x128xf32>
    %160 = vector.extract_strided_slice %150 {offsets = [0, 128], sizes = [8, 128], strides = [1, 1]} : vector<8x384xf32> to vector<8x128xf32>
    %161 = arith.addf %159, %160 : vector<8x128xf32>
    %162 = arith.negf %161 : vector<8x128xf32>
    %163 = math.exp %162 : vector<8x128xf32>
    %cst_41 = arith.constant 1.000000e+00 : f32
    %164 = vector.broadcast %cst_41 : f32 to vector<8x128xf32>
    %165 = arith.addf %164, %163 : vector<8x128xf32>
    %166 = arith.divf %164, %165 : vector<8x128xf32>
    %167 = vector.extract_strided_slice %118 {offsets = [0, 256], sizes = [8, 128], strides = [1, 1]} : vector<8x384xf32> to vector<8x128xf32>
    %168 = vector.extract_strided_slice %150 {offsets = [0, 256], sizes = [8, 128], strides = [1, 1]} : vector<8x384xf32> to vector<8x128xf32>
    %169 = vector.broadcast %7 : vector<1x128xf32> to vector<8x128xf32>
    %170 = arith.addf %168, %169 : vector<8x128xf32>
    %171 = arith.mulf %158, %170 : vector<8x128xf32>
    %172 = arith.addf %167, %171 : vector<8x128xf32>
    %173 = math.tanh %172 : vector<8x128xf32>
    %cst_42 = arith.constant 1.000000e+00 : f32
    %174 = vector.broadcast %cst_42 : f32 to vector<8x128xf32>
    %175 = arith.subf %174, %166 : vector<8x128xf32>
    %176 = arith.mulf %175, %173 : vector<8x128xf32>
    %177 = arith.mulf %166, %107 : vector<8x128xf32>
    %178 = arith.addf %176, %177 : vector<8x128xf32>
    %179 = arith.addi %8, %c1_i32 : i32
    %180 = vector.broadcast %179 : i32 to vector<8x1xi32>
    %181 = arith.cmpi sgt, %3, %180 : vector<8x1xi32>
    %182 = arith.addi %10, %108 : i32
    %183 = vector.broadcast %182 : i32 to vector<8x1xi32>
    %184 = arith.cmpi sgt, %3, %183 : vector<8x1xi32>
    %cst_43 = arith.constant 0.000000e+00 : f32
    %185 = vector.shape_cast %181 : vector<8x1xi1> to vector<8x1xi1>
    %186 = vector.broadcast %185 : vector<8x1xi1> to vector<8x128xi1>
    %187 = vector.broadcast %cst_43 : f32 to vector<8x128xf32>
    %188 = arith.select %186, %148, %187 : vector<8x128xi1>, vector<8x128xf32>
    %189 = arith.index_cast %110 : i32 to index
    %c0_44 = arith.constant 0 : index
    %190 = vector.load %arg8[%189, %c0_44] : memref<32x128xf32, #tpu.memory_space<vmem>>, vector<8x128xf32>
    tpu.vector_store %arg8[%189, %c0_44], %188 {strides = array<i32>} : memref<32x128xf32, #tpu.memory_space<vmem>>, vector<8x128xf32>,
    %cst_45 = arith.constant 0.000000e+00 : f32
    %191 = vector.shape_cast %184 : vector<8x1xi1> to vector<8x1xi1>
    %192 = vector.broadcast %191 : vector<8x1xi1> to vector<8x128xi1>
    %193 = vector.broadcast %cst_45 : f32 to vector<8x128xf32>
    %194 = arith.select %192, %178, %193 : vector<8x128xi1>, vector<8x128xf32>
    %195 = arith.index_cast %112 : i32 to index
    %c0_46 = arith.constant 0 : index
    %196 = vector.load %arg9[%195, %c0_46] : memref<32x128xf32, #tpu.memory_space<vmem>>, vector<8x128xf32>
    tpu.vector_store %arg9[%195, %c0_46], %194 {strides = array<i32>} : memref<32x128xf32, #tpu.memory_space<vmem>>, vector<8x128xf32>,
    %197 = vector.shape_cast %181 : vector<8x1xi1> to vector<8x1xi1>
    %198 = vector.broadcast %197 : vector<8x1xi1> to vector<8x128xi1>
    %199 = arith.select %198, %148, %104 : vector<8x128xi1>, vector<8x128xf32>
    %200 = vector.shape_cast %184 : vector<8x1xi1> to vector<8x1xi1>
    %201 = vector.broadcast %200 : vector<8x1xi1> to vector<8x128xi1>
    %202 = arith.select %201, %178, %107 : vector<8x128xi1>, vector<8x128xf32>
    %c2_i32_47 = arith.constant 2 : i32
    %c3_i32_48 = arith.constant 3 : i32
    %203 = arith.subi %c3_i32_48, %c2_i32_47 : i32
    %c8_i32_49 = arith.constant 8 : i32
    %204 = arith.muli %c2_i32_47, %c8_i32_49 : i32
    %205 = tpu.assume_multiple %204, 8 : i32
    %c8_i32_50 = arith.constant 8 : i32
    %206 = arith.muli %203, %c8_i32_50 : i32
    %207 = tpu.assume_multiple %206, 8 : i32
    %208 = arith.index_cast %205 : i32 to index
    %c0_51 = arith.constant 0 : index
    %209 = vector.load %arg1[%208, %c0_51] : memref<32x384xbf16, #tpu.memory_space<vmem>>, vector<8x384xbf16>
    %210 = arith.extf %209 : vector<8x384xbf16> to vector<8x384xf32>
    %211 = arith.index_cast %207 : i32 to index
    %c0_52 = arith.constant 0 : index
    %212 = vector.load %arg2[%211, %c0_52] : memref<32x384xbf16, #tpu.memory_space<vmem>>, vector<8x384xbf16>
    %213 = arith.extf %212 : vector<8x384xbf16> to vector<8x384xf32>
    %214 = arith.truncf %199 : vector<8x128xf32> to vector<8x128xbf16>
    %cst_53 = arith.constant dense<0.000000e+00> : vector<8x384xf32>
    %215 = tpu.matmul %214, %4, %cst_53 {dimension_numbers = #tpu.dot_dimension_numbers<[1], [0], [0], [1], [0, 0, 1, 1], [], []>} : vector<8x128xbf16>, vector<128x384xbf16>, vector<8x384xf32> -> vector<8x384xf32>
    %216 = vector.extract_strided_slice %210 {offsets = [0, 0], sizes = [8, 128], strides = [1, 1]} : vector<8x384xf32> to vector<8x128xf32>
    %217 = vector.extract_strided_slice %215 {offsets = [0, 0], sizes = [8, 128], strides = [1, 1]} : vector<8x384xf32> to vector<8x128xf32>
    %218 = arith.addf %216, %217 : vector<8x128xf32>
    %219 = arith.negf %218 : vector<8x128xf32>
    %220 = math.exp %219 : vector<8x128xf32>
    %cst_54 = arith.constant 1.000000e+00 : f32
    %221 = vector.broadcast %cst_54 : f32 to vector<8x128xf32>
    %222 = arith.addf %221, %220 : vector<8x128xf32>
    %223 = arith.divf %221, %222 : vector<8x128xf32>
    %224 = vector.extract_strided_slice %210 {offsets = [0, 128], sizes = [8, 128], strides = [1, 1]} : vector<8x384xf32> to vector<8x128xf32>
    %225 = vector.extract_strided_slice %215 {offsets = [0, 128], sizes = [8, 128], strides = [1, 1]} : vector<8x384xf32> to vector<8x128xf32>
    %226 = arith.addf %224, %225 : vector<8x128xf32>
    %227 = arith.negf %226 : vector<8x128xf32>
    %228 = math.exp %227 : vector<8x128xf32>
    %cst_55 = arith.constant 1.000000e+00 : f32
    %229 = vector.broadcast %cst_55 : f32 to vector<8x128xf32>
    %230 = arith.addf %229, %228 : vector<8x128xf32>
    %231 = arith.divf %229, %230 : vector<8x128xf32>
    %232 = vector.extract_strided_slice %210 {offsets = [0, 256], sizes = [8, 128], strides = [1, 1]} : vector<8x384xf32> to vector<8x128xf32>
    %233 = vector.extract_strided_slice %215 {offsets = [0, 256], sizes = [8, 128], strides = [1, 1]} : vector<8x384xf32> to vector<8x128xf32>
    %234 = vector.broadcast %6 : vector<1x128xf32> to vector<8x128xf32>
    %235 = arith.addf %233, %234 : vector<8x128xf32>
    %236 = arith.mulf %223, %235 : vector<8x128xf32>
    %237 = arith.addf %232, %236 : vector<8x128xf32>
    %238 = math.tanh %237 : vector<8x128xf32>
    %cst_56 = arith.constant 1.000000e+00 : f32
    %239 = vector.broadcast %cst_56 : f32 to vector<8x128xf32>
    %240 = arith.subf %239, %231 : vector<8x128xf32>
    %241 = arith.mulf %240, %238 : vector<8x128xf32>
    %242 = arith.mulf %231, %199 : vector<8x128xf32>
    %243 = arith.addf %241, %242 : vector<8x128xf32>
    %244 = arith.truncf %202 : vector<8x128xf32> to vector<8x128xbf16>
    %cst_57 = arith.constant dense<0.000000e+00> : vector<8x384xf32>
    %245 = tpu.matmul %244, %5, %cst_57 {dimension_numbers = #tpu.dot_dimension_numbers<[1], [0], [0], [1], [0, 0, 1, 1], [], []>} : vector<8x128xbf16>, vector<128x384xbf16>, vector<8x384xf32> -> vector<8x384xf32>
    %246 = vector.extract_strided_slice %213 {offsets = [0, 0], sizes = [8, 128], strides = [1, 1]} : vector<8x384xf32> to vector<8x128xf32>
    %247 = vector.extract_strided_slice %245 {offsets = [0, 0], sizes = [8, 128], strides = [1, 1]} : vector<8x384xf32> to vector<8x128xf32>
    %248 = arith.addf %246, %247 : vector<8x128xf32>
    %249 = arith.negf %248 : vector<8x128xf32>
    %250 = math.exp %249 : vector<8x128xf32>
    %cst_58 = arith.constant 1.000000e+00 : f32
    %251 = vector.broadcast %cst_58 : f32 to vector<8x128xf32>
    %252 = arith.addf %251, %250 : vector<8x128xf32>
    %253 = arith.divf %251, %252 : vector<8x128xf32>
    %254 = vector.extract_strided_slice %213 {offsets = [0, 128], sizes = [8, 128], strides = [1, 1]} : vector<8x384xf32> to vector<8x128xf32>
    %255 = vector.extract_strided_slice %245 {offsets = [0, 128], sizes = [8, 128], strides = [1, 1]} : vector<8x384xf32> to vector<8x128xf32>
    %256 = arith.addf %254, %255 : vector<8x128xf32>
    %257 = arith.negf %256 : vector<8x128xf32>
    %258 = math.exp %257 : vector<8x128xf32>
    %cst_59 = arith.constant 1.000000e+00 : f32
    %259 = vector.broadcast %cst_59 : f32 to vector<8x128xf32>
    %260 = arith.addf %259, %258 : vector<8x128xf32>
    %261 = arith.divf %259, %260 : vector<8x128xf32>
    %262 = vector.extract_strided_slice %213 {offsets = [0, 256], sizes = [8, 128], strides = [1, 1]} : vector<8x384xf32> to vector<8x128xf32>
    %263 = vector.extract_strided_slice %245 {offsets = [0, 256], sizes = [8, 128], strides = [1, 1]} : vector<8x384xf32> to vector<8x128xf32>
    %264 = vector.broadcast %7 : vector<1x128xf32> to vector<8x128xf32>
    %265 = arith.addf %263, %264 : vector<8x128xf32>
    %266 = arith.mulf %253, %265 : vector<8x128xf32>
    %267 = arith.addf %262, %266 : vector<8x128xf32>
    %268 = math.tanh %267 : vector<8x128xf32>
    %cst_60 = arith.constant 1.000000e+00 : f32
    %269 = vector.broadcast %cst_60 : f32 to vector<8x128xf32>
    %270 = arith.subf %269, %261 : vector<8x128xf32>
    %271 = arith.mulf %270, %268 : vector<8x128xf32>
    %272 = arith.mulf %261, %202 : vector<8x128xf32>
    %273 = arith.addf %271, %272 : vector<8x128xf32>
    %274 = arith.addi %8, %c2_i32_47 : i32
    %275 = vector.broadcast %274 : i32 to vector<8x1xi32>
    %276 = arith.cmpi sgt, %3, %275 : vector<8x1xi32>
    %277 = arith.addi %10, %203 : i32
    %278 = vector.broadcast %277 : i32 to vector<8x1xi32>
    %279 = arith.cmpi sgt, %3, %278 : vector<8x1xi32>
    %cst_61 = arith.constant 0.000000e+00 : f32
    %280 = vector.shape_cast %276 : vector<8x1xi1> to vector<8x1xi1>
    %281 = vector.broadcast %280 : vector<8x1xi1> to vector<8x128xi1>
    %282 = vector.broadcast %cst_61 : f32 to vector<8x128xf32>
    %283 = arith.select %281, %243, %282 : vector<8x128xi1>, vector<8x128xf32>
    %284 = arith.index_cast %205 : i32 to index
    %c0_62 = arith.constant 0 : index
    %285 = vector.load %arg8[%284, %c0_62] : memref<32x128xf32, #tpu.memory_space<vmem>>, vector<8x128xf32>
    tpu.vector_store %arg8[%284, %c0_62], %283 {strides = array<i32>} : memref<32x128xf32, #tpu.memory_space<vmem>>, vector<8x128xf32>,
    %cst_63 = arith.constant 0.000000e+00 : f32
    %286 = vector.shape_cast %279 : vector<8x1xi1> to vector<8x1xi1>
    %287 = vector.broadcast %286 : vector<8x1xi1> to vector<8x128xi1>
    %288 = vector.broadcast %cst_63 : f32 to vector<8x128xf32>
    %289 = arith.select %287, %273, %288 : vector<8x128xi1>, vector<8x128xf32>
    %290 = arith.index_cast %207 : i32 to index
    %c0_64 = arith.constant 0 : index
    %291 = vector.load %arg9[%290, %c0_64] : memref<32x128xf32, #tpu.memory_space<vmem>>, vector<8x128xf32>
    tpu.vector_store %arg9[%290, %c0_64], %289 {strides = array<i32>} : memref<32x128xf32, #tpu.memory_space<vmem>>, vector<8x128xf32>,
    %292 = vector.shape_cast %276 : vector<8x1xi1> to vector<8x1xi1>
    %293 = vector.broadcast %292 : vector<8x1xi1> to vector<8x128xi1>
    %294 = arith.select %293, %243, %199 : vector<8x128xi1>, vector<8x128xf32>
    %295 = vector.shape_cast %279 : vector<8x1xi1> to vector<8x1xi1>
    %296 = vector.broadcast %295 : vector<8x1xi1> to vector<8x128xi1>
    %297 = arith.select %296, %273, %202 : vector<8x128xi1>, vector<8x128xf32>
    %c3_i32_65 = arith.constant 3 : i32
    %c3_i32_66 = arith.constant 3 : i32
    %298 = arith.subi %c3_i32_66, %c3_i32_65 : i32
    %c8_i32_67 = arith.constant 8 : i32
    %299 = arith.muli %c3_i32_65, %c8_i32_67 : i32
    %300 = tpu.assume_multiple %299, 8 : i32
    %c8_i32_68 = arith.constant 8 : i32
    %301 = arith.muli %298, %c8_i32_68 : i32
    %302 = tpu.assume_multiple %301, 8 : i32
    %303 = arith.index_cast %300 : i32 to index
    %c0_69 = arith.constant 0 : index
    %304 = vector.load %arg1[%303, %c0_69] : memref<32x384xbf16, #tpu.memory_space<vmem>>, vector<8x384xbf16>
    %305 = arith.extf %304 : vector<8x384xbf16> to vector<8x384xf32>
    %306 = arith.index_cast %302 : i32 to index
    %c0_70 = arith.constant 0 : index
    %307 = vector.load %arg2[%306, %c0_70] : memref<32x384xbf16, #tpu.memory_space<vmem>>, vector<8x384xbf16>
    %308 = arith.extf %307 : vector<8x384xbf16> to vector<8x384xf32>
    %309 = arith.truncf %294 : vector<8x128xf32> to vector<8x128xbf16>
    %cst_71 = arith.constant dense<0.000000e+00> : vector<8x384xf32>
    %310 = tpu.matmul %309, %4, %cst_71 {dimension_numbers = #tpu.dot_dimension_numbers<[1], [0], [0], [1], [0, 0, 1, 1], [], []>} : vector<8x128xbf16>, vector<128x384xbf16>, vector<8x384xf32> -> vector<8x384xf32>
    %311 = vector.extract_strided_slice %305 {offsets = [0, 0], sizes = [8, 128], strides = [1, 1]} : vector<8x384xf32> to vector<8x128xf32>
    %312 = vector.extract_strided_slice %310 {offsets = [0, 0], sizes = [8, 128], strides = [1, 1]} : vector<8x384xf32> to vector<8x128xf32>
    %313 = arith.addf %311, %312 : vector<8x128xf32>
    %314 = arith.negf %313 : vector<8x128xf32>
    %315 = math.exp %314 : vector<8x128xf32>
    %cst_72 = arith.constant 1.000000e+00 : f32
    %316 = vector.broadcast %cst_72 : f32 to vector<8x128xf32>
    %317 = arith.addf %316, %315 : vector<8x128xf32>
    %318 = arith.divf %316, %317 : vector<8x128xf32>
    %319 = vector.extract_strided_slice %305 {offsets = [0, 128], sizes = [8, 128], strides = [1, 1]} : vector<8x384xf32> to vector<8x128xf32>
    %320 = vector.extract_strided_slice %310 {offsets = [0, 128], sizes = [8, 128], strides = [1, 1]} : vector<8x384xf32> to vector<8x128xf32>
    %321 = arith.addf %319, %320 : vector<8x128xf32>
    %322 = arith.negf %321 : vector<8x128xf32>
    %323 = math.exp %322 : vector<8x128xf32>
    %cst_73 = arith.constant 1.000000e+00 : f32
    %324 = vector.broadcast %cst_73 : f32 to vector<8x128xf32>
    %325 = arith.addf %324, %323 : vector<8x128xf32>
    %326 = arith.divf %324, %325 : vector<8x128xf32>
    %327 = vector.extract_strided_slice %305 {offsets = [0, 256], sizes = [8, 128], strides = [1, 1]} : vector<8x384xf32> to vector<8x128xf32>
    %328 = vector.extract_strided_slice %310 {offsets = [0, 256], sizes = [8, 128], strides = [1, 1]} : vector<8x384xf32> to vector<8x128xf32>
    %329 = vector.broadcast %6 : vector<1x128xf32> to vector<8x128xf32>
    %330 = arith.addf %328, %329 : vector<8x128xf32>
    %331 = arith.mulf %318, %330 : vector<8x128xf32>
    %332 = arith.addf %327, %331 : vector<8x128xf32>
    %333 = math.tanh %332 : vector<8x128xf32>
    %cst_74 = arith.constant 1.000000e+00 : f32
    %334 = vector.broadcast %cst_74 : f32 to vector<8x128xf32>
    %335 = arith.subf %334, %326 : vector<8x128xf32>
    %336 = arith.mulf %335, %333 : vector<8x128xf32>
    %337 = arith.mulf %326, %294 : vector<8x128xf32>
    %338 = arith.addf %336, %337 : vector<8x128xf32>
    %339 = arith.truncf %297 : vector<8x128xf32> to vector<8x128xbf16>
    %cst_75 = arith.constant dense<0.000000e+00> : vector<8x384xf32>
    %340 = tpu.matmul %339, %5, %cst_75 {dimension_numbers = #tpu.dot_dimension_numbers<[1], [0], [0], [1], [0, 0, 1, 1], [], []>} : vector<8x128xbf16>, vector<128x384xbf16>, vector<8x384xf32> -> vector<8x384xf32>
    %341 = vector.extract_strided_slice %308 {offsets = [0, 0], sizes = [8, 128], strides = [1, 1]} : vector<8x384xf32> to vector<8x128xf32>
    %342 = vector.extract_strided_slice %340 {offsets = [0, 0], sizes = [8, 128], strides = [1, 1]} : vector<8x384xf32> to vector<8x128xf32>
    %343 = arith.addf %341, %342 : vector<8x128xf32>
    %344 = arith.negf %343 : vector<8x128xf32>
    %345 = math.exp %344 : vector<8x128xf32>
    %cst_76 = arith.constant 1.000000e+00 : f32
    %346 = vector.broadcast %cst_76 : f32 to vector<8x128xf32>
    %347 = arith.addf %346, %345 : vector<8x128xf32>
    %348 = arith.divf %346, %347 : vector<8x128xf32>
    %349 = vector.extract_strided_slice %308 {offsets = [0, 128], sizes = [8, 128], strides = [1, 1]} : vector<8x384xf32> to vector<8x128xf32>
    %350 = vector.extract_strided_slice %340 {offsets = [0, 128], sizes = [8, 128], strides = [1, 1]} : vector<8x384xf32> to vector<8x128xf32>
    %351 = arith.addf %349, %350 : vector<8x128xf32>
    %352 = arith.negf %351 : vector<8x128xf32>
    %353 = math.exp %352 : vector<8x128xf32>
    %cst_77 = arith.constant 1.000000e+00 : f32
    %354 = vector.broadcast %cst_77 : f32 to vector<8x128xf32>
    %355 = arith.addf %354, %353 : vector<8x128xf32>
    %356 = arith.divf %354, %355 : vector<8x128xf32>
    %357 = vector.extract_strided_slice %308 {offsets = [0, 256], sizes = [8, 128], strides = [1, 1]} : vector<8x384xf32> to vector<8x128xf32>
    %358 = vector.extract_strided_slice %340 {offsets = [0, 256], sizes = [8, 128], strides = [1, 1]} : vector<8x384xf32> to vector<8x128xf32>
    %359 = vector.broadcast %7 : vector<1x128xf32> to vector<8x128xf32>
    %360 = arith.addf %358, %359 : vector<8x128xf32>
    %361 = arith.mulf %348, %360 : vector<8x128xf32>
    %362 = arith.addf %357, %361 : vector<8x128xf32>
    %363 = math.tanh %362 : vector<8x128xf32>
    %cst_78 = arith.constant 1.000000e+00 : f32
    %364 = vector.broadcast %cst_78 : f32 to vector<8x128xf32>
    %365 = arith.subf %364, %356 : vector<8x128xf32>
    %366 = arith.mulf %365, %363 : vector<8x128xf32>
    %367 = arith.mulf %356, %297 : vector<8x128xf32>
    %368 = arith.addf %366, %367 : vector<8x128xf32>
    %369 = arith.addi %8, %c3_i32_65 : i32
    %370 = vector.broadcast %369 : i32 to vector<8x1xi32>
    %371 = arith.cmpi sgt, %3, %370 : vector<8x1xi32>
    %372 = arith.addi %10, %298 : i32
    %373 = vector.broadcast %372 : i32 to vector<8x1xi32>
    %374 = arith.cmpi sgt, %3, %373 : vector<8x1xi32>
    %cst_79 = arith.constant 0.000000e+00 : f32
    %375 = vector.shape_cast %371 : vector<8x1xi1> to vector<8x1xi1>
    %376 = vector.broadcast %375 : vector<8x1xi1> to vector<8x128xi1>
    %377 = vector.broadcast %cst_79 : f32 to vector<8x128xf32>
    %378 = arith.select %376, %338, %377 : vector<8x128xi1>, vector<8x128xf32>
    %379 = arith.index_cast %300 : i32 to index
    %c0_80 = arith.constant 0 : index
    %380 = vector.load %arg8[%379, %c0_80] : memref<32x128xf32, #tpu.memory_space<vmem>>, vector<8x128xf32>
    tpu.vector_store %arg8[%379, %c0_80], %378 {strides = array<i32>} : memref<32x128xf32, #tpu.memory_space<vmem>>, vector<8x128xf32>,
    %cst_81 = arith.constant 0.000000e+00 : f32
    %381 = vector.shape_cast %374 : vector<8x1xi1> to vector<8x1xi1>
    %382 = vector.broadcast %381 : vector<8x1xi1> to vector<8x128xi1>
    %383 = vector.broadcast %cst_81 : f32 to vector<8x128xf32>
    %384 = arith.select %382, %368, %383 : vector<8x128xi1>, vector<8x128xf32>
    %385 = arith.index_cast %302 : i32 to index
    %c0_82 = arith.constant 0 : index
    %386 = vector.load %arg9[%385, %c0_82] : memref<32x128xf32, #tpu.memory_space<vmem>>, vector<8x128xf32>
    tpu.vector_store %arg9[%385, %c0_82], %384 {strides = array<i32>} : memref<32x128xf32, #tpu.memory_space<vmem>>, vector<8x128xf32>,
    %387 = vector.shape_cast %371 : vector<8x1xi1> to vector<8x1xi1>
    %388 = vector.broadcast %387 : vector<8x1xi1> to vector<8x128xi1>
    %389 = arith.select %388, %338, %294 : vector<8x128xi1>, vector<8x128xf32>
    %390 = vector.shape_cast %374 : vector<8x1xi1> to vector<8x1xi1>
    %391 = vector.broadcast %390 : vector<8x1xi1> to vector<8x128xi1>
    %392 = arith.select %391, %368, %297 : vector<8x128xi1>, vector<8x128xf32>
    %c4_i32_83 = arith.constant 4 : i32
    %c0_84 = arith.constant 0 : index
    %c0_85 = arith.constant 0 : index
    %393 = vector.load %arg11[%c0_84, %c0_85] : memref<8x128xf32, #tpu.memory_space<vmem>>, vector<8x128xf32>
    tpu.vector_store %arg11[%c0_84, %c0_85], %389 {strides = array<i32>} : memref<8x128xf32, #tpu.memory_space<vmem>>, vector<8x128xf32>,
    %c0_86 = arith.constant 0 : index
    %c0_87 = arith.constant 0 : index
    %394 = vector.load %arg12[%c0_86, %c0_87] : memref<8x128xf32, #tpu.memory_space<vmem>>, vector<8x128xf32>
    tpu.vector_store %arg12[%c0_86, %c0_87], %392 {strides = array<i32>} : memref<8x128xf32, #tpu.memory_space<vmem>>, vector<8x128xf32>,
    %c2_i32_88 = arith.constant 2 : i32
    %395 = arith.cmpi eq, %arg0, %c2_i32_88 : i32
    %396 = arith.extui %395 : i1 to i32
    %c0_i32_89 = arith.constant 0 : i32
    %397 = arith.cmpi ne, %396, %c0_i32_89 : i32
    scf.if %397 {
      %c0_90 = arith.constant 0 : index
      %c0_91 = arith.constant 0 : index
      %c0_92 = arith.constant 0 : index
      %398 = vector.load %arg10[%c0_90, %c0_91, %c0_92] : memref<2x8x128xf32, #tpu.memory_space<vmem>>, vector<1x8x128xf32>
      %399 = vector.shape_cast %398 : vector<1x8x128xf32> to vector<8x128xf32>
      %400 = vector.shape_cast %389 : vector<8x128xf32> to vector<1x8x128xf32>
      tpu.vector_store %arg10[%c0_90, %c0_91, %c0_92], %400 {strides = array<i32>} : memref<2x8x128xf32, #tpu.memory_space<vmem>>, vector<1x8x128xf32>,
      %c1 = arith.constant 1 : index
      %c0_93 = arith.constant 0 : index
      %c0_94 = arith.constant 0 : index
      %401 = vector.load %arg10[%c1, %c0_93, %c0_94] : memref<2x8x128xf32, #tpu.memory_space<vmem>>, vector<1x8x128xf32>
      %402 = vector.shape_cast %401 : vector<1x8x128xf32> to vector<8x128xf32>
      %403 = vector.shape_cast %392 : vector<8x128xf32> to vector<1x8x128xf32>
      tpu.vector_store %arg10[%c1, %c0_93, %c0_94], %403 {strides = array<i32>} : memref<2x8x128xf32, #tpu.memory_space<vmem>>, vector<1x8x128xf32>,
    } else {
    }
    return
  }
  func.func @transform_0(%arg0: i32) -> (i32, i32) {
    %c0_i32 = arith.constant 0 : i32
    %c0_i32_0 = arith.constant 0 : i32
    return %arg0, %c0_i32 : i32, i32
  }
  func.func @transform_1(%arg0: i32) -> (i32, i32) {
    %c2_i32 = arith.constant 2 : i32
    %0 = arith.subi %c2_i32, %arg0 : i32
    %c0_i32 = arith.constant 0 : i32
    %c0_i32_0 = arith.constant 0 : i32
    return %0, %c0_i32 : i32, i32
  }
  func.func @transform_2(%arg0: i32) -> (i32, i32) {
    %c0_i32 = arith.constant 0 : i32
    %c0_i32_0 = arith.constant 0 : i32
    %c0_i32_1 = arith.constant 0 : i32
    return %c0_i32, %c0_i32_0 : i32, i32
  }
  func.func @transform_3(%arg0: i32) -> (i32, i32) {
    %c0_i32 = arith.constant 0 : i32
    %c0_i32_0 = arith.constant 0 : i32
    %c0_i32_1 = arith.constant 0 : i32
    return %c0_i32, %c0_i32_0 : i32, i32
  }
  func.func @transform_4(%arg0: i32) -> (i32, i32) {
    %c0_i32 = arith.constant 0 : i32
    %c0_i32_0 = arith.constant 0 : i32
    %c0_i32_1 = arith.constant 0 : i32
    return %c0_i32, %c0_i32_0 : i32, i32
  }
  func.func @transform_5(%arg0: i32) -> (i32, i32) {
    %c0_i32 = arith.constant 0 : i32
    %c0_i32_0 = arith.constant 0 : i32
    %c0_i32_1 = arith.constant 0 : i32
    return %c0_i32, %c0_i32_0 : i32, i32
  }
  func.func @transform_6(%arg0: i32) -> (i32, i32) {
    %c0_i32 = arith.constant 0 : i32
    %c0_i32_0 = arith.constant 0 : i32
    %c0_i32_1 = arith.constant 0 : i32
    return %c0_i32, %c0_i32_0 : i32, i32
  }
  func.func @transform_7(%arg0: i32) -> (i32, i32) {
    %c0_i32 = arith.constant 0 : i32
    %c0_i32_0 = arith.constant 0 : i32
    return %arg0, %c0_i32 : i32, i32
  }
  func.func @transform_8(%arg0: i32) -> (i32, i32) {
    %c2_i32 = arith.constant 2 : i32
    %0 = arith.subi %c2_i32, %arg0 : i32
    %c0_i32 = arith.constant 0 : i32
    %c0_i32_0 = arith.constant 0 : i32
    return %0, %c0_i32 : i32, i32
  }
  func.func @transform_9(%arg0: i32) -> (i32, i32, i32) {
    %c0_i32 = arith.constant 0 : i32
    %c0_i32_0 = arith.constant 0 : i32
    %c0_i32_1 = arith.constant 0 : i32
    %c0_i32_2 = arith.constant 0 : i32
    return %c0_i32, %c0_i32_0, %c0_i32_1 : i32, i32, i32
  }
}

</mosaic_0001>

<bundles_post_ra>
// kernel: tpu_custom_call.1
= control target key start
LH: loop header
LB: loop body
LE: loop exit
PB: predicated region body
PF: predicated region fallthrough
CT: control target
= control target key end

     0   :  { %s3914_s0 = inlined_call_operand.hbm [shape: bf16[96,384], index: 0, kind: input, shape index: {}]   ;;  %s3915_s1 = inlined_call_operand.hbm [shape: bf16[96,384], index: 1, kind: input, shape index: {}]   ;;  %s3916_s2 = inlined_call_operand.vmem [shape: s32[8,1], index: 2, kind: input, shape index: {}]   ;;  %s3917_s3 = inlined_call_operand.hbm [shape: bf16[128,384], index: 3, kind: input, shape index: {}]   ;;  %s3918_s4 = inlined_call_operand.vmem [shape: f32[1,128], index: 4, kind: input, shape index: {}]   ;;  %s3919_s5 = inlined_call_operand.hbm [shape: bf16[128,384], index: 5, kind: input, shape index: {}]   ;;  %s3920_s6 = inlined_call_operand.vmem [shape: f32[1,128], index: 6, kind: input, shape index: {}]   ;;  %s3921_s7 = inlined_call_operand.hbm [shape: f32[96,128], index: 7, kind: output, shape index: {0}]   ;;  %s3922_s8 = inlined_call_operand.hbm [shape: f32[96,128], index: 8, kind: output, shape index: {1}]   ;;  %s3923_s9 = inlined_call_operand.hbm [shape: f32[2,8,128], index: 9, kind: output, shape index: {2}]  }
   0x1   :  { %3963 = sst [smem:[#allocation38_spill]] %s3914_s0 }
   0x2   :  { %3964 = sst [smem:[#allocation39_spill]] %s3917_s3 }
   0x3   :  { %3965 = sst [smem:[#allocation40_spill]] %s3919_s5 }
   0x4   :  { %3966 = sst [smem:[#allocation41_spill]] %s3921_s7 }
   0x5   :  { %3967 = sst [smem:[#allocation42_spill]] %s3923_s9 }
   0x6   :  { %15 = vsyncpa [#allocation5], 0 }
   0x7   :  { %17 = vsyncpa [#allocation5 + $0x1], 0 }
   0x8   :  { %18 = vsyncpa [#allocation8], 0 }
   0x9   :  { %20 = vsyncpa [#allocation8 + $0x1], 0 }
   0xa   :  { %21 = vsyncpa [#allocation11], 0 }
   0xb   :  { %22 = vsyncpa [#allocation6], 0 }
   0xc   :  { %24 = vsyncpa [#allocation6 + $0x1], 0 }
   0xd   :  { %25 = vsyncpa [#allocation14], 0 }
   0xe   :  { %27 = vsyncpa [#allocation14 + $0x1], 0  ;;  %s2973_s30 = smov 0   ;;  %s2975_s10 = smov 0  }
   0xf   :  { %s2977_s11 = smov 0   ;;  %s2979_s12 = smov 0  }
  0x10   :  { %s2981_s13 = smov 0   ;;  %s2983_s14 = smov 0  }
  0x11   :  { %s2985_s15 = smov 0  }
  0x12 LB: > { %3968 = sst [smem:[#allocation23_spill]] %s2894_s12  ;;  %s3007_s16 = sadd.s32 4294967295, %s2906_s15   ;;  %s2906_s15 = sphi %s2985_s15, %s4045_s15   ;;  %s2902_s14 = sphi %s2983_s14, %s4039_s14   ;;  %s2898_s13 = sphi %s2981_s13, %s4044_s13   ;;  %s2894_s12 = sphi %s2979_s12, %s4043_s12   ;;  %s2890_s11 = sphi %s2977_s11, %s4042_s11   ;;  %s2886_s10 = sphi %s2975_s10, %s4041_s10   ;;  %s2882_s30 = sphi %s2973_s30, %s4040_s30  }
  0x13   : > { %3969 = sst [smem:[#allocation24_spill]] %s2902_s14  ;;  %s3924_s17 = sadd.s32 4294967294, %s2906_s15  }
  0x14   : > { %p53_p0 = scmp.ne.s32.totalorder %s2898_s13, %s2894_s12  ;;  %p3928_p1 = scmp.eq.s32.totalorder %s3007_s16, 0 }
  0x15   : > { %p81_p2 = scmp.ne.s32.totalorder %s2886_s10, %s2882_s30  ;;  %p216_p5 = scmp.eq.s32.totalorder %s3924_s17, 2 }
  0x16   : > { %p3017_p4 = por %p3928_p1, %p53_p0  ;;  %p1994_p7 = scmp.ge.s32.totalorder %s2906_s15, 1 }
  0x17   : > { %p3025_p6 = por %p81_p2, %p3928_p1  ;;  %p3030_p8 = por %p216_p5, %p53_p0 }
  0x18   : > { %s3970_s18 = scalar_select %p3017_p4, 1, 0 }
  0x19   : > { %s3971_s19 = scalar_select %p3025_p6, 1, 0 }
  0x1a   : > { %s3972_s20 = scalar_select %p3030_p8, 1, 0 }
  0x1b   : > { %p3034_p9 = por %p216_p5, %p81_p2  ;;  %p272_p10 = scmp.lt.s32.totalorder %s2906_s15, 4 }
  0x1c   : > { %3973 = sst [smem:[#allocation25_spill]] %s3972_s20  ;;  %s2908_s23 = smov [#allocation9]  }
  0x1d   : > { %s3974_s21 = scalar_select %p3034_p9, 1, 0 }
  0x1e   : > { %p3040_p12 = pnand %p1994_p7, %p272_p10  ;;  %s287_s24 = sshll.u32 %s2908_s23, 4  ;;  %s3044_s24 = int_to_ptr.vmem [resolvable:$true] %s287_s24 }
  0x1f   : > { %3975 = sst [smem:[#allocation26_spill]] %s3974_s21  ;;  %s2909_s26 = smov [#allocation10]  }
  0x20   : > { %p2367_p13 = pneg %p3040_p12  ;;  %s303_s27 = sshll.u32 %s2909_s26, 4  ;;  %s3054_s27 = int_to_ptr.vmem [resolvable:$true] %s303_s27 }
  0x21   : > { %s3978_s3 = sld [smem:[#allocation39_spill]] }
  0x22   : > { %p3050_p0 = pnand %p2367_p13, %p3928_p1 }
  0x24   : > { %p2628_p5 = pneg %p3050_p0 }
  0x27   : > { %s2626_s23 = scalar_lea.hbm %s3978_s3, 3072 }
  0x28   : > { %p2627_p2 = scmp.ne.s32.totalorder %s3978_s3, %s2626_s23  ;;  %p2633_p13 = scmp.lt.u32.totalorder %s2626_s23, %s3978_s3 }
  0x2a   : > { %p2629_p7 = pnand %p2628_p5, %p2627_p2 }
  0x2c   : > { %p2630_p10 = pneg %p2629_p7 }
  0x2e   : > { %p2635_p11 = pnand %p2633_p13, %p2630_p10 }
  0x30   : > { %2638 = shalt.err (!%p2635_p11)
}
  0x31   : > { %s2639_s26 = scalar_lea.vmem %s3044_s24, 3072  ;;  %p2647_p8 = scmp.lt.s32.totalorder %s3044_s24, %s3044_s24 }
  0x32   : > { %p2640_p1 = scmp.ne.s32.totalorder %s3044_s24, %s2639_s26  ;;  %p2648_p2 = scmp.lt.s32.totalorder %s2639_s26, %s2639_s26 }
  0x34   : > { %p2642_p3 = pnand %p2640_p1, %p2628_p5  ;;  %p2649_p7 = por %p2648_p2, %p2647_p8 }
  0x36   : > { %p2643_p9 = pneg %p2642_p3 }
  0x38   : > { %p2650_p6 = pnand %p2649_p7, %p2643_p9 }
  0x3a   : > { %2653 = shalt.err (!%p2650_p6)
}
  0x3b   : > { %s3932_s12 = smov 192   ;;  %s3934_s17 = smov 12  }
  0x3c   : > { %2370 = dma.hbm_to_vmem [thread:$0]  (!%p3050_p0), %s3978_s3, 3072, %s3044_s24, [#allocation8], %s3932_s12, %s3932_s12, %s3934_s17  }
  0x3d   : > { %s3979_s5 = sld [smem:[#allocation40_spill]] }
  0x43   : > { %s2654_s23 = scalar_lea.hbm %s3979_s5, 3072 }
  0x44   : > { %p2655_p1 = scmp.ne.s32.totalorder %s3979_s5, %s2654_s23  ;;  %p2661_p8 = scmp.lt.u32.totalorder %s2654_s23, %s3979_s5 }
  0x46   : > { %p2657_p3 = pnand %p2655_p1, %p2628_p5 }
  0x48   : > { %p2658_p6 = pneg %p2657_p3 }
  0x4a   : > { %p2663_p9 = pnand %p2661_p8, %p2658_p6 }
  0x4c   : > { %2666 = shalt.err (!%p2663_p9)
}
  0x4d   : > { %s2667_s24 = scalar_lea.vmem %s3054_s27, 3072  ;;  %p2675_p2 = scmp.lt.s32.totalorder %s3054_s27, %s3054_s27 }
  0x4e   : > { %p2668_p11 = scmp.ne.s32.totalorder %s3054_s27, %s2667_s24  ;;  %p2676_p7 = scmp.lt.s32.totalorder %s2667_s24, %s2667_s24 }
  0x50   : > { %p2670_p10 = pnand %p2668_p11, %p2628_p5  ;;  %p2677_p1 = por %p2676_p7, %p2675_p2 }
  0x52   : > { %p2671_p13 = pneg %p2670_p10 }
  0x54   : > { %p2678_p3 = pnand %p2677_p1, %p2671_p13 }
  0x56   : > { %2681 = shalt.err (!%p2678_p3)
}
  0x57   : > { %2373 = dma.hbm_to_vmem [thread:$0]  (!%p3050_p0), %s3979_s5, 3072, %s3054_s27, [#allocation11], %s3932_s12, %s3932_s12, %s3934_s17  }
  0x58   : > { %p47_p5 = scmp.ne.s32.totalorder %s2902_s14, %s2898_s13  ;;  %p3937_p6 = scmp.eq.s32.totalorder %s2906_s15, 0 }
  0x59   : > { %p3936_p8 = scmp.lt.s32.totalorder %s2906_s15, 3  ;;  %s320_s25 = sand.u32 1, %s2902_s14  }
  0x5a   : > { %p49_p9 = por %p3937_p6, %p47_p5  ;;  %p3980_p11 = scmp.eq.s32.totalorder %s3007_s16, 2 }
  0x5b   : > { %s2341_s20 = smul.u32 48, %s320_s25  ;;  %s3983_s0 = sld [smem:[#allocation38_spill]] }
  0x5c   : > { %p3124_p10 = por %p3980_p11, %p47_p5  ;;  %s2342_s21 = smul.u32 768, %s2906_s15 }
  0x5d   : > { %p3131_p13 = pnand %p3936_p8, %p49_p9  ;;  %s324_s26 = scalar_lea.vmem [#allocation4], %s2341_s20 }
  0x5e   : > { %s3981_s28 = scalar_select %p3124_p10, 1, 0 }
  0x5f   : > { %s332_s24 = sshll.u32 %s324_s26, 4  ;;  %s3142_s7 = scalar_lea.sflag [#allocation5], %s320_s25  ;;  %s3140_s24 = int_to_ptr.vmem [resolvable:$true] %s332_s24 }
  0x60   : > { %p2684_p2 = pneg %p3131_p13 }
  0x61   : > { %s3138_s23 = scalar_lea.hbm %s3983_s0, %s2342_s21  ;;  %s2687_s27 = scalar_lea.hbm %s3983_s0, 2304 }
  0x62   : > { %s2682_s9 = scalar_lea.hbm %s3138_s23, 768  ;;  %p2688_p3 = scmp.lt.u32.totalorder %s3138_s23, %s3983_s0 }
  0x63   : > { %p2683_p0 = scmp.ne.s32.totalorder %s3138_s23, %s2682_s9  ;;  %p2689_p5 = scmp.lt.u32.totalorder %s2687_s27, %s2682_s9 }
  0x64   : > { %p2691_p11 = scmp.lt.u32.totalorder %s2682_s9, %s3138_s23 }
  0x65   : > { %p2685_p7 = pnand %p2684_p2, %p2683_p0  ;;  %p2690_p9 = por %p2689_p5, %p2688_p3 }
  0x67   : > { %p2686_p1 = pneg %p2685_p7  ;;  %p2692_p8 = por %p2691_p11, %p2690_p9 }
  0x69   : > { %p2693_p6 = pnand %p2692_p8, %p2686_p1 }
  0x6b   : > { %2696 = shalt.err (!%p2693_p6)
}
  0x6c   : > { %s2697_s25 = scalar_lea.vmem %s3140_s24, 768  ;;  %s2912_s20 = smov [#allocation4]  }
  0x6d   : > { %p2698_p0 = scmp.ne.s32.totalorder %s3140_s24, %s2697_s25  ;;  %s2702_s26 = sshll.u32 %s2912_s20, 4  ;;  %s2703_s26 = int_to_ptr.vmem [resolvable:$false] %s2702_s26 }
  0x6e   : > { %s2704_s12 = scalar_lea.vmem %s2703_s26, 1536  ;;  %p2705_p4 = scmp.lt.s32.totalorder %s3140_s24, %s2703_s26 }
  0x6f   : > { %p2700_p7 = pnand %p2698_p0, %p2684_p2  ;;  %p2706_p3 = scmp.lt.s32.totalorder %s2704_s12, %s2697_s25 }
  0x71   : > { %p2701_p10 = pneg %p2700_p7  ;;  %p2707_p5 = por %p2706_p3, %p2705_p4 }
  0x73   : > { %p2708_p9 = pnand %p2707_p5, %p2701_p10 }
  0x75   : > { %2711 = shalt.err (!%p2708_p9)
}
  0x76   : > { %s3984_s17 = smov 12   ;;  %s3985_s9 = smov 192  }
  0x77   : > { %2377 = dma.hbm_to_vmem [thread:$0]  (!%p3131_p13), %s3138_s23, 768, %s3140_s24, %s3142_s7, %s3985_s9, %s3985_s9, %s3984_s17  }
  0x78   : > { %s3174_s29 = sadd.s32 1, %s2906_s15   ;;  %s63_s30 = ssub.s32 2, %s2906_s15 }
  0x79   : > { %s37_s21 = ssub.s32 %s2906_s15, %s3174_s29  ;;  %s64_s27 = ssub.s32 2, %s3174_s29 }
  0x7a   : > { %p38_p4 = scmp.eq.s32.totalorder %s37_s21, 0  ;;  %s65_s25 = ssub.s32 %s63_s30, %s64_s27 }
  0x7b   : > { %s68_s20 = sadd.s32 1, %s2890_s11  ;;  %s3986_s26 = sadd.s32 1, %s2902_s14 }
  0x7c   : > { %s3184_s12 = scalar_select %p38_p4, %s2902_s14, %s3986_s26  }
  0x7d   : > { %p66_p6 = scmp.eq.s32.totalorder %s65_s25, 0  ;;  %p75_p8 = scmp.ne.s32.totalorder %s2890_s11, %s2886_s10 }
  0x7e   : > { %3987 = sst [smem:[#allocation27_spill]] %s3184_s12  ;;  %s342_s0 = sand.u32 1, %s2906_s15  }
  0x7f   : > { %s344_s3 = sand.u32 1, %s2890_s11   ;;  %p3989_p10 = scmp.eq.s32.totalorder %s2906_s15, 0 }
  0x80   : > { %s3191_s5 = scalar_select %p66_p6, %s2890_s11, %s68_s20  }
  0x81   : > { %p77_p13 = por %p75_p8, %p3989_p10  ;;  %p3990_p2 = scmp.eq.s32.totalorder %s3007_s16, 2 }
  0x82   : > { %3988 = sst [smem:[#allocation28_spill]] %s3191_s5  ;;  %s2343_s24 = smul.u32 48, %s344_s3 }
  0x83   : > { %p3197_p1 = por %p3990_p2, %p75_p8  ;;  %s2344_s7 = smul.u32 768, %s63_s30 }
  0x84   : > { %p3992_p11 = scmp.lt.s32.totalorder %s2906_s15, 3  ;;  %s346_s26 = scalar_lea.vmem [#allocation7], %s2343_s24 }
  0x85   : > { %s3991_s23 = scalar_select %p3197_p1, 1, 0 }
  0x86   : > { %p3203_p0 = pnand %p3992_p11, %p77_p13  ;;  %s3210_s20 = scalar_lea.hbm %s3915_s1, %s2344_s7 }
  0x87   : > { %s355_s12 = sshll.u32 %s346_s26, 4  ;;  %s3214_s3 = scalar_lea.sflag [#allocation8], %s342_s0  ;;  %s3212_s12 = int_to_ptr.vmem [resolvable:$true] %s355_s12 }
  0x88   : > { %s2712_s30 = scalar_lea.hbm %s3210_s20, 768  ;;  %p2714_p3 = pneg %p3203_p0 }
  0x89   : > { %p2713_p7 = scmp.ne.s32.totalorder %s3210_s20, %s2712_s30  ;;  %s2717_s25 = scalar_lea.hbm %s3915_s1, 2304 }
  0x8a   : > { %p2718_p4 = scmp.lt.u32.totalorder %s3210_s20, %s3915_s1  ;;  %p2719_p6 = scmp.lt.u32.totalorder %s2717_s25, %s2712_s30 }
  0x8b   : > { %p2715_p5 = pnand %p2714_p3, %p2713_p7  ;;  %p2721_p10 = scmp.lt.u32.totalorder %s2712_s30, %s3210_s20 }
  0x8c   : > { %p2720_p8 = por %p2719_p6, %p2718_p4 }
  0x8d   : > { %p2716_p9 = pneg %p2715_p5 }
  0x8e   : > { %p2722_p13 = por %p2721_p10, %p2720_p8 }
  0x90   : > { %p2723_p2 = pnand %p2722_p13, %p2716_p9 }
  0x92   : > { %2726 = shalt.err (!%p2723_p2)
}
  0x93   : > { %s2727_s0 = scalar_lea.vmem %s3212_s12, 768  ;;  %s2913_s24 = smov [#allocation7]  }
  0x94   : > { %p2728_p11 = scmp.ne.s32.totalorder %s3212_s12, %s2727_s0  ;;  %s2732_s26 = sshll.u32 %s2913_s24, 4  ;;  %s2733_s26 = int_to_ptr.vmem [resolvable:$false] %s2732_s26 }
  0x95   : > { %s2734_s5 = scalar_lea.vmem %s2733_s26, 1536  ;;  %p2735_p1 = scmp.lt.s32.totalorder %s3212_s12, %s2733_s26 }
  0x96   : > { %p2730_p7 = pnand %p2728_p11, %p2714_p3  ;;  %p2736_p4 = scmp.lt.s32.totalorder %s2734_s5, %s2727_s0 }
  0x98   : > { %p2731_p5 = pneg %p2730_p7  ;;  %p2737_p6 = por %p2736_p4, %p2735_p1 }
  0x9a   : > { %p2738_p8 = pnand %p2737_p6, %p2731_p5 }
  0x9c   : > { %2741 = shalt.err (!%p2738_p8)
}
  0x9d   : > { %2380 = dma.hbm_to_vmem [thread:$0]  (!%p3203_p0), %s3210_s20, 768, %s3212_s12, %s3214_s3, %s3985_s9, %s3985_s9, %s3984_s17  }
  0x9e   : > { %367 = sbr.rel (%p3040_p12) target bundleno = 1391 (0x56f), region = 48 }
  0xa5   : > { %s3248_s14 = sand.u32 1, %s2898_s13   ;;  %p3994_p1 = scmp.ne.s32.totalorder %s3970_s18, 0 }
  0xa6   : > { %s2345_s30 = smul.u32 48, %s3248_s14  ;;  %s370_s7 = scalar_lea.sflag [#allocation5], %s3248_s14 }
  0xa8   : > { %s3252_s27 = scalar_lea.vmem [#allocation4], %s2345_s30 }
  0xa9   : > { %2853 = dma.done.wait (%p3994_p1), %s370_s7, 768  }
  0xaa   : > { %2855 = vsyncadd (%p3994_p1), %s370_s7, 4294966528  ;;  %s378_s22 = sand.u32 1, %s3007_s16   ;;  %s380_s17 = sand.u32 1, %s2886_s10  }
  0xab   : > { %s2346_s9 = smul.u32 48, %s380_s17  ;;  %s379_s12 = scalar_lea.sflag [#allocation8], %s378_s22 }
  0xac   : > { %p3995_p12 = scmp.ne.s32.totalorder %s3971_s19, 0 }
  0xad   : > { %s3262_s21 = scalar_lea.vmem [#allocation7], %s2346_s9 }
  0xae   : > { %2857 = dma.done.wait (%p3995_p12), %s379_s12, 768  }
  0xaf   : > { %2859 = vsyncadd (%p3995_p12), %s379_s12, 4294966528  ;;  %p3996_p0 = scmp.eq.s32.totalorder %s3007_s16, 0 }
  0xb1   : > { %2861 = dma.done.wait (%p3996_p0), [#allocation8], 3072   ;;  %p3997_p3 = pmov %p3996_p0 }
  0xb2   : > { %p3998_p9 = pmov %p3996_p0 }
  0xb3   : > { %2863 = vsyncadd (%p3997_p3), [#allocation8], 4294964224 }
  0xb4   : > { %2865 = dma.done.wait (%p3998_p9), [#allocation11], 3072   ;;  %p3999_p10 = pmov %p3996_p0 }
  0xb5   : > { %s2007_s18 = sshll.u32 %s3248_s14, 5  ;;  %s2008_s20 = sshll.u32 %s380_s17, 5 }
  0xb6   : > { %2867 = vsyncadd (%p3999_p10), [#allocation11], 4294964224  ;;  %s3277_s3 = scalar_lea.vmem [#allocation12], %s2007_s18  ;;  %s3279_s25 = scalar_lea.vmem [#allocation13], %s2008_s20 }
  0xb7   : > { %p4000_p13 = scmp.ne.s32.totalorder %s3007_s16, 0 }
  0xb8   : > { %v2914_v0 = vmov (!%p4000_p13), 0.0  }
  0xb9   : > { %445 = sbr.rel (%p4000_p13) target bundleno = 192 (0xc0), region = 68  ;;  %446 = vst [vmem:[#allocation2] sm:$0xff] (!%p4000_p13), %v2914_v0  ;;  %447 = vst [vmem:[#allocation3] sm:$0xff] (!%p4000_p13), %v2914_v0 }
  0xc0 PF: > { %v3283_v1 = vld [vmem:[#allocation9 + $0x4] ss:$12 sps:$4 sm:$0xff]   ;;  %v3285_v2 = vld [vmem:[#allocation9] ss:$12 sps:$4 sm:$0xff]   ;;  %v3942_v3 = vmov 0.0   ;;  %v3950_v4 = vmov 0  }
  0xc1   : > { %2181 = vmatprep.subr.bf16.mxu1 %v3942_v3  ;;  %697 = vmatprep.mubr.bf16.mxu0 %v3950_v4  ;;  %v3290_v5 = vld [vmem:[#allocation9 + $0x1c] ss:$12 sps:$4 sm:$0xff]   ;;  %vm2917_vm0 = vmmov 0   ;;  %v3295_v6 = vld [vmem:[#allocation9 + $0x18] ss:$12 sps:$4 sm:$0xff]   ;;  %v3352_v24 = vld [vmem:[#allocation2] sm:$0xff] }
  0xc2   : > { %665 = vmatprep.subr.bf16.mxu0 %v3283_v1  ;;  %2197 = vmatprep.mubr.msk.bf16.mxu1 %vm2917_vm0, %v3942_v3  ;;  %v3299_v7 = vld [vmem:[#allocation9 + $0x34] ss:$12 sps:$4 sm:$0xff]   ;;  %v3303_v8 = vld [vmem:[#allocation9 + $0x30] ss:$12 sps:$4 sm:$0xff]   ;;  %v3306_v9 = vld [vmem:[#allocation9 + $0x4c] ss:$12 sps:$4 sm:$0xff]   ;;  %v536_v27 = vpack.c.bf16 %v3352_v24, %v3352_v24 }
  0xc3   : > { %666 = vmatpush1.bf16.msra.mxu0 %v3285_v2  ;;  %2463 = vset.pattern.permute.xlu0 %v3950_v4  ;;  %v3308_v10 = vld [vmem:[#allocation9 + $0x8] ss:$12 sps:$4 sm:$0xff]   ;;  %v3315_v12 = vld [vmem:[#allocation9 + $0x64] ss:$12 sps:$4 sm:$0xff]   ;;  %v3318_v13 = vld [vmem:[#allocation9 + $0x20] ss:$12 sps:$4 sm:$0xff]  }
  0xc4   : > { %667 = vmatprep.subr.bf16.mxu0 %v3290_v5  ;;  %2464 = vset.pattern.permute.xlu1 %v3950_v4  ;;  %v3311_v11 = vld [vmem:[#allocation9 + $0x48] ss:$12 sps:$4 sm:$0xff]   ;;  %v3320_v14 = vld [vmem:[#allocation9 + $0x60] ss:$12 sps:$4 sm:$0xff]   ;;  %v3324_v15 = vld [vmem:[#allocation9 + $0x38] ss:$12 sps:$4 sm:$0xff]  }
  0xc5   : > { %2182 = vmatpush3.bf16.msra.mxu1 %v3308_v10  ;;  %v3327_v16 = vld [vmem:[#allocation9 + $0x7c] ss:$12 sps:$4 sm:$0xff]   ;;  %v3331_v17 = vld [vmem:[#allocation9 + $0x78] ss:$12 sps:$4 sm:$0xff]   ;;  %v3337_v19 = vld [vmem:[#allocation9 + $0x94] ss:$12 sps:$4 sm:$0xff]  }
  0xc6   : > { %2183 = vmatprep.subr.bf16.mxu1 %v3942_v3  ;;  %v3334_v18 = vld [vmem:[#allocation9 + $0x50] ss:$12 sps:$4 sm:$0xff]   ;;  %4001 = vst [vmem:[#allocation29_spill] sm:$0xff] %v3337_v19  ;;  %v3344_v21 = vld [vmem:[#allocation9 + $0x68] ss:$12 sps:$4 sm:$0xff]   ;;  %s516_s19 = ssub.s32 2, %s3007_s16 }
  0xc7   : > { %668 = vmatpush1.bf16.msra.mxu0 %v3295_v6  ;;  %v3340_v20 = vld [vmem:[#allocation9 + $0x90] ss:$12 sps:$4 sm:$0xff]   ;;  %v3347_v22 = vld [vmem:[#allocation9 + $0xac] ss:$12 sps:$4 sm:$0xff]   ;;  %v3350_v23 = vld [vmem:[#allocation9 + $0xa8] ss:$12 sps:$4 sm:$0xff]  }
  0xc8   : > { %669 = vmatprep.subr.bf16.mxu0 %v3299_v7  ;;  %4002 = vst [vmem:[#allocation30_spill] sm:$0xff] %v3340_v20  ;;  %4003 = vst [vmem:[#allocation31_spill] sm:$0xff] %v3347_v22  ;;  %v3356_v25 = vld [vmem:[#allocation9 + $0x80] ss:$12 sps:$4 sm:$0xff]   ;;  %v3360_v26 = vld [vmem:[#allocation10 + $0x4] ss:$12 sps:$4 sm:$0xff]  }
  0xc9   : > { %2184 = vmatpush3.bf16.msra.mxu1 %v3318_v13  ;;  %4004 = vst [vmem:[#allocation32_spill] sm:$0xff] %v3350_v23  ;;  %4005 = vst [vmem:[#allocation33_spill] sm:$0xff] %v3360_v26  ;;  %s3367_s0 = sshll.u32 %s516_s19, 2  ;;  %v3370_v28 = vld [vmem:[#allocation10] ss:$12 sps:$4 sm:$0xff]   ;;  %s3380_s24 = sshll.u32 %s3007_s16, 2 }
  0xca   : > { %2185 = vmatprep.subr.bf16.mxu1 %v3942_v3  ;;  %v3373_v29 = vld [vmem:[#allocation9 + $0x98] ss:$12 sps:$4 sm:$0xff]   ;;  %v3376_v30 = vld [vmem:[#allocation10 + $0x1c] ss:$12 sps:$4 sm:$0xff]   ;;  %s1014_s26 = sadd.s32 3, %s3367_s0  ;;  %v1012_v34 = vstv %s3380_s24  ;;  %s1504_s5 = sadd.s32 2, %s3380_s24 }
  0xcb   : > { %670 = vmatpush1.bf16.msra.mxu0 %v3303_v8  ;;  %4006 = vst [vmem:[#allocation34_spill] sm:$0xff] %v3373_v29  ;;  %v3383_v31 = vld [vmem:[#allocation10 + $0x18] ss:$12 sps:$4 sm:$0xff]   ;;  %v3387_v32 = vld [vmem:[#allocation9 + $0xb0] ss:$12 sps:$4 sm:$0xff]   ;;  %v1015_v35 = vstv %s1014_s26  ;;  %v1505_v41 = vstv %s1504_s5  ;;  %s1750_s17 = sadd.s32 3, %s3380_s24 }
  0xcc   : > { %671 = vmatprep.subr.bf16.mxu0 %v3306_v9  ;;  %4007 = vst [vmem:[#allocation35_spill] sm:$0xff] %v3387_v32  ;;  %v3390_v33 = vld [vmem:[#allocation10 + $0x34] ss:$12 sps:$4 sm:$0xff]   ;;  %v3402_v37 = vld [vmem:[#allocation10 + $0x30] ss:$12 sps:$4 sm:$0xff]   ;;  %v1751_v46 = vstv %s1750_s17  ;;  %s1258_s9 = sadd.s32 1, %s3380_s24 }
  0xcd   : > { %2186 = vmatpush3.bf16.msra.mxu1 %v3324_v15  ;;  %v3399_v36 = vld [vmem:[%s3916_s2] sm:$0xff]  ;;  %v3410_v39 = vld [vmem:[#allocation10 + $0x4c] ss:$12 sps:$4 sm:$0xff]   ;;  %v3438_v50 = vld [vmem:[#allocation10 + $0x7c] ss:$12 sps:$4 sm:$0xff]   ;;  %s1261_s12 = sadd.s32 2, %s3367_s0  ;;  %v1259_v0 = vstv %s1258_s9 }
  0xce   : > { %2187 = vmatprep.subr.bf16.mxu1 %v3942_v3  ;;  %v3405_v38 = vld [vmem:[#allocation10 + $0x8] ss:$12 sps:$4 sm:$0xff]   ;;  %vm1013_vm1 = vcmp.gt.s32.totalorder %v3399_v36, %v1012_v34  ;;  %vm1016_vm2 = vcmp.gt.s32.totalorder %v3399_v36, %v1015_v35  ;;  %v3420_v44 = vld [vmem:[#allocation10 + $0x20] ss:$12 sps:$4 sm:$0xff]   ;;  %vm1506_vm3 = vcmp.gt.s32.totalorder %v3399_v36, %v1505_v41  ;;  %v3424_v45 = vld [vmem:[#allocation10 + $0x64] ss:$12 sps:$4 sm:$0xff]   ;;  %vm1752_vm4 = vcmp.gt.s32.totalorder %v3399_v36, %v1751_v46 }
  0xcf   : > { %672 = vmatpush1.bf16.msra.mxu0 %v3311_v11  ;;  %v1017_v40 = vsel %vm1013_vm1, 1, %v3950_v4  ;;  %v1024_v42 = vsel %vm1016_vm2, 1, %v3950_v4  ;;  %v3417_v43 = vld [vmem:[#allocation10 + $0x48] ss:$12 sps:$4 sm:$0xff]   ;;  %v1510_v47 = vsel %vm1506_vm3, 1, %v3950_v4  ;;  %v1755_v51 = vsel %vm1752_vm4, 1, %v3950_v4 }
  0xd0   : > { %673 = vmatprep.subr.bf16.mxu0 %v3315_v12  ;;  %1019 = vperm.xlu0 %2463, %v1017_v40   ;;  %v3431_v48 = vld [vmem:[#allocation10 + $0x60] ss:$12 sps:$4 sm:$0xff]   ;;  %v3434_v49 = vld [vmem:[#allocation10 + $0x38] ss:$12 sps:$4 sm:$0xff]   ;;  %v3446_v53 = vld [vmem:[#allocation10 + $0x50] ss:$12 sps:$4 sm:$0xff]   ;;  %vm1260_vm5 = vcmp.gt.s32.totalorder %v3399_v36, %v1259_v0  ;;  %v1753_v41 = vstv %s3367_s0 }
  0xd1   : > { %2188 = vmatpush3.bf16.msra.mxu1 %v3334_v18  ;;  %v3443_v52 = vld [vmem:[#allocation10 + $0x78] ss:$12 sps:$4 sm:$0xff]   ;;  %v3449_v54 = vld [vmem:[#allocation10 + $0x94] ss:$12 sps:$4 sm:$0xff]   ;;  %v3453_v55 = vld [vmem:[#allocation10 + $0x90] ss:$12 sps:$4 sm:$0xff]   ;;  %vm1754_vm8 = vcmp.gt.s32.totalorder %v3399_v36, %v1753_v41 }
  0xd2   : > { %2189 = vmatprep.subr.bf16.mxu1 %v3942_v3  ;;  %v3456_v56 = vld [vmem:[#allocation10 + $0x68] ss:$12 sps:$4 sm:$0xff]   ;;  %v3459_v57 = vld [vmem:[#allocation10 + $0xac] ss:$12 sps:$4 sm:$0xff]   ;;  %v3481_v63 = vld [vmem:[#allocation10 + $0xb0] ss:$12 sps:$4 sm:$0xff]  }
  0xd3   : > { %674 = vmatpush1.bf16.msra.mxu0 %v3320_v14  ;;  %v3463_v58 = vld [vmem:[#allocation10 + $0xa8] ss:$12 sps:$4 sm:$0xff]   ;;  %v3465_v59 = vld [vmem:[#allocation3] sm:$0xff]  ;;  %v3468_v60 = vld [vmem:[#allocation10 + $0x80] ss:$12 sps:$4 sm:$0xff]   ;;  %s1507_s18 = sadd.s32 1, %s3367_s0 }
  0xd4   : > { %675 = vmatprep.subr.bf16.mxu0 %v3327_v16  ;;  %1026 = vperm.xlu0 %2463, %v1024_v42   ;;  %v774_v61 = vpack.c.bf16 %v3465_v59, %v3465_v59  ;;  %v3476_v62 = vld [vmem:[#allocation10 + $0x98] ss:$12 sps:$4 sm:$0xff]   ;;  %v1264_v34 = vsel %vm1260_vm5, 1, %v3950_v4  ;;  %v1508_v35 = vstv %s1507_s18  ;;  %v1763_v46 = vsel %vm1754_vm8, 1, %v3950_v4  ;;  %p2096_p2 = scmp.ne.s32.totalorder %s3007_s16, 2 }
  0xd5   : > { %2190 = vmatpush3.bf16.msra.mxu1 %v3344_v21  ;;  %1266 = vperm.xlu1 %2464, %v1264_v34   ;;  %vm1509_vm7 = vcmp.gt.s32.totalorder %v3399_v36, %v1508_v35 }
  0xd6   : > { %2191 = vmatprep.subr.bf16.mxu1 %v3942_v3  ;;  %v1518_v42 = vsel %vm1509_vm7, 1, %v3950_v4 }
  0xd7   : > { %676 = vmatpush1.bf16.msra.mxu0 %v3331_v17 }
  0xd8   : > { %677 = vmatprep.subr.bf16.mxu0 %v3337_v19  ;;  %1512 = vperm.xlu0 %2463, %v1510_v47   ;;  %v523_v47 = vld [vmem:[%s3252_s27] sm:$0xff] }
  0xd9   : > { %2192 = vmatpush3.bf16.msra.mxu1 %v3356_v25  ;;  %v526_v0 = vunpack.c.h.bf16 %v523_v47 }
  0xda   : > { %2193 = vmatprep.subr.bf16.mxu1 %v3942_v3 }
  0xdb   : > { %678 = vmatpush1.bf16.msra.mxu0 %v3340_v20 }
  0xdc   : > { %679 = vmatprep.subr.bf16.mxu0 %v3347_v22  ;;  %1757 = vperm.xlu0 %2463, %v1755_v51   ;;  %v525_v51 = vunpack.c.l.bf16 %v523_v47  ;;  %v3540_v47 = vld [vmem:[%s3252_s27 + $0x8] ss:$12 sps:$4 sm:$0xff]  }
  0xdd   : > { %2194 = vmatpush3.bf16.msra.mxu1 %v3373_v29  ;;  %4009 = vst [vmem:[#allocation37_spill] sm:$0xff] %v3540_v47 }
  0xde   : > { %2195 = vmatprep.subr.bf16.mxu1 %v3942_v3 }
  0xdf   : > { %680 = vmatpush1.bf16.msra.mxu0 %v3350_v23 }
  0xe0   : > { %903 = vmatprep.subr.bf16.mxu0 %v3360_v26 }
  0xe1   : > { %2196 = vmatpush3.bf16.msra.mxu1 %v3387_v32 }
  0xe2   : > { %698 = vmatmul.mubr.bf16.vlgmr.msra.gmra.mrb[0].mxu0 %v536_v27  ;;  %2201 = vmatprep.subr.bf16.mxu1 %v3942_v3 }
  0xe3   : > { %904 = vmatpush1.bf16.msra.mxu0 %v3370_v28  ;;  %935 = vmatprep.mubr.bf16.mxu0 %v3950_v4 }
  0xe4   : > { %905 = vmatprep.subr.bf16.mxu0 %v3376_v30  ;;  %2198 = vmatmul.mubr.bf16.vlgmr.msra.gmra.mrb[0].mxu1 %v536_v27  ;;  %v1262_v27 = vstv %s1261_s12 }
  0xe5   : > { %2202 = vmatpush3.bf16.msra.mxu1 %v3405_v38  ;;  %2217 = vmatprep.mubr.msk.bf16.mxu1 %vm2917_vm0, %v3942_v3  ;;  %vm1263_vm6 = vcmp.gt.s32.totalorder %v3399_v36, %v1262_v27 }
  0xe6   : > { %2203 = vmatprep.subr.bf16.mxu1 %v3942_v3  ;;  %v1272_v40 = vsel %vm1263_vm6, 1, %v3950_v4 }
  0xe7   : > { %906 = vmatpush1.bf16.msra.mxu0 %v3383_v31  ;;  %1274 = vperm.xlu1 %2464, %v1272_v40  }
  0xe8   : > { %907 = vmatprep.subr.bf16.mxu0 %v3390_v33 }
  0xe9   : > { %2204 = vmatpush3.bf16.msra.mxu1 %v3420_v44 }
  0xea   : > { %2205 = vmatprep.subr.bf16.mxu1 %v3942_v3 }
  0xeb   : > { %908 = vmatpush1.bf16.msra.mxu0 %v3402_v37  ;;  %1520 = vperm.xlu1 %2464, %v1518_v42  }
  0xec   : > { %909 = vmatprep.subr.bf16.mxu0 %v3410_v39 }
  0xed   : > { %2206 = vmatpush3.bf16.msra.mxu1 %v3434_v49 }
  0xee   : > { %2207 = vmatprep.subr.bf16.mxu1 %v3942_v3 }
  0xef   : > { %910 = vmatpush1.bf16.msra.mxu0 %v3417_v43  ;;  %1765 = vperm.xlu1 %2464, %v1763_v46  }
  0xf0   : > { %911 = vmatprep.subr.bf16.mxu0 %v3424_v45 }
  0xf1   : > { %2208 = vmatpush3.bf16.msra.mxu1 %v3446_v53 }
  0xf2   : > { %2209 = vmatprep.subr.bf16.mxu1 %v3942_v3 }
  0xf3   : > { %912 = vmatpush1.bf16.msra.mxu0 %v3431_v48 }
  0xf4   : > { %913 = vmatprep.subr.bf16.mxu0 %v3438_v50 }
  0xf5   : > { %2210 = vmatpush3.bf16.msra.mxu1 %v3456_v56 }
  0xf6   : > { %2211 = vmatprep.subr.bf16.mxu1 %v3942_v3 }
  0xf7   : > { %914 = vmatpush1.bf16.msra.mxu0 %v3443_v52 }
  0xf8   : > { %915 = vmatprep.subr.bf16.mxu0 %v3449_v54 }
  0xf9   : > { %2212 = vmatpush3.bf16.msra.mxu1 %v3468_v60 }
  0xfa   : > { %2213 = vmatprep.subr.bf16.mxu1 %v3942_v3 }
  0xfb   : > { %916 = vmatpush1.bf16.msra.mxu0 %v3453_v55 }
  0xfc   : > { %917 = vmatprep.subr.bf16.mxu0 %v3459_v57 }
  0xfd   : > { %2214 = vmatpush3.bf16.msra.mxu1 %v3476_v62 }
  0xfe   : > { %2215 = vmatprep.subr.bf16.mxu1 %v3942_v3 }
  0xff   : > { %918 = vmatpush1.bf16.msra.mxu0 %v3463_v58 }
 0x100   : > { %1051 = vmatprep.subr.bf16.mxu0 %v3283_v1 }
 0x101   : > { %2216 = vmatpush3.bf16.msra.mxu1 %v3481_v63 }
 0x102   : > { %936 = vmatmul.mubr.bf16.vlgmr.msra.gmra.mrb[4].mxu0 %v774_v61  ;;  %2221 = vmatprep.subr.bf16.mxu1 %v3942_v3 }
 0x103   : > { %1052 = vmatpush1.bf16.msra.mxu0 %v3285_v2  ;;  %1083 = vmatprep.mubr.bf16.mxu0 %v3950_v4 }
 0x104   : > { %1053 = vmatprep.subr.bf16.mxu0 %v3290_v5  ;;  %2218 = vmatmul.mubr.bf16.vlgmr.msra.gmra.mrb[4].mxu1 %v774_v61 }
 0x105   : > { %2222 = vmatpush3.bf16.msra.mxu1 %v3308_v10  ;;  %2237 = vmatprep.mubr.msk.bf16.mxu1 %vm2917_vm0, %v3942_v3 }
 0x106   : > { %2223 = vmatprep.subr.bf16.mxu1 %v3942_v3 }
 0x107   : > { %1054 = vmatpush1.bf16.msra.mxu0 %v3295_v6 }
 0x108   : > { %1055 = vmatprep.subr.bf16.mxu0 %v3299_v7 }
 0x109   : > { %2224 = vmatpush3.bf16.msra.mxu1 %v3318_v13 }
 0x10a   : > { %2225 = vmatprep.subr.bf16.mxu1 %v3942_v3 }
 0x10b   : > { %1056 = vmatpush1.bf16.msra.mxu0 %v3303_v8 }
 0x10c   : > { %1057 = vmatprep.subr.bf16.mxu0 %v3306_v9 }
 0x10d   : > { %2226 = vmatpush3.bf16.msra.mxu1 %v3324_v15 }
 0x10e   : > { %2227 = vmatprep.subr.bf16.mxu1 %v3942_v3 }
 0x10f   : > { %1058 = vmatpush1.bf16.msra.mxu0 %v3311_v11 }
 0x110   : > { %1059 = vmatprep.subr.bf16.mxu0 %v3315_v12 }
 0x111   : > { %2228 = vmatpush3.bf16.msra.mxu1 %v3334_v18 }
 0x112   : > { %2229 = vmatprep.subr.bf16.mxu1 %v3942_v3 }
 0x113   : > { %1060 = vmatpush1.bf16.msra.mxu0 %v3320_v14 }
 0x114   : > { %1061 = vmatprep.subr.bf16.mxu0 %v3327_v16 }
 0x115   : > { %2230 = vmatpush3.bf16.msra.mxu1 %v3344_v21 }
 0x116   : > { %2231 = vmatprep.subr.bf16.mxu1 %v3942_v3 }
 0x117   : > { %1062 = vmatpush1.bf16.msra.mxu0 %v3331_v17 }
 0x118   : > { %1063 = vmatprep.subr.bf16.mxu0 %v3337_v19 }
 0x119   : > { %2232 = vmatpush3.bf16.msra.mxu1 %v3356_v25 }
 0x11a   : > { %2233 = vmatprep.subr.bf16.mxu1 %v3942_v3 }
 0x11b   : > { %1064 = vmatpush1.bf16.msra.mxu0 %v3340_v20 }
 0x11c   : > { %1065 = vmatprep.subr.bf16.mxu0 %v3347_v22 }
 0x11d   : > { %2234 = vmatpush3.bf16.msra.mxu1 %v3373_v29 }
 0x11e   : > { %2235 = vmatprep.subr.bf16.mxu1 %v3942_v3 }
 0x11f   : > { %1066 = vmatpush1.bf16.msra.mxu0 %v3350_v23 }
 0x120   : > { %1155 = vmatprep.subr.bf16.mxu0 %v3360_v26 }
 0x121   : > { %2236 = vmatpush3.bf16.msra.mxu1 %v3387_v32 }
 0x122   : > { %2241 = vmatprep.subr.bf16.mxu1 %v3942_v3 }
 0x1b5   : > { %v699_v61 = vpop.f32.mrb[0].mxu0 }
 0x1b6   : > { %v746_v27 = vadd.f32 %v699_v61, %v525_v51  ;;  %v701_v34 = vpop.f32.mrb[1].mxu0  ;;  %v527_v61 = vunpack.c.l.bf16 %v3540_v47 }
 0x1b7   : > { %v703_v3 = vpop.f32.mrb[2].mxu0  ;;  %v753_v32 = vadd.f32 %v701_v34, %v526_v0  ;;  %v740_v23 = vpop.f32.mrb[0].mxu1 }
 0x1b8   : > { %v2038_v26 = vmul.f32 -1.442695, %v746_v27  ;;  %v704_v35 = vpop.f32.mrb[3].mxu0  ;;  %v2199_v36 = vpop.f32.mrb[1].mxu1  ;;  %v3537_v3 = vld [vmem:[%s3918_s4] ss:$0 sm:$0xff] }
 0x1b9   : > { %v2039_v40 = vmul.f32 -1.442695, %v753_v32  ;;  %v743_v41 = vpop.f32.mrb[2].mxu1  ;;  %4008 = vst [vmem:[#allocation36_spill] sm:$0xff] %v3537_v3  ;;  %v2012_v32 = vld [vmem:[%s3262_s21 + $0x24] sm:$0xff] }
 0x1ba   : > { %2529 = vpow2.f32 %v2038_v26  ;;  %v2200_v42 = vpop.f32.mrb[3].mxu1  ;;  %v766_v26 = vadd.f32 %v3537_v3, %v740_v23  ;;  %v533_v34 = vunpack.c.l.bf16 %v2012_v32 }
 0x1bb   : > { %2531 = vpow2.f32 %v2039_v40  ;;  %v534_v40 = vunpack.c.h.bf16 %v2012_v32 }
 0x1c4   : > { %v2530_v46 = vpop.eup %2529 }
 0x1c5   : > { %v750_v4 = vadd.f32 1.0, %v2530_v46  ;;  %v2532_v22 = vpop.eup %2531 }
 0x1c6   : > { %v757_v51 = vadd.f32 1.0, %v2532_v22 }
 0x1c7   : > { %2533 = vrcp.f32 %v750_v4 }
 0x1c8   : > { %2535 = vrcp.f32 %v757_v51 }
 0x1d1   : > { %v2534_v0 = vpop.eup %2533 }
 0x1d2   : > { %v767_v27 = vmul.f32 %v2534_v0, %v766_v26  ;;  %v2536_v22 = vpop.eup %2535 }
 0x1d3   : > { %v770_v19 = vsub.f32 1.0, %v2536_v22  ;;  %v772_v32 = vmul.f32 %v2536_v22, %v3352_v24 }
 0x1d4   : > { %v768_v35 = vadd.f32 %v767_v27, %v527_v61  ;;  %v1020_v27 = vpop.permute.xlu0 %1019 }
 0x1d5   : > { %v937_v4 = vpop.f32.mrb[4].mxu0  ;;  %vm1021_vm9 = vcmp.eq.s32.totalorder %v1020_v27, 1 }
 0x1d6   : > { %2537 = vtanh.f32 %v768_v35  ;;  %v984_v36 = vadd.f32 %v937_v4, %v533_v34  ;;  %v939_v41 = vpop.f32.mrb[5].mxu0 }
 0x1d7   : > { %v941_v42 = vpop.f32.mrb[6].mxu0  ;;  %v991_v20 = vadd.f32 %v939_v41, %v534_v40  ;;  %v978_v3 = vpop.f32.mrb[4].mxu1  ;;  %v3565_v41 = vld [vmem:[%s3262_s21 + $0x20] ss:$12 sps:$4 sm:$0xff]  }
 0x1d8   : > { %v2065_v46 = vmul.f32 -1.442695, %v984_v36  ;;  %v942_v29 = vpop.f32.mrb[7].mxu0  ;;  %v2219_v47 = vpop.f32.mrb[5].mxu1  ;;  %v4011_v36 = vmov 0   ;;  %v535_v22 = vunpack.c.h.bf16 %v3565_v41 }
 0x1d9   : > { %v2066_v23 = vmul.f32 -1.442695, %v991_v20  ;;  %v981_v51 = vpop.f32.mrb[6].mxu1 }
 0x1da   : > { %2539 = vpow2.f32 %v2065_v46  ;;  %v2220_v0 = vpop.f32.mrb[7].mxu1 }
 0x1db   : > { %2541 = vpow2.f32 %v2066_v23 }
 0x1e0   : > { %v2538_v26 = vpop.eup %2537 }
 0x1e1   : > { %v771_v61 = vmul.f32 %v2538_v26, %v770_v19  ;;  %v4010_v19 = vmov 0.0  }
 0x1e3   : > { %v773_v34 = vadd.f32 %v772_v32, %v771_v61 }
 0x1e4   : > { %v2540_v35 = vpop.eup %2539 }
 0x1e5   : > { %v988_v29 = vadd.f32 1.0, %v2540_v35  ;;  %v1022_v4 = vsel %vm1021_vm9, %v773_v34, 0.0  ;;  %v3547_v20 = vsel %vm1021_vm9, %v773_v34, %v3352_v24  ;;  %v2542_v40 = vpop.eup %2541  ;;  %v3559_v24 = vld [vmem:[%s3920_s6] ss:$0 sm:$0xff]  ;;  %v1027_v34 = vpop.permute.xlu0 %1026 }
 0x1e6   : > { %1023 = vst [vmem:[%s3277_s3] sm:$0xff] %v1022_v4  ;;  %v1050_v47 = vpack.c.bf16 %v3547_v20, %v3547_v20  ;;  %v995_v42 = vadd.f32 1.0, %v2542_v40  ;;  %v1004_v46 = vadd.f32 %v3559_v24, %v978_v3  ;;  %vm1028_vm10 = vcmp.eq.s32.totalorder %v1027_v34, 1 }
 0x1e7   : > { %2543 = vrcp.f32 %v988_v29 }
 0x1e8   : > { %1084 = vmatmul.mubr.bf16.vlgmr.msra.gmra.mrb[8].mxu0 %v1050_v47  ;;  %2238 = vmatmul.mubr.bf16.vlgmr.msra.gmra.mrb[8].mxu1 %v1050_v47  ;;  %2545 = vrcp.f32 %v995_v42 }
 0x1e9   : > { %1156 = vmatpush1.bf16.msra.mxu0 %v3370_v28  ;;  %2242 = vmatpush3.bf16.msra.mxu1 %v3405_v38 }
 0x1ea   : > { %1157 = vmatprep.subr.bf16.mxu0 %v3376_v30  ;;  %2243 = vmatprep.subr.bf16.mxu1 %v4010_v19 }
 0x1eb   : > { %1187 = vmatprep.mubr.bf16.mxu0 %v4011_v36  ;;  %2257 = vmatprep.mubr.msk.bf16.mxu1 %vm2917_vm0, %v4010_v19 }
 0x1ed   : > { %1158 = vmatpush1.bf16.msra.mxu0 %v3383_v31  ;;  %2244 = vmatpush3.bf16.msra.mxu1 %v3420_v44 }
 0x1ee   : > { %1159 = vmatprep.subr.bf16.mxu0 %v3390_v33  ;;  %2245 = vmatprep.subr.bf16.mxu1 %v4010_v19 }
 0x1f1   : > { %v2544_v23 = vpop.eup %2543  ;;  %1160 = vmatpush1.bf16.msra.mxu0 %v3402_v37  ;;  %2246 = vmatpush3.bf16.msra.mxu1 %v3434_v49 }
 0x1f2   : > { %v1005_v51 = vmul.f32 %v2544_v23, %v1004_v46  ;;  %1161 = vmatprep.subr.bf16.mxu0 %v3410_v39  ;;  %2247 = vmatprep.subr.bf16.mxu1 %v4010_v19  ;;  %v2546_v3 = vpop.eup %2545 }
 0x1f3   : > { %v1008_v0 = vsub.f32 1.0, %v2546_v3  ;;  %v1010_v32 = vmul.f32 %v2546_v3, %v3465_v59 }
 0x1f4   : > { %v1006_v26 = vadd.f32 %v1005_v51, %v535_v22 }
 0x1f5   : > { %1162 = vmatpush1.bf16.msra.mxu0 %v3417_v43  ;;  %2248 = vmatpush3.bf16.msra.mxu1 %v3446_v53 }
 0x1f6   : > { %2547 = vtanh.f32 %v1006_v26  ;;  %1163 = vmatprep.subr.bf16.mxu0 %v3424_v45  ;;  %2249 = vmatprep.subr.bf16.mxu1 %v4010_v19 }
 0x1f9   : > { %1164 = vmatpush1.bf16.msra.mxu0 %v3431_v48  ;;  %2250 = vmatpush3.bf16.msra.mxu1 %v3456_v56 }
 0x1fa   : > { %1165 = vmatprep.subr.bf16.mxu0 %v3438_v50  ;;  %2251 = vmatprep.subr.bf16.mxu1 %v4010_v19 }
 0x1fd   : > { %1166 = vmatpush1.bf16.msra.mxu0 %v3443_v52  ;;  %2252 = vmatpush3.bf16.msra.mxu1 %v3468_v60 }
 0x1fe   : > { %1167 = vmatprep.subr.bf16.mxu0 %v3449_v54  ;;  %2253 = vmatprep.subr.bf16.mxu1 %v4010_v19 }
 0x200   : > { %v2548_v61 = vpop.eup %2547 }
 0x201   : > { %v1009_v27 = vmul.f32 %v2548_v61, %v1008_v0  ;;  %1168 = vmatpush1.bf16.msra.mxu0 %v3453_v55  ;;  %2254 = vmatpush3.bf16.msra.mxu1 %v3476_v62 }
 0x202   : > { %1169 = vmatprep.subr.bf16.mxu0 %v3459_v57  ;;  %2255 = vmatprep.subr.bf16.mxu1 %v4010_v19 }
 0x203   : > { %v1011_v35 = vadd.f32 %v1010_v32, %v1009_v27 }
 0x205   : > { %1170 = vmatpush1.bf16.msra.mxu0 %v3463_v58  ;;  %2256 = vmatpush3.bf16.msra.mxu1 %v3481_v63  ;;  %v1029_v29 = vsel %vm1028_vm10, %v1011_v35, 0.0  ;;  %v3597_v4 = vsel %vm1028_vm10, %v1011_v35, %v3465_v59 }
 0x206   : > { %2068 = vst [vmem:[%s3279_s25 + $0x18] sm:$0xff] %v1029_v29  ;;  %v1154_v47 = vpack.c.bf16 %v3597_v4, %v3597_v4  ;;  %1297 = vmatprep.subr.bf16.mxu0 %v3283_v1  ;;  %2261 = vmatprep.subr.bf16.mxu1 %v4010_v19  ;;  %v4012_v1 = vld [vmem:[#allocation29_spill] sm:$0xff]  ;;  %v2071_v29 = vld [vmem:[%s3262_s21 + $0x18] sm:$0xff] }
 0x208   : > { %1188 = vmatmul.mubr.bf16.vlgmr.msra.gmra.mrb[12].mxu0 %v1154_v47  ;;  %2258 = vmatmul.mubr.bf16.vlgmr.msra.gmra.mrb[12].mxu1 %v1154_v47  ;;  %v4019_v47 = vld [vmem:[#allocation37_spill] sm:$0xff] }
 0x209   : > { %1298 = vmatpush1.bf16.msra.mxu0 %v3285_v2  ;;  %2262 = vmatpush3.bf16.msra.mxu1 %v3308_v10  ;;  %v4013_v2 = vld [vmem:[#allocation30_spill] sm:$0xff] }
 0x20a   : > { %1299 = vmatprep.subr.bf16.mxu0 %v3290_v5  ;;  %2263 = vmatprep.subr.bf16.mxu1 %v4010_v19  ;;  %v4014_v5 = vld [vmem:[#allocation34_spill] sm:$0xff] }
 0x20b   : > { %1329 = vmatprep.mubr.bf16.mxu0 %v4011_v36  ;;  %2277 = vmatprep.mubr.msk.bf16.mxu1 %vm2917_vm0, %v4010_v19  ;;  %v2069_v10 = vld [vmem:[%s3252_s27 + $0xc] sm:$0xff] }
 0x20c   : > { %v1040_v59 = vunpack.c.h.bf16 %v2069_v10 }
 0x20d   : > { %1300 = vmatpush1.bf16.msra.mxu0 %v3295_v6  ;;  %2264 = vmatpush3.bf16.msra.mxu1 %v3318_v13  ;;  %v4015_v6 = vld [vmem:[#allocation31_spill] sm:$0xff] }
 0x20e   : > { %1301 = vmatprep.subr.bf16.mxu0 %v3299_v7  ;;  %2265 = vmatprep.subr.bf16.mxu1 %v4010_v19  ;;  %v4016_v7 = vld [vmem:[#allocation32_spill] sm:$0xff] }
 0x211   : > { %1302 = vmatpush1.bf16.msra.mxu0 %v3303_v8  ;;  %2266 = vmatpush3.bf16.msra.mxu1 %v3324_v15  ;;  %v4017_v8 = vld [vmem:[#allocation35_spill] sm:$0xff] }
 0x212   : > { %1303 = vmatprep.subr.bf16.mxu0 %v3306_v9  ;;  %2267 = vmatprep.subr.bf16.mxu1 %v4010_v19  ;;  %v4018_v9 = vld [vmem:[#allocation33_spill] sm:$0xff] }
 0x215   : > { %1304 = vmatpush1.bf16.msra.mxu0 %v3311_v11  ;;  %2268 = vmatpush3.bf16.msra.mxu1 %v3334_v18  ;;  %v1039_v11 = vunpack.c.l.bf16 %v2069_v10  ;;  %v1041_v10 = vunpack.c.h.bf16 %v4019_v47 }
 0x216   : > { %1305 = vmatprep.subr.bf16.mxu0 %v3315_v12  ;;  %2269 = vmatprep.subr.bf16.mxu1 %v4010_v19 }
 0x219   : > { %1306 = vmatpush1.bf16.msra.mxu0 %v3320_v14  ;;  %2270 = vmatpush3.bf16.msra.mxu1 %v3344_v21 }
 0x21a   : > { %1307 = vmatprep.subr.bf16.mxu0 %v3327_v16  ;;  %2271 = vmatprep.subr.bf16.mxu1 %v4010_v19 }
 0x21d   : > { %1308 = vmatpush1.bf16.msra.mxu0 %v3331_v17  ;;  %2272 = vmatpush3.bf16.msra.mxu1 %v3356_v25 }
 0x21e   : > { %1309 = vmatprep.subr.bf16.mxu0 %v4012_v1  ;;  %2273 = vmatprep.subr.bf16.mxu1 %v4010_v19 }
 0x221   : > { %1310 = vmatpush1.bf16.msra.mxu0 %v4013_v2  ;;  %2274 = vmatpush3.bf16.msra.mxu1 %v4014_v5 }
 0x222   : > { %1311 = vmatprep.subr.bf16.mxu0 %v4015_v6  ;;  %2275 = vmatprep.subr.bf16.mxu1 %v4010_v19 }
 0x225   : > { %1312 = vmatpush1.bf16.msra.mxu0 %v4016_v7  ;;  %2276 = vmatpush3.bf16.msra.mxu1 %v4017_v8 }
 0x226   : > { %1401 = vmatprep.subr.bf16.mxu0 %v4018_v9  ;;  %2281 = vmatprep.subr.bf16.mxu1 %v4010_v19 }
 0x2bb   : > { %v1085_v12 = vpop.f32.mrb[8].mxu0  ;;  %v1126_v14 = vpop.f32.mrb[8].mxu1 }
 0x2bc   : > { %v1132_v40 = vadd.f32 %v1085_v12, %v1039_v11  ;;  %v1087_v42 = vpop.f32.mrb[9].mxu0  ;;  %v2239_v46 = vpop.f32.mrb[9].mxu1  ;;  %v4020_v11 = vld [vmem:[#allocation36_spill] sm:$0xff] }
 0x2bd   : > { %v1089_v22 = vpop.f32.mrb[10].mxu0  ;;  %v1129_v23 = vpop.f32.mrb[10].mxu1  ;;  %v1139_v0 = vadd.f32 %v1087_v42, %v1040_v59  ;;  %v1146_v12 = vadd.f32 %v4020_v11, %v1126_v14  ;;  %v1048_v42 = vunpack.c.h.bf16 %v2071_v29 }
 0x2be   : > { %v2073_v51 = vmul.f32 -1.442695, %v1132_v40  ;;  %v1090_v26 = vpop.f32.mrb[11].mxu0  ;;  %v2240_v3 = vpop.f32.mrb[11].mxu1  ;;  %v1047_v40 = vunpack.c.l.bf16 %v2071_v29 }
 0x2bf   : > { %v2074_v61 = vmul.f32 -1.442695, %v1139_v0 }
 0x2c0   : > { %2549 = vpow2.f32 %v2073_v51 }
 0x2c1   : > { %2551 = vpow2.f32 %v2074_v61 }
 0x2ca   : > { %v2550_v32 = vpop.eup %2549 }
 0x2cb   : > { %v1136_v27 = vadd.f32 1.0, %v2550_v32  ;;  %v2552_v34 = vpop.eup %2551 }
 0x2cc   : > { %v1143_v35 = vadd.f32 1.0, %v2552_v34 }
 0x2cd   : > { %2553 = vrcp.f32 %v1136_v27 }
 0x2ce   : > { %2555 = vrcp.f32 %v1143_v35 }
 0x2d7   : > { %v2554_v46 = vpop.eup %2553 }
 0x2d8   : > { %v1147_v22 = vmul.f32 %v2554_v46, %v1146_v12  ;;  %v2556_v14 = vpop.eup %2555 }
 0x2d9   : > { %v1150_v35 = vsub.f32 1.0, %v2556_v14  ;;  %v1152_v29 = vmul.f32 %v2556_v14, %v3547_v20 }
 0x2da   : > { %v1148_v23 = vadd.f32 %v1147_v22, %v1041_v10  ;;  %v1267_v10 = vpop.permute.xlu1 %1266 }
 0x2db   : > { %v1189_v26 = vpop.f32.mrb[12].mxu0  ;;  %v1230_v59 = vpop.f32.mrb[12].mxu1  ;;  %vm1268_vm11 = vcmp.eq.s32.totalorder %v1267_v10, 1  ;;  %v2613_v10 = vld [vmem:[#allocation9 + $0x18] ss:$12 sps:$4 sm:$0xff]  }
 0x2dc   : > { %2557 = vtanh.f32 %v1148_v23  ;;  %v1236_v51 = vadd.f32 %v1189_v26, %v1047_v40  ;;  %v1191_v3 = vpop.f32.mrb[13].mxu0  ;;  %v2259_v0 = vpop.f32.mrb[13].mxu1 }
 0x2dd   : > { %v1193_v61 = vpop.f32.mrb[14].mxu0  ;;  %v1233_v32 = vpop.f32.mrb[14].mxu1  ;;  %v1243_v47 = vadd.f32 %v1191_v3, %v1048_v42 }
 0x2de   : > { %v2075_v27 = vmul.f32 -1.442695, %v1236_v51  ;;  %v1194_v34 = vpop.f32.mrb[15].mxu0  ;;  %v2260_v9 = vpop.f32.mrb[15].mxu1 }
 0x2df   : > { %v2076_v12 = vmul.f32 -1.442695, %v1243_v47  ;;  %v1275_v32 = vpop.permute.xlu1 %1274 }
 0x2e0   : > { %2559 = vpow2.f32 %v2075_v27  ;;  %vm1276_vm12 = vcmp.eq.s32.totalorder %v1275_v32, 1 }
 0x2e1   : > { %2561 = vpow2.f32 %v2076_v12  ;;  %v2609_v12 = vld [vmem:[#allocation9 + $0x4] ss:$12 sps:$4 sm:$0xff]  }
 0x2e6   : > { %v2558_v46 = vpop.eup %2557 }
 0x2e7   : > { %v1151_v22 = vmul.f32 %v2558_v46, %v1150_v35  ;;  %v2610_v35 = vld [vmem:[#allocation9] ss:$12 sps:$4 sm:$0xff]   ;;  %v2611_v46 = vld [vmem:[#allocation9 + $0x8] ss:$12 sps:$4 sm:$0xff]  }
 0x2e9   : > { %v1153_v40 = vadd.f32 %v1152_v29, %v1151_v22  ;;  %v2614_v22 = vld [vmem:[#allocation9 + $0x34] ss:$12 sps:$4 sm:$0xff]   ;;  %v2615_v29 = vld [vmem:[#allocation9 + $0x30] ss:$12 sps:$4 sm:$0xff]  }
 0x2ea   : > { %v2560_v23 = vpop.eup %2559 }
 0x2eb   : > { %v1240_v26 = vadd.f32 1.0, %v2560_v23  ;;  %v1269_v0 = vsel %vm1268_vm11, %v1153_v40, 0.0  ;;  %v3645_v51 = vsel %vm1268_vm11, %v1153_v40, %v3547_v20  ;;  %v2562_v42 = vpop.eup %2561  ;;  %v2616_v40 = vld [vmem:[#allocation9 + $0x4c] ss:$12 sps:$4 sm:$0xff]   ;;  %v2617_v23 = vld [vmem:[#allocation9 + $0x48] ss:$12 sps:$4 sm:$0xff]  }
 0x2ec   : > { %2077 = vst [vmem:[%s3277_s3 + $0x8] sm:$0xff] %v1269_v0  ;;  %v1296_v9 = vpack.c.bf16 %v3645_v51, %v3645_v51  ;;  %v1247_v20 = vadd.f32 1.0, %v2562_v42 }
 0x2ed   : > { %2563 = vrcp.f32 %v1240_v26  ;;  %v2618_v26 = vld [vmem:[#allocation9 + $0x64] ss:$12 sps:$4 sm:$0xff]  }
 0x2ee   : > { %1330 = vmatmul.mubr.bf16.vlgmr.msra.gmra.mrb[16].mxu0 %v1296_v9  ;;  %2278 = vmatmul.mubr.bf16.vlgmr.msra.gmra.mrb[16].mxu1 %v1296_v9  ;;  %2565 = vrcp.f32 %v1247_v20 }
 0x2ef   : > { %1402 = vmatpush1.bf16.msra.mxu0 %v3370_v28  ;;  %2282 = vmatpush3.bf16.msra.mxu1 %v3405_v38  ;;  %v1049_v28 = vunpack.c.l.bf16 %v3565_v41 }
 0x2f0   : > { %1403 = vmatprep.subr.bf16.mxu0 %v3376_v30  ;;  %2283 = vmatprep.subr.bf16.mxu1 %v4010_v19  ;;  %v1250_v30 = vadd.f32 %v3559_v24, %v1230_v59 }
 0x2f1   : > { %1433 = vmatprep.mubr.bf16.mxu0 %v4011_v36  ;;  %2297 = vmatprep.mubr.msk.bf16.mxu1 %vm2917_vm0, %v4010_v19 }
 0x2f3   : > { %1404 = vmatpush1.bf16.msra.mxu0 %v3383_v31  ;;  %2284 = vmatpush3.bf16.msra.mxu1 %v3420_v44 }
 0x2f4   : > { %1405 = vmatprep.subr.bf16.mxu0 %v3390_v33  ;;  %2285 = vmatprep.subr.bf16.mxu1 %v4010_v19 }
 0x2f7   : > { %v2564_v3 = vpop.eup %2563  ;;  %1406 = vmatpush1.bf16.msra.mxu0 %v3402_v37  ;;  %2286 = vmatpush3.bf16.msra.mxu1 %v3434_v49 }
 0x2f8   : > { %v1251_v61 = vmul.f32 %v2564_v3, %v1250_v30  ;;  %1407 = vmatprep.subr.bf16.mxu0 %v3410_v39  ;;  %2287 = vmatprep.subr.bf16.mxu1 %v4010_v19  ;;  %v2566_v33 = vpop.eup %2565 }
 0x2f9   : > { %v1254_v37 = vsub.f32 1.0, %v2566_v33  ;;  %v1256_v59 = vmul.f32 %v2566_v33, %v3597_v4  ;;  %v2081_v33 = vld [vmem:[%s3262_s21 + $0xc] sm:$0xff] }
 0x2fa   : > { %v1252_v31 = vadd.f32 %v1251_v61, %v1049_v28  ;;  %v3720_v61 = vld [vmem:[%s3252_s27 + $0x20] ss:$12 sps:$4 sm:$0xff]   ;;  %v1293_v32 = vunpack.c.l.bf16 %v2081_v33 }
 0x2fb   : > { %1408 = vmatpush1.bf16.msra.mxu0 %v3417_v43  ;;  %2288 = vmatpush3.bf16.msra.mxu1 %v3446_v53 }
 0x2fc   : > { %2567 = vtanh.f32 %v1252_v31  ;;  %1409 = vmatprep.subr.bf16.mxu0 %v3424_v45  ;;  %2289 = vmatprep.subr.bf16.mxu1 %v4010_v19 }
 0x2ff   : > { %1410 = vmatpush1.bf16.msra.mxu0 %v3431_v48  ;;  %2290 = vmatpush3.bf16.msra.mxu1 %v3456_v56 }
 0x300   : > { %1411 = vmatprep.subr.bf16.mxu0 %v3438_v50  ;;  %2291 = vmatprep.subr.bf16.mxu1 %v4010_v19 }
 0x303   : > { %1412 = vmatpush1.bf16.msra.mxu0 %v3443_v52  ;;  %2292 = vmatpush3.bf16.msra.mxu1 %v3468_v60 }
 0x304   : > { %1413 = vmatprep.subr.bf16.mxu0 %v3449_v54  ;;  %2293 = vmatprep.subr.bf16.mxu1 %v4010_v19 }
 0x306   : > { %v2568_v39 = vpop.eup %2567 }
 0x307   : > { %v1255_v41 = vmul.f32 %v2568_v39, %v1254_v37  ;;  %1414 = vmatpush1.bf16.msra.mxu0 %v3453_v55  ;;  %2294 = vmatpush3.bf16.msra.mxu1 %v3476_v62  ;;  %v1288_v37 = vunpack.c.l.bf16 %v3720_v61 }
 0x308   : > { %1415 = vmatprep.subr.bf16.mxu0 %v3459_v57  ;;  %2295 = vmatprep.subr.bf16.mxu1 %v4010_v19 }
 0x309   : > { %v1257_v27 = vadd.f32 %v1256_v59, %v1255_v41 }
 0x30b   : > { %v1277_v34 = vsel %vm1276_vm12, %v1257_v27, 0.0  ;;  %v3685_v47 = vsel %vm1276_vm12, %v1257_v27, %v3597_v4  ;;  %1416 = vmatpush1.bf16.msra.mxu0 %v3463_v58  ;;  %2296 = vmatpush3.bf16.msra.mxu1 %v3481_v63  ;;  %v2612_v4 = vld [vmem:[#allocation9 + $0x1c] ss:$12 sps:$4 sm:$0xff]  }
 0x30c   : > { %2078 = vst [vmem:[%s3279_s25 + $0x10] sm:$0xff] %v1277_v34  ;;  %v1400_v14 = vpack.c.bf16 %v3685_v47, %v3685_v47  ;;  %1543 = vmatprep.subr.bf16.mxu0 %v2609_v12  ;;  %2301 = vmatprep.subr.bf16.mxu1 %v4010_v19  ;;  %v1294_v12 = vunpack.c.h.bf16 %v2081_v33 }
 0x30e   : > { %1434 = vmatmul.mubr.bf16.vlgmr.msra.gmra.mrb[20].mxu0 %v1400_v14  ;;  %2298 = vmatmul.mubr.bf16.vlgmr.msra.gmra.mrb[20].mxu1 %v1400_v14 }
 0x30f   : > { %1544 = vmatpush1.bf16.msra.mxu0 %v2610_v35  ;;  %2302 = vmatpush3.bf16.msra.mxu1 %v2611_v46 }
 0x310   : > { %1545 = vmatprep.subr.bf16.mxu0 %v2612_v4  ;;  %2303 = vmatprep.subr.bf16.mxu1 %v4010_v19 }
 0x311   : > { %1575 = vmatprep.mubr.bf16.mxu0 %v4011_v36  ;;  %2317 = vmatprep.mubr.msk.bf16.mxu1 %vm2917_vm0, %v4010_v19 }
 0x313   : > { %1546 = vmatpush1.bf16.msra.mxu0 %v2613_v10  ;;  %2304 = vmatpush3.bf16.msra.mxu1 %v3318_v13  ;;  %v2619_v13 = vld [vmem:[#allocation9 + $0x60] ss:$12 sps:$4 sm:$0xff]  }
 0x314   : > { %1547 = vmatprep.subr.bf16.mxu0 %v2614_v22  ;;  %2305 = vmatprep.subr.bf16.mxu1 %v4010_v19 }
 0x317   : > { %1548 = vmatpush1.bf16.msra.mxu0 %v2615_v29  ;;  %2306 = vmatpush3.bf16.msra.mxu1 %v3324_v15  ;;  %v4021_v15 = vld [vmem:[#allocation33_spill] sm:$0xff] }
 0x318   : > { %1549 = vmatprep.subr.bf16.mxu0 %v2616_v40  ;;  %2307 = vmatprep.subr.bf16.mxu1 %v4010_v19 }
 0x31b   : > { %1550 = vmatpush1.bf16.msra.mxu0 %v2617_v23  ;;  %2308 = vmatpush3.bf16.msra.mxu1 %v3334_v18 }
 0x31c   : > { %1551 = vmatprep.subr.bf16.mxu0 %v2618_v26  ;;  %2309 = vmatprep.subr.bf16.mxu1 %v4010_v19 }
 0x31f   : > { %1552 = vmatpush1.bf16.msra.mxu0 %v2619_v13  ;;  %2310 = vmatpush3.bf16.msra.mxu1 %v3344_v21 }
 0x320   : > { %1553 = vmatprep.subr.bf16.mxu0 %v3327_v16  ;;  %2311 = vmatprep.subr.bf16.mxu1 %v4010_v19  ;;  %v2079_v16 = vld [vmem:[%s3252_s27 + $0x18] sm:$0xff] }
 0x323   : > { %1554 = vmatpush1.bf16.msra.mxu0 %v3331_v17  ;;  %2312 = vmatpush3.bf16.msra.mxu1 %v3356_v25  ;;  %v1286_v17 = vunpack.c.l.bf16 %v2079_v16  ;;  %v1287_v25 = vunpack.c.h.bf16 %v2079_v16 }
 0x324   : > { %1555 = vmatprep.subr.bf16.mxu0 %v4012_v1  ;;  %2313 = vmatprep.subr.bf16.mxu1 %v4010_v19 }
 0x327   : > { %1556 = vmatpush1.bf16.msra.mxu0 %v4013_v2  ;;  %2314 = vmatpush3.bf16.msra.mxu1 %v4014_v5 }
 0x328   : > { %1557 = vmatprep.subr.bf16.mxu0 %v4015_v6  ;;  %2315 = vmatprep.subr.bf16.mxu1 %v4010_v19 }
 0x32b   : > { %1558 = vmatpush1.bf16.msra.mxu0 %v4016_v7  ;;  %2316 = vmatpush3.bf16.msra.mxu1 %v4017_v8 }
 0x32c   : > { %1647 = vmatprep.subr.bf16.mxu0 %v4021_v15  ;;  %2321 = vmatprep.subr.bf16.mxu1 %v4010_v19 }
 0x3c1   : > { %v1331_v18 = vpop.f32.mrb[16].mxu0  ;;  %v1372_v21 = vpop.f32.mrb[16].mxu1 }
 0x3c2   : > { %v1378_v1 = vadd.f32 %v1331_v18, %v1286_v17  ;;  %v1333_v2 = vpop.f32.mrb[17].mxu0  ;;  %v2279_v5 = vpop.f32.mrb[17].mxu1  ;;  %v1392_v39 = vadd.f32 %v4020_v11, %v1372_v21 }
 0x3c3   : > { %v1335_v6 = vpop.f32.mrb[18].mxu0  ;;  %v1375_v0 = vpop.f32.mrb[18].mxu1  ;;  %v1385_v8 = vadd.f32 %v1333_v2, %v1287_v25 }
 0x3c4   : > { %v2083_v9 = vmul.f32 -1.442695, %v1378_v1  ;;  %v1336_v7 = vpop.f32.mrb[19].mxu0  ;;  %v2280_v42 = vpop.f32.mrb[19].mxu1 }
 0x3c5   : > { %v2084_v20 = vmul.f32 -1.442695, %v1385_v8  ;;  %v1513_v25 = vpop.permute.xlu0 %1512  ;;  %v2620_v7 = vld [vmem:[#allocation10] ss:$12 sps:$4 sm:$0xff]   ;;  %v2621_v42 = vld [vmem:[#allocation10 + $0x1c] ss:$12 sps:$4 sm:$0xff]  }
 0x3c6   : > { %2569 = vpow2.f32 %v2083_v9  ;;  %vm1514_vm13 = vcmp.eq.s32.totalorder %v1513_v25, 1 }
 0x3c7   : > { %2571 = vpow2.f32 %v2084_v20  ;;  %v2622_v20 = vld [vmem:[#allocation10 + $0x18] ss:$12 sps:$4 sm:$0xff]  }
 0x3d0   : > { %v2570_v28 = vpop.eup %2569 }
 0x3d1   : > { %v1382_v30 = vadd.f32 1.0, %v2570_v28  ;;  %v2572_v3 = vpop.eup %2571 }
 0x3d2   : > { %v1389_v31 = vadd.f32 1.0, %v2572_v3 }
 0x3d3   : > { %2573 = vrcp.f32 %v1382_v30  ;;  %v2623_v30 = vld [vmem:[#allocation10 + $0x34] ss:$12 sps:$4 sm:$0xff]  }
 0x3d4   : > { %2575 = vrcp.f32 %v1389_v31 }
 0x3dd   : > { %v2574_v41 = vpop.eup %2573 }
 0x3de   : > { %v1393_v59 = vmul.f32 %v2574_v41, %v1392_v39  ;;  %v2576_v13 = vpop.eup %2575 }
 0x3df   : > { %v1396_v16 = vsub.f32 1.0, %v2576_v13  ;;  %v1398_v18 = vmul.f32 %v2576_v13, %v3645_v51 }
 0x3e0   : > { %v1394_v27 = vadd.f32 %v1393_v59, %v1288_v37  ;;  %v2625_v37 = vld [vmem:[#allocation10 + $0x4c] ss:$12 sps:$4 sm:$0xff]  }
 0x3e1   : > { %v1435_v34 = vpop.f32.mrb[20].mxu0  ;;  %v1476_v14 = vpop.f32.mrb[20].mxu1 }
 0x3e2   : > { %2577 = vtanh.f32 %v1394_v27  ;;  %v1482_v35 = vadd.f32 %v1435_v34, %v1293_v32  ;;  %v1437_v46 = vpop.f32.mrb[21].mxu0  ;;  %v2299_v4 = vpop.f32.mrb[21].mxu1  ;;  %v1496_v3 = vadd.f32 %v3559_v24, %v1476_v14 }
 0x3e3   : > { %v1439_v10 = vpop.f32.mrb[22].mxu0  ;;  %v1479_v22 = vpop.f32.mrb[22].mxu1  ;;  %v1489_v26 = vadd.f32 %v1437_v46, %v1294_v12 }
 0x3e4   : > { %v2085_v29 = vmul.f32 -1.442695, %v1482_v35  ;;  %v1440_v40 = vpop.f32.mrb[23].mxu0  ;;  %v2300_v23 = vpop.f32.mrb[23].mxu1  ;;  %v1537_v22 = vld [vmem:[%s3262_s21] sm:$0xff] }
 0x3e5   : > { %v2086_v15 = vmul.f32 -1.442695, %v1489_v26  ;;  %v1539_v13 = vunpack.c.l.bf16 %v1537_v22 }
 0x3e6   : > { %2579 = vpow2.f32 %v2085_v29  ;;  %v1534_v29 = vunpack.c.h.bf16 %v3720_v61 }
 0x3e7   : > { %2581 = vpow2.f32 %v2086_v15 }
 0x3ec   : > { %v2578_v17 = vpop.eup %2577 }
 0x3ed   : > { %v1397_v21 = vmul.f32 %v2578_v17, %v1396_v16 }
 0x3ef   : > { %v1399_v1 = vadd.f32 %v1398_v18, %v1397_v21  ;;  %v1540_v18 = vunpack.c.h.bf16 %v1537_v22 }
 0x3f0   : > { %v2580_v2 = vpop.eup %2579 }
 0x3f1   : > { %v1486_v5 = vadd.f32 1.0, %v2580_v2  ;;  %v1515_v6 = vsel %vm1514_vm13, %v1399_v1, 0.0  ;;  %v3727_v0 = vsel %vm1514_vm13, %v1399_v1, %v3645_v51  ;;  %v2582_v8 = vpop.eup %2581  ;;  %v3738_v51 = vld [vmem:[%s3262_s21 + $0x8] ss:$12 sps:$4 sm:$0xff]  }
 0x3f2   : > { %2087 = vst [vmem:[%s3277_s3 + $0x10] sm:$0xff] %v1515_v6  ;;  %v1542_v9 = vpack.c.bf16 %v3727_v0, %v3727_v0  ;;  %v1493_v28 = vadd.f32 1.0, %v2582_v8 }
 0x3f3   : > { %2583 = vrcp.f32 %v1486_v5 }
 0x3f4   : > { %1576 = vmatmul.mubr.bf16.vlgmr.msra.gmra.mrb[24].mxu0 %v1542_v9  ;;  %2318 = vmatmul.mubr.bf16.vlgmr.msra.gmra.mrb[24].mxu1 %v1542_v9  ;;  %2585 = vrcp.f32 %v1493_v28  ;;  %v1758_v28 = vpop.permute.xlu0 %1757 }
 0x3f5   : > { %1648 = vmatpush1.bf16.msra.mxu0 %v2620_v7  ;;  %2322 = vmatpush3.bf16.msra.mxu1 %v3405_v38  ;;  %v1295_v38 = vunpack.c.h.bf16 %v3738_v51  ;;  %vm1759_vm15 = vcmp.eq.s32.totalorder %v1758_v28, 1 }
 0x3f6   : > { %1649 = vmatprep.subr.bf16.mxu0 %v2621_v42  ;;  %2323 = vmatprep.subr.bf16.mxu1 %v4010_v19 }
 0x3f7   : > { %1679 = vmatprep.mubr.bf16.mxu0 %v4011_v36  ;;  %2337 = vmatprep.mubr.msk.bf16.mxu1 %vm2917_vm0, %v4010_v19  ;;  %v2624_v36 = vld [vmem:[#allocation10 + $0x30] ss:$12 sps:$4 sm:$0xff]  }
 0x3f9   : > { %1650 = vmatpush1.bf16.msra.mxu0 %v2622_v20  ;;  %2324 = vmatpush3.bf16.msra.mxu1 %v3420_v44 }
 0x3fa   : > { %1651 = vmatprep.subr.bf16.mxu0 %v2623_v30  ;;  %2325 = vmatprep.subr.bf16.mxu1 %v4010_v19 }
 0x3fd   : > { %v2584_v31 = vpop.eup %2583  ;;  %1652 = vmatpush1.bf16.msra.mxu0 %v2624_v36  ;;  %2326 = vmatpush3.bf16.msra.mxu1 %v3434_v49 }
 0x3fe   : > { %v1497_v33 = vmul.f32 %v2584_v31, %v1496_v3  ;;  %1653 = vmatprep.subr.bf16.mxu0 %v2625_v37  ;;  %2327 = vmatprep.subr.bf16.mxu1 %v4010_v19  ;;  %v2586_v49 = vpop.eup %2585 }
 0x400   : > { %v1498_v44 = vadd.f32 %v1497_v33, %v1295_v38 }
 0x401   : > { %1654 = vmatpush1.bf16.msra.mxu0 %v3417_v43  ;;  %2328 = vmatpush3.bf16.msra.mxu1 %v3446_v53  ;;  %v1500_v43 = vsub.f32 1.0, %v2586_v49 }
 0x402   : > { %2587 = vtanh.f32 %v1498_v44  ;;  %1655 = vmatprep.subr.bf16.mxu0 %v3424_v45  ;;  %2329 = vmatprep.subr.bf16.mxu1 %v4010_v19 }
 0x405   : > { %1656 = vmatpush1.bf16.msra.mxu0 %v3431_v48  ;;  %2330 = vmatpush3.bf16.msra.mxu1 %v3456_v56  ;;  %v1502_v48 = vmul.f32 %v2586_v49, %v3685_v47 }
 0x406   : > { %1657 = vmatprep.subr.bf16.mxu0 %v3438_v50  ;;  %2331 = vmatprep.subr.bf16.mxu1 %v4010_v19 }
 0x409   : > { %1658 = vmatpush1.bf16.msra.mxu0 %v3443_v52  ;;  %2332 = vmatpush3.bf16.msra.mxu1 %v3468_v60  ;;  %v1521_v52 = vpop.permute.xlu1 %1520 }
 0x40a   : > { %1659 = vmatprep.subr.bf16.mxu0 %v3449_v54  ;;  %2333 = vmatprep.subr.bf16.mxu1 %v4010_v19  ;;  %vm1522_vm14 = vcmp.eq.s32.totalorder %v1521_v52, 1 }
 0x40c   : > { %v2588_v45 = vpop.eup %2587 }
 0x40d   : > { %1660 = vmatpush1.bf16.msra.mxu0 %v3453_v55  ;;  %2334 = vmatpush3.bf16.msra.mxu1 %v3476_v62  ;;  %v1501_v50 = vmul.f32 %v2588_v45, %v1500_v43  ;;  %v1541_v43 = vunpack.c.l.bf16 %v3738_v51 }
 0x40e   : > { %1661 = vmatprep.subr.bf16.mxu0 %v3459_v57  ;;  %2335 = vmatprep.subr.bf16.mxu1 %v4010_v19  ;;  %v2089_v57 = vld [vmem:[%s3252_s27 + $0x24] sm:$0xff] }
 0x40f   : > { %v1503_v53 = vadd.f32 %v1502_v48, %v1501_v50  ;;  %v1532_v60 = vunpack.c.l.bf16 %v2089_v57  ;;  %v1533_v39 = vunpack.c.h.bf16 %v2089_v57 }
 0x411   : > { %1662 = vmatpush1.bf16.msra.mxu0 %v3463_v58  ;;  %2336 = vmatpush3.bf16.msra.mxu1 %v3481_v63  ;;  %v1523_v54 = vsel %vm1522_vm14, %v1503_v53, 0.0  ;;  %v3766_v56 = vsel %vm1522_vm14, %v1503_v53, %v3685_v47 }
 0x412   : > { %2088 = vst [vmem:[%s3279_s25 + $0x8] sm:$0xff] %v1523_v54  ;;  %v1646_v55 = vpack.c.bf16 %v3766_v56, %v3766_v56 }
 0x414   : > { %1680 = vmatmul.mubr.bf16.vlgmr.msra.gmra.mrb[28].mxu0 %v1646_v55  ;;  %2338 = vmatmul.mubr.bf16.vlgmr.msra.gmra.mrb[28].mxu1 %v1646_v55 }
 0x4c7   : > { %v1577_v62 = vpop.f32.mrb[24].mxu0  ;;  %v1618_v19 = vpop.f32.mrb[24].mxu1 }
 0x4c8   : > { %v1624_v41 = vadd.f32 %v1577_v62, %v1532_v60  ;;  %v1579_v59 = vpop.f32.mrb[25].mxu0  ;;  %v2319_v58 = vpop.f32.mrb[25].mxu1  ;;  %v1638_v40 = vadd.f32 %v4020_v11, %v1618_v19 }
 0x4c9   : > { %v1581_v63 = vpop.f32.mrb[26].mxu0  ;;  %v1621_v32 = vpop.f32.mrb[26].mxu1  ;;  %v1631_v14 = vadd.f32 %v1579_v59, %v1533_v39 }
 0x4ca   : > { %v2091_v27 = vmul.f32 -1.442695, %v1624_v41  ;;  %v1582_v47 = vpop.f32.mrb[27].mxu0  ;;  %v2320_v34 = vpop.f32.mrb[27].mxu1 }
 0x4cb   : > { %v2092_v12 = vmul.f32 -1.442695, %v1631_v14 }
 0x4cc   : > { %2589 = vpow2.f32 %v2091_v27 }
 0x4cd   : > { %2591 = vpow2.f32 %v2092_v12 }
 0x4d6   : > { %v2590_v35 = vpop.eup %2589 }
 0x4d7   : > { %v1628_v46 = vadd.f32 1.0, %v2590_v35  ;;  %v2592_v4 = vpop.eup %2591 }
 0x4d8   : > { %v1635_v10 = vadd.f32 1.0, %v2592_v4 }
 0x4d9   : > { %2593 = vrcp.f32 %v1628_v46 }
 0x4da   : > { %2595 = vrcp.f32 %v1635_v10 }
 0x4e3   : > { %v2594_v23 = vpop.eup %2593 }
 0x4e4   : > { %v1639_v26 = vmul.f32 %v2594_v23, %v1638_v40  ;;  %v2596_v11 = vpop.eup %2595 }
 0x4e5   : > { %v1642_v8 = vsub.f32 1.0, %v2596_v11  ;;  %v1644_v38 = vmul.f32 %v2596_v11, %v3727_v0 }
 0x4e6   : > { %v1640_v15 = vadd.f32 %v1639_v26, %v1534_v29 }
 0x4e7   : > { %v1681_v16 = vpop.f32.mrb[28].mxu0  ;;  %v1722_v17 = vpop.f32.mrb[28].mxu1 }
 0x4e8   : > { %2597 = vtanh.f32 %v1640_v15  ;;  %v1728_v21 = vadd.f32 %v1681_v16, %v1539_v13  ;;  %v1683_v25 = vpop.f32.mrb[29].mxu0  ;;  %v2339_v1 = vpop.f32.mrb[29].mxu1  ;;  %v1742_v45 = vadd.f32 %v3559_v24, %v1722_v17 }
 0x4e9   : > { %v1685_v2 = vpop.f32.mrb[30].mxu0  ;;  %v1725_v5 = vpop.f32.mrb[30].mxu1  ;;  %v1735_v61 = vadd.f32 %v1683_v25, %v1540_v18 }
 0x4ea   : > { %v2093_v6 = vmul.f32 -1.442695, %v1728_v21  ;;  %v1686_v9 = vpop.f32.mrb[31].mxu0  ;;  %v2340_v7 = vpop.f32.mrb[31].mxu1 }
 0x4eb   : > { %v2094_v42 = vmul.f32 -1.442695, %v1735_v61 }
 0x4ec   : > { %2599 = vpow2.f32 %v2093_v6 }
 0x4ed   : > { %2601 = vpow2.f32 %v2094_v42 }
 0x4f2   : > { %v2598_v20 = vpop.eup %2597 }
 0x4f3   : > { %v1643_v30 = vmul.f32 %v2598_v20, %v1642_v8 }
 0x4f5   : > { %v1645_v3 = vadd.f32 %v1644_v38, %v1643_v30 }
 0x4f6   : > { %v2600_v31 = vpop.eup %2599 }
 0x4f7   : > { %v1760_v36 = vsel %vm1759_vm15, %v1645_v3, 0.0  ;;  %v1770_v33 = vsel %vm1759_vm15, %v1645_v3, %v3727_v0  ;;  %v1732_v37 = vadd.f32 1.0, %v2600_v31  ;;  %v2602_v44 = vpop.eup %2601  ;;  %v1766_v0 = vpop.permute.xlu1 %1765 }
 0x4f8   : > { %2095 = vst [vmem:[%s3277_s3 + $0x18] sm:$0xff] %v1760_v36  ;;  %1772 = vst [vmem:[#allocation2] sm:$0xff] %v1770_v33  ;;  %v1739_v49 = vadd.f32 1.0, %v2602_v44  ;;  %vm1767_vm0 = vcmp.eq.s32.totalorder %v1766_v0, 1 }
 0x4f9   : > { %2603 = vrcp.f32 %v1732_v37  ;;  %1778 = vst [vmem:[#allocation15] sm:$0xff] (!%p2096_p2), %v1770_v33 }
 0x4fa   : > { %2605 = vrcp.f32 %v1739_v49 }
 0x503   : > { %v2604_v48 = vpop.eup %2603 }
 0x504   : > { %v1743_v50 = vmul.f32 %v2604_v48, %v1742_v45  ;;  %v2606_v53 = vpop.eup %2605 }
 0x505   : > { %v1746_v54 = vsub.f32 1.0, %v2606_v53  ;;  %v1748_v60 = vmul.f32 %v2606_v53, %v3766_v56 }
 0x506   : > { %v1744_v52 = vadd.f32 %v1743_v50, %v1541_v43 }
 0x508   : > { %2607 = vtanh.f32 %v1744_v52 }
 0x512   : > { %v2608_v55 = vpop.eup %2607  ;;  %1777 = sbr.rel (%p2096_p2) target bundleno = 1306 (0x51a), region = 72 }
 0x513   : > { %v1747_v57 = vmul.f32 %v2608_v55, %v1746_v54 }
 0x515   : > { %v1749_v62 = vadd.f32 %v1748_v60, %v1747_v57 }
 0x517   : > { %v1768_v19 = vsel %vm1767_vm0, %v1749_v62, 0.0  ;;  %v1771_v51 = vsel %vm1767_vm0, %v1749_v62, %v3766_v56 }
 0x518   : > { %1769 = vst [vmem:[%s3279_s25] sm:$0xff] %v1768_v19  ;;  %1773 = vst [vmem:[#allocation3] sm:$0xff] %v1771_v51 }
 0x519   : > { %1780 = vst [vmem:[#allocation15 + $0x8] sm:$0xff] %v1771_v51 }
 0x51a PF: > { %s2108_s27 = sshll.u32 %s516_s19, 9  ;;  %s1817_s7 = sshll.u32 %s3279_s25, 4  ;;  %s3792_s7 = int_to_ptr.vmem [resolvable:$true] %s1817_s7 }
 0x51b   : > { %s3789_s30 = scalar_lea.hbm %s3922_s8, %s2108_s27  ;;  %s3796_s17 = scalar_lea.sflag [#allocation14], %s378_s22 }
 0x51c   : > { %s2742_s9 = scalar_lea.vmem %s3792_s7, 512  ;;  %p4022_p7 = scmp.ne.s32.totalorder %s3991_s23, 0 }
 0x51d   : > { %p2743_p11 = scmp.ne.s32.totalorder %s3792_s7, %s2742_s9  ;;  %s2918_s19 = smov [#allocation13]  }
 0x51e   : > { %s2746_s12 = sshll.u32 %s2918_s19, 4  ;;  %s2747_s12 = int_to_ptr.vmem [resolvable:$false] %s2746_s12 }
 0x51f   : > { %p2744_p5 = pnand %p2743_p11, %p4022_p7  ;;  %s2748_s18 = scalar_lea.vmem %s2747_s12, 1024 }
 0x520   : > { %p2749_p6 = scmp.lt.s32.totalorder %s3792_s7, %s2747_s12  ;;  %p2750_p8 = scmp.lt.s32.totalorder %s2748_s18, %s2742_s9 }
 0x521   : > { %p2745_p4 = pneg %p2744_p5 }
 0x522   : > { %p2751_p1 = por %p2750_p8, %p2749_p6 }
 0x524   : > { %p2752_p12 = pnand %p2751_p1, %p2745_p4 }
 0x526   : > { %2755 = shalt.err (!%p2752_p12)
}
 0x527   : > { %s2756_s22 = scalar_lea.hbm %s3789_s30, 512  ;;  %s2760_s0 = scalar_lea.hbm %s3922_s8, 1536 }
 0x528   : > { %p2757_p0 = scmp.ne.s32.totalorder %s3789_s30, %s2756_s22  ;;  %p2761_p10 = scmp.lt.u32.totalorder %s3789_s30, %s3922_s8 }
 0x529   : > { %p2762_p13 = scmp.lt.u32.totalorder %s2760_s0, %s2756_s22  ;;  %p2764_p11 = scmp.lt.u32.totalorder %s2756_s22, %s3789_s30 }
 0x52a   : > { %p2758_p3 = pnand %p2757_p0, %p4022_p7 }
 0x52b   : > { %p2763_p2 = por %p2762_p13, %p2761_p10 }
 0x52c   : > { %p2759_p9 = pneg %p2758_p3 }
 0x52d   : > { %p2765_p5 = por %p2764_p11, %p2763_p2 }
 0x52f   : > { %p2766_p4 = pnand %p2765_p5, %p2759_p9 }
 0x531   : > { %2769 = shalt.err (!%p2766_p4)
}
 0x532   : > { %s2919_s27 = smov 128   ;;  %s2920_s21 = smov 8  }
 0x533   : > { %2360 = dma.vmem_to_hbm [thread:$0]  (%p4022_p7), %s3792_s7, 512, %s3789_s30, %s3796_s17, %s2919_s27, %s2919_s27, %s2920_s21  }
 0x534   : > { %s2107_s5 = sshll.u32 %s3007_s16, 9  ;;  %s1800_s9 = sshll.u32 %s3277_s3, 4  ;;  %s3830_s9 = int_to_ptr.vmem [resolvable:$true] %s1800_s9 }
 0x535   : > { %s4023_s18 = sld [smem:[#allocation41_spill]]  ;;  %s1782_s25 = scalar_lea.sflag [#allocation6], %s3248_s14 }
 0x536   : > { %s2770_s20 = scalar_lea.vmem %s3830_s9, 512  ;;  %p4024_p8 = scmp.ne.s32.totalorder %s3981_s28, 0 }
 0x537   : > { %p2771_p6 = scmp.ne.s32.totalorder %s3830_s9, %s2770_s20  ;;  %s2921_s23 = smov [#allocation12]  }
 0x538   : > { %s2774_s30 = sshll.u32 %s2921_s23, 4  ;;  %s2775_s30 = int_to_ptr.vmem [resolvable:$false] %s2774_s30 }
 0x539   : > { %p2772_p1 = pnand %p2771_p6, %p4024_p8  ;;  %s2776_s3 = scalar_lea.vmem %s2775_s30, 1024 }
 0x53a   : > { %p2777_p7 = scmp.lt.s32.totalorder %s3830_s9, %s2775_s30  ;;  %p2778_p0 = scmp.lt.s32.totalorder %s2776_s3, %s2770_s20 }
 0x53b   : > { %s3828_s22 = scalar_lea.hbm %s4023_s18, %s2107_s5  ;;  %p2773_p12 = pneg %p2772_p1 }
 0x53c   : > { %p2779_p3 = por %p2778_p0, %p2777_p7 }
 0x53e   : > { %p2780_p9 = pnand %p2779_p3, %p2773_p12 }
 0x540   : > { %2783 = shalt.err (!%p2780_p9)
}
 0x541   : > { %s2784_s7 = scalar_lea.hbm %s3828_s22, 512  ;;  %s2788_s24 = scalar_lea.hbm %s4023_s18, 1536 }
 0x542   : > { %p2785_p10 = scmp.ne.s32.totalorder %s3828_s22, %s2784_s7  ;;  %p2789_p11 = scmp.lt.u32.totalorder %s3828_s22, %s4023_s18 }
 0x543   : > { %p2790_p5 = scmp.lt.u32.totalorder %s2788_s24, %s2784_s7  ;;  %p2792_p6 = scmp.lt.u32.totalorder %s2784_s7, %s3828_s22 }
 0x544   : > { %p2786_p13 = pnand %p2785_p10, %p4024_p8 }
 0x545   : > { %p2791_p4 = por %p2790_p5, %p2789_p11 }
 0x546   : > { %p2787_p2 = pneg %p2786_p13 }
 0x547   : > { %p2793_p1 = por %p2792_p6, %p2791_p4 }
 0x549   : > { %p2794_p12 = pnand %p2793_p1, %p2787_p2 }
 0x54b   : > { %2797 = shalt.err (!%p2794_p12)
}
 0x54c   : > { %2359 = dma.vmem_to_hbm [thread:$0]  (%p4024_p8), %s3830_s9, 512, %s3828_s22, %s1782_s25, %s2919_s27, %s2919_s27, %s2920_s21  }
 0x54d   : > { %s2922_s19 = smov [#allocation15]   ;;  %p4025_p0 = scmp.eq.s32.totalorder %s3007_s16, 2 }
 0x54e   : > { %s1830_s12 = sshll.u32 %s2922_s19, 4  ;;  %s1831_s12 = int_to_ptr.vmem [resolvable:$true] %s1830_s12 }
 0x54f   : > { %s2798_s20 = scalar_lea.vmem %s1831_s12, 256  ;;  %p2805_p10 = scmp.lt.s32.totalorder %s1831_s12, %s1831_s12 }
 0x550   : > { %p2799_p7 = scmp.ne.s32.totalorder %s1831_s12, %s2798_s20  ;;  %p2806_p13 = scmp.lt.s32.totalorder %s2798_s20, %s2798_s20 }
 0x552   : > { %p2800_p3 = pnand %p2799_p7, %p4025_p0  ;;  %p2807_p2 = por %p2806_p13, %p2805_p10 }
 0x554   : > { %p2801_p9 = pneg %p2800_p3 }
 0x556   : > { %p2808_p11 = pnand %p2807_p2, %p2801_p9 }
 0x558   : > { %2811 = shalt.err (!%p2808_p11)
}
 0x559   : > { %s4026_s14 = sld [smem:[#allocation42_spill]]  ;;  %p4028_p5 = pmov %p4025_p0 }
 0x55f   : > { %s4027_s3 = smov %s4026_s14  ;;  %s2812_s30 = scalar_lea.hbm %s4026_s14, 256 }
 0x560   : > { %p2813_p8 = scmp.ne.s32.totalorder %s4027_s3, %s2812_s30  ;;  %p2818_p1 = scmp.lt.u32.totalorder %s2812_s30, %s4027_s3 }
 0x562   : > { %p2814_p4 = pnand %p2813_p8, %p4028_p5 }
 0x564   : > { %p2815_p6 = pneg %p2814_p4 }
 0x566   : > { %p2820_p12 = pnand %p2818_p1, %p2815_p6 }
 0x568   : > { %2823 = shalt.err (!%p2820_p12)
}
 0x569   : > { %p4029_p7 = pmov %p4025_p0 }
 0x56b   : > { %2362 = dma.vmem_to_hbm [thread:$0]  (%p4029_p7), %s1831_s12, 256, %s4027_s3, [#allocation14], %s2919_s27, %s2919_s27, %s2920_s21  }
 0x56c   : > { %2869 = dma.done.wait (%p4025_p0), [#allocation14], 256   ;;  %p4030_p3 = pmov %p4025_p0 }
 0x56e   : > { %2871 = vsyncadd (%p4030_p3), [#allocation14], 4294967040 }
 0x56f PF: > { %s4031_s24 = sld [smem:[#allocation23_spill]]  ;;  %s4032_s26 = sld [smem:[#allocation25_spill]] }
 0x570   : > { %p2395_p9 = scmp.ge.s32.totalorder %s2906_s15, 2 }
 0x575   : > { %s1849_s5 = sand.u32 1, %s4031_s24   ;;  %p4033_p10 = scmp.ne.s32.totalorder %s4032_s26, 0 }
 0x576   : > { %s1850_s19 = scalar_lea.sflag [#allocation6], %s1849_s5 }
 0x577   : > { %p2382_p13 = pnand %p2395_p9, %p4033_p10 }
 0x579   : > { %2873 = dma.done.wait (!%p2382_p13), %s1850_s19, 512  }
 0x57a   : > { %2875 = vsyncadd (!%p2382_p13), %s1850_s19, 4294966784  ;;  %s4034_s20 = sadd.s32 4294967294, %s2906_s15   ;;  %s4035_s28 = sld [smem:[#allocation26_spill]] }
 0x57b   : > { %s1858_s27 = sand.u32 1, %s4034_s20  }
 0x57c   : > { %s1859_s21 = scalar_lea.sflag [#allocation14], %s1858_s27 }
 0x580   : > { %p4036_p2 = scmp.ne.s32.totalorder %s4035_s28, 0 }
 0x582   : > { %p2385_p11 = pnand %p2395_p9, %p4036_p2 }
 0x584   : > { %2877 = dma.done.wait (!%p2385_p11), %s1859_s21, 512  }
 0x585   : > { %2879 = vsyncadd (!%p2385_p11), %s1859_s21, 4294966784  ;;  %s4037_s16 = sld [smem:[#allocation28_spill]]  ;;  %s4038_s23 = sld [smem:[#allocation24_spill]] }
 0x586   : > { %s4039_s14 = sld [smem:[#allocation27_spill]]  ;;  %p30_p8 = scmp.ge.s32.totalorder %s3174_s29, 5  }
 0x587   : > { %s4040_s30 = smov %s2886_s10  ;;  %s4041_s10 = smov %s2890_s11 }
 0x588   : > { %s4043_s12 = smov %s2898_s13  ;;  %s4045_s15 = smov %s3174_s29 }
 0x589   :  { %32 = sbr.rel (!%p30_p8) target bundleno = 18 (0x12), region = 162 }
 0x58b   : > { %s4042_s11 = smov %s4037_s16  ;;  %s4044_s13 = smov %s4038_s23 }
 0x590   :  { %1864 = vsyncpa [#allocation5], 1 }
 0x591   :  { %1866 = vsyncpa [#allocation5 + $0x1], 1 }
 0x592   :  { %1867 = vsyncpa [#allocation8], 1 }
 0x593   :  { %1869 = vsyncpa [#allocation8 + $0x1], 1 }
 0x594   :  { %1870 = vsyncpa [#allocation11], 1 }
 0x595   :  { %1871 = vsyncpa [#allocation6], 1 }
 0x596   :  { %1873 = vsyncpa [#allocation6 + $0x1], 1 }
 0x597   :  { %1874 = vsyncpa [#allocation14], 1 }
 0x598   :  { %1876 = vsyncpa [#allocation14 + $0x1], 1 }

// kernel: tpu_custom_call.1
= control target key start
LH: loop header
LB: loop body
LE: loop exit
PB: predicated region body
PF: predicated region fallthrough
CT: control target
= control target key end

     0   :  { %s3914_s0 = inlined_call_operand.hbm [shape: bf16[96,384], index: 0, kind: input, shape index: {}]   ;;  %s3915_s1 = inlined_call_operand.hbm [shape: bf16[96,384], index: 1, kind: input, shape index: {}]   ;;  %s3916_s2 = inlined_call_operand.vmem [shape: s32[8,1], index: 2, kind: input, shape index: {}]   ;;  %s3917_s3 = inlined_call_operand.hbm [shape: bf16[128,384], index: 3, kind: input, shape index: {}]   ;;  %s3918_s4 = inlined_call_operand.vmem [shape: f32[1,128], index: 4, kind: input, shape index: {}]   ;;  %s3919_s5 = inlined_call_operand.hbm [shape: bf16[128,384], index: 5, kind: input, shape index: {}]   ;;  %s3920_s6 = inlined_call_operand.vmem [shape: f32[1,128], index: 6, kind: input, shape index: {}]   ;;  %s3921_s7 = inlined_call_operand.hbm [shape: f32[96,128], index: 7, kind: output, shape index: {0}]   ;;  %s3922_s8 = inlined_call_operand.hbm [shape: f32[96,128], index: 8, kind: output, shape index: {1}]   ;;  %s3923_s9 = inlined_call_operand.hbm [shape: f32[2,8,128], index: 9, kind: output, shape index: {2}]  }
   0x1   :  { %3963 = sst [smem:[#allocation38_spill]] %s3914_s0 }
   0x2   :  { %3964 = sst [smem:[#allocation39_spill]] %s3917_s3 }
   0x3   :  { %3965 = sst [smem:[#allocation40_spill]] %s3919_s5 }
   0x4   :  { %3966 = sst [smem:[#allocation41_spill]] %s3921_s7 }
   0x5   :  { %3967 = sst [smem:[#allocation42_spill]] %s3923_s9 }
   0x6   :  { %15 = vsyncpa [#allocation5], 0 }
   0x7   :  { %17 = vsyncpa [#allocation5 + $0x1], 0 }
   0x8   :  { %18 = vsyncpa [#allocation8], 0 }
   0x9   :  { %20 = vsyncpa [#allocation8 + $0x1], 0 }
   0xa   :  { %21 = vsyncpa [#allocation11], 0 }
   0xb   :  { %22 = vsyncpa [#allocation6], 0 }
   0xc   :  { %24 = vsyncpa [#allocation6 + $0x1], 0 }
   0xd   :  { %25 = vsyncpa [#allocation14], 0 }
   0xe   :  { %27 = vsyncpa [#allocation14 + $0x1], 0  ;;  %s2973_s30 = smov 0   ;;  %s2975_s10 = smov 0  }
   0xf   :  { %s2977_s11 = smov 0   ;;  %s2979_s12 = smov 0  }
  0x10   :  { %s2981_s13 = smov 0   ;;  %s2983_s14 = smov 0  }
  0x11   :  { %s2985_s15 = smov 0  }
  0x12 LB: > { %3968 = sst [smem:[#allocation23_spill]] %s2894_s12  ;;  %s3007_s16 = sadd.s32 4294967295, %s2906_s15   ;;  %s2906_s15 = sphi %s2985_s15, %s4045_s15   ;;  %s2902_s14 = sphi %s2983_s14, %s4039_s14   ;;  %s2898_s13 = sphi %s2981_s13, %s4044_s13   ;;  %s2894_s12 = sphi %s2979_s12, %s4043_s12   ;;  %s2890_s11 = sphi %s2977_s11, %s4042_s11   ;;  %s2886_s10 = sphi %s2975_s10, %s4041_s10   ;;  %s2882_s30 = sphi %s2973_s30, %s4040_s30  }
  0x13   : > { %3969 = sst [smem:[#allocation24_spill]] %s2902_s14  ;;  %s3924_s17 = sadd.s32 4294967294, %s2906_s15  }
  0x14   : > { %p53_p0 = scmp.ne.s32.totalorder %s2898_s13, %s2894_s12  ;;  %p3928_p1 = scmp.eq.s32.totalorder %s3007_s16, 0 }
  0x15   : > { %p81_p2 = scmp.ne.s32.totalorder %s2886_s10, %s2882_s30  ;;  %p216_p5 = scmp.eq.s32.totalorder %s3924_s17, 2 }
  0x16   : > { %p3017_p4 = por %p3928_p1, %p53_p0  ;;  %p1994_p7 = scmp.ge.s32.totalorder %s2906_s15, 1 }
  0x17   : > { %p3025_p6 = por %p81_p2, %p3928_p1  ;;  %p3030_p8 = por %p216_p5, %p53_p0 }
  0x18   : > { %s3970_s18 = scalar_select %p3017_p4, 1, 0 }
  0x19   : > { %s3971_s19 = scalar_select %p3025_p6, 1, 0 }
  0x1a   : > { %s3972_s20 = scalar_select %p3030_p8, 1, 0 }
  0x1b   : > { %p3034_p9 = por %p216_p5, %p81_p2  ;;  %p272_p10 = scmp.lt.s32.totalorder %s2906_s15, 4 }
  0x1c   : > { %3973 = sst [smem:[#allocation25_spill]] %s3972_s20  ;;  %s2908_s23 = smov [#allocation9]  }
  0x1d   : > { %s3974_s21 = scalar_select %p3034_p9, 1, 0 }
  0x1e   : > { %p3040_p12 = pnand %p1994_p7, %p272_p10  ;;  %s287_s24 = sshll.u32 %s2908_s23, 4  ;;  %s3044_s24 = int_to_ptr.vmem [resolvable:$true] %s287_s24 }
  0x1f   : > { %3975 = sst [smem:[#allocation26_spill]] %s3974_s21  ;;  %s2909_s26 = smov [#allocation10]  }
  0x20   : > { %p2367_p13 = pneg %p3040_p12  ;;  %s303_s27 = sshll.u32 %s2909_s26, 4  ;;  %s3054_s27 = int_to_ptr.vmem [resolvable:$true] %s303_s27 }
  0x21   : > { %s3978_s3 = sld [smem:[#allocation39_spill]] }
  0x22   : > { %p3050_p0 = pnand %p2367_p13, %p3928_p1 }
  0x24   : > { %p2628_p5 = pneg %p3050_p0 }
  0x27   : > { %s2626_s23 = scalar_lea.hbm %s3978_s3, 3072 }
  0x28   : > { %p2627_p2 = scmp.ne.s32.totalorder %s3978_s3, %s2626_s23  ;;  %p2633_p13 = scmp.lt.u32.totalorder %s2626_s23, %s3978_s3 }
  0x2a   : > { %p2629_p7 = pnand %p2628_p5, %p2627_p2 }
  0x2c   : > { %p2630_p10 = pneg %p2629_p7 }
  0x2e   : > { %p2635_p11 = pnand %p2633_p13, %p2630_p10 }
  0x30   : > { %2638 = shalt.err (!%p2635_p11)
}
  0x31   : > { %s2639_s26 = scalar_lea.vmem %s3044_s24, 3072  ;;  %p2647_p8 = scmp.lt.s32.totalorder %s3044_s24, %s3044_s24 }
  0x32   : > { %p2640_p1 = scmp.ne.s32.totalorder %s3044_s24, %s2639_s26  ;;  %p2648_p2 = scmp.lt.s32.totalorder %s2639_s26, %s2639_s26 }
  0x34   : > { %p2642_p3 = pnand %p2640_p1, %p2628_p5  ;;  %p2649_p7 = por %p2648_p2, %p2647_p8 }
  0x36   : > { %p2643_p9 = pneg %p2642_p3 }
  0x38   : > { %p2650_p6 = pnand %p2649_p7, %p2643_p9 }
  0x3a   : > { %2653 = shalt.err (!%p2650_p6)
}
  0x3b   : > { %s3932_s12 = smov 192   ;;  %s3934_s17 = smov 12  }
  0x3c   : > { %2370 = dma.hbm_to_vmem [thread:$0]  (!%p3050_p0), %s3978_s3, 3072, %s3044_s24, [#allocation8], %s3932_s12, %s3932_s12, %s3934_s17  }
  0x3d   : > { %s3979_s5 = sld [smem:[#allocation40_spill]] }
  0x43   : > { %s2654_s23 = scalar_lea.hbm %s3979_s5, 3072 }
  0x44   : > { %p2655_p1 = scmp.ne.s32.totalorder %s3979_s5, %s2654_s23  ;;  %p2661_p8 = scmp.lt.u32.totalorder %s2654_s23, %s3979_s5 }
  0x46   : > { %p2657_p3 = pnand %p2655_p1, %p2628_p5 }
  0x48   : > { %p2658_p6 = pneg %p2657_p3 }
  0x4a   : > { %p2663_p9 = pnand %p2661_p8, %p2658_p6 }
  0x4c   : > { %2666 = shalt.err (!%p2663_p9)
}
  0x4d   : > { %s2667_s24 = scalar_lea.vmem %s3054_s27, 3072  ;;  %p2675_p2 = scmp.lt.s32.totalorder %s3054_s27, %s3054_s27 }
  0x4e   : > { %p2668_p11 = scmp.ne.s32.totalorder %s3054_s27, %s2667_s24  ;;  %p2676_p7 = scmp.lt.s32.totalorder %s2667_s24, %s2667_s24 }
  0x50   : > { %p2670_p10 = pnand %p2668_p11, %p2628_p5  ;;  %p2677_p1 = por %p2676_p7, %p2675_p2 }
  0x52   : > { %p2671_p13 = pneg %p2670_p10 }
  0x54   : > { %p2678_p3 = pnand %p2677_p1, %p2671_p13 }
  0x56   : > { %2681 = shalt.err (!%p2678_p3)
}
  0x57   : > { %2373 = dma.hbm_to_vmem [thread:$0]  (!%p3050_p0), %s3979_s5, 3072, %s3054_s27, [#allocation11], %s3932_s12, %s3932_s12, %s3934_s17  }
  0x58   : > { %p47_p5 = scmp.ne.s32.totalorder %s2902_s14, %s2898_s13  ;;  %p3937_p6 = scmp.eq.s32.totalorder %s2906_s15, 0 }
  0x59   : > { %p3936_p8 = scmp.lt.s32.totalorder %s2906_s15, 3  ;;  %s320_s25 = sand.u32 1, %s2902_s14  }
  0x5a   : > { %p49_p9 = por %p3937_p6, %p47_p5  ;;  %p3980_p11 = scmp.eq.s32.totalorder %s3007_s16, 2 }
  0x5b   : > { %s2341_s20 = smul.u32 48, %s320_s25  ;;  %s3983_s0 = sld [smem:[#allocation38_spill]] }
  0x5c   : > { %p3124_p10 = por %p3980_p11, %p47_p5  ;;  %s2342_s21 = smul.u32 768, %s2906_s15 }
  0x5d   : > { %p3131_p13 = pnand %p3936_p8, %p49_p9  ;;  %s324_s26 = scalar_lea.vmem [#allocation4], %s2341_s20 }
  0x5e   : > { %s3981_s28 = scalar_select %p3124_p10, 1, 0 }
  0x5f   : > { %s332_s24 = sshll.u32 %s324_s26, 4  ;;  %s3142_s7 = scalar_lea.sflag [#allocation5], %s320_s25  ;;  %s3140_s24 = int_to_ptr.vmem [resolvable:$true] %s332_s24 }
  0x60   : > { %p2684_p2 = pneg %p3131_p13 }
  0x61   : > { %s3138_s23 = scalar_lea.hbm %s3983_s0, %s2342_s21  ;;  %s2687_s27 = scalar_lea.hbm %s3983_s0, 2304 }
  0x62   : > { %s2682_s9 = scalar_lea.hbm %s3138_s23, 768  ;;  %p2688_p3 = scmp.lt.u32.totalorder %s3138_s23, %s3983_s0 }
  0x63   : > { %p2683_p0 = scmp.ne.s32.totalorder %s3138_s23, %s2682_s9  ;;  %p2689_p5 = scmp.lt.u32.totalorder %s2687_s27, %s2682_s9 }
  0x64   : > { %p2691_p11 = scmp.lt.u32.totalorder %s2682_s9, %s3138_s23 }
  0x65   : > { %p2685_p7 = pnand %p2684_p2, %p2683_p0  ;;  %p2690_p9 = por %p2689_p5, %p2688_p3 }
  0x67   : > { %p2686_p1 = pneg %p2685_p7  ;;  %p2692_p8 = por %p2691_p11, %p2690_p9 }
  0x69   : > { %p2693_p6 = pnand %p2692_p8, %p2686_p1 }
  0x6b   : > { %2696 = shalt.err (!%p2693_p6)
}
  0x6c   : > { %s2697_s25 = scalar_lea.vmem %s3140_s24, 768  ;;  %s2912_s20 = smov [#allocation4]  }
  0x6d   : > { %p2698_p0 = scmp.ne.s32.totalorder %s3140_s24, %s2697_s25  ;;  %s2702_s26 = sshll.u32 %s2912_s20, 4  ;;  %s2703_s26 = int_to_ptr.vmem [resolvable:$false] %s2702_s26 }
  0x6e   : > { %s2704_s12 = scalar_lea.vmem %s2703_s26, 1536  ;;  %p2705_p4 = scmp.lt.s32.totalorder %s3140_s24, %s2703_s26 }
  0x6f   : > { %p2700_p7 = pnand %p2698_p0, %p2684_p2  ;;  %p2706_p3 = scmp.lt.s32.totalorder %s2704_s12, %s2697_s25 }
  0x71   : > { %p2701_p10 = pneg %p2700_p7  ;;  %p2707_p5 = por %p2706_p3, %p2705_p4 }
  0x73   : > { %p2708_p9 = pnand %p2707_p5, %p2701_p10 }
  0x75   : > { %2711 = shalt.err (!%p2708_p9)
}
  0x76   : > { %s3984_s17 = smov 12   ;;  %s3985_s9 = smov 192  }
  0x77   : > { %2377 = dma.hbm_to_vmem [thread:$0]  (!%p3131_p13), %s3138_s23, 768, %s3140_s24, %s3142_s7, %s3985_s9, %s3985_s9, %s3984_s17  }
  0x78   : > { %s3174_s29 = sadd.s32 1, %s2906_s15   ;;  %s63_s30 = ssub.s32 2, %s2906_s15 }
  0x79   : > { %s37_s21 = ssub.s32 %s2906_s15, %s3174_s29  ;;  %s64_s27 = ssub.s32 2, %s3174_s29 }
  0x7a   : > { %p38_p4 = scmp.eq.s32.totalorder %s37_s21, 0  ;;  %s65_s25 = ssub.s32 %s63_s30, %s64_s27 }
  0x7b   : > { %s68_s20 = sadd.s32 1, %s2890_s11  ;;  %s3986_s26 = sadd.s32 1, %s2902_s14 }
  0x7c   : > { %s3184_s12 = scalar_select %p38_p4, %s2902_s14, %s3986_s26  }
  0x7d   : > { %p66_p6 = scmp.eq.s32.totalorder %s65_s25, 0  ;;  %p75_p8 = scmp.ne.s32.totalorder %s2890_s11, %s2886_s10 }
  0x7e   : > { %3987 = sst [smem:[#allocation27_spill]] %s3184_s12  ;;  %s342_s0 = sand.u32 1, %s2906_s15  }
  0x7f   : > { %s344_s3 = sand.u32 1, %s2890_s11   ;;  %p3989_p10 = scmp.eq.s32.totalorder %s2906_s15, 0 }
  0x80   : > { %s3191_s5 = scalar_select %p66_p6, %s2890_s11, %s68_s20  }
  0x81   : > { %p77_p13 = por %p75_p8, %p3989_p10  ;;  %p3990_p2 = scmp.eq.s32.totalorder %s3007_s16, 2 }
  0x82   : > { %3988 = sst [smem:[#allocation28_spill]] %s3191_s5  ;;  %s2343_s24 = smul.u32 48, %s344_s3 }
  0x83   : > { %p3197_p1 = por %p3990_p2, %p75_p8  ;;  %s2344_s7 = smul.u32 768, %s63_s30 }
  0x84   : > { %p3992_p11 = scmp.lt.s32.totalorder %s2906_s15, 3  ;;  %s346_s26 = scalar_lea.vmem [#allocation7], %s2343_s24 }
  0x85   : > { %s3991_s23 = scalar_select %p3197_p1, 1, 0 }
  0x86   : > { %p3203_p0 = pnand %p3992_p11, %p77_p13  ;;  %s3210_s20 = scalar_lea.hbm %s3915_s1, %s2344_s7 }
  0x87   : > { %s355_s12 = sshll.u32 %s346_s26, 4  ;;  %s3214_s3 = scalar_lea.sflag [#allocation8], %s342_s0  ;;  %s3212_s12 = int_to_ptr.vmem [resolvable:$true] %s355_s12 }
  0x88   : > { %s2712_s30 = scalar_lea.hbm %s3210_s20, 768  ;;  %p2714_p3 = pneg %p3203_p0 }
  0x89   : > { %p2713_p7 = scmp.ne.s32.totalorder %s3210_s20, %s2712_s30  ;;  %s2717_s25 = scalar_lea.hbm %s3915_s1, 2304 }
  0x8a   : > { %p2718_p4 = scmp.lt.u32.totalorder %s3210_s20, %s3915_s1  ;;  %p2719_p6 = scmp.lt.u32.totalorder %s2717_s25, %s2712_s30 }
  0x8b   : > { %p2715_p5 = pnand %p2714_p3, %p2713_p7  ;;  %p2721_p10 = scmp.lt.u32.totalorder %s2712_s30, %s3210_s20 }
  0x8c   : > { %p2720_p8 = por %p2719_p6, %p2718_p4 }
  0x8d   : > { %p2716_p9 = pneg %p2715_p5 }
  0x8e   : > { %p2722_p13 = por %p2721_p10, %p2720_p8 }
  0x90   : > { %p2723_p2 = pnand %p2722_p13, %p2716_p9 }
  0x92   : > { %2726 = shalt.err (!%p2723_p2)
}
  0x93   : > { %s2727_s0 = scalar_lea.vmem %s3212_s12, 768  ;;  %s2913_s24 = smov [#allocation7]  }
  0x94   : > { %p2728_p11 = scmp.ne.s32.totalorder %s3212_s12, %s2727_s0  ;;  %s2732_s26 = sshll.u32 %s2913_s24, 4  ;;  %s2733_s26 = int_to_ptr.vmem [resolvable:$false] %s2732_s26 }
  0x95   : > { %s2734_s5 = scalar_lea.vmem %s2733_s26, 1536  ;;  %p2735_p1 = scmp.lt.s32.totalorder %s3212_s12, %s2733_s26 }
  0x96   : > { %p2730_p7 = pnand %p2728_p11, %p2714_p3  ;;  %p2736_p4 = scmp.lt.s32.totalorder %s2734_s5, %s2727_s0 }
  0x98   : > { %p2731_p5 = pneg %p2730_p7  ;;  %p2737_p6 = por %p2736_p4, %p2735_p1 }
  0x9a   : > { %p2738_p8 = pnand %p2737_p6, %p2731_p5 }
  0x9c   : > { %2741 = shalt.err (!%p2738_p8)
}
  0x9d   : > { %2380 = dma.hbm_to_vmem [thread:$0]  (!%p3203_p0), %s3210_s20, 768, %s3212_s12, %s3214_s3, %s3985_s9, %s3985_s9, %s3984_s17  }
  0x9e   : > { %367 = sbr.rel (%p3040_p12) target bundleno = 1391 (0x56f), region = 48 }
  0xa5   : > { %s3248_s14 = sand.u32 1, %s2898_s13   ;;  %p3994_p1 = scmp.ne.s32.totalorder %s3970_s18, 0 }
  0xa6   : > { %s2345_s30 = smul.u32 48, %s3248_s14  ;;  %s370_s7 = scalar_lea.sflag [#allocation5], %s3248_s14 }
  0xa8   : > { %s3252_s27 = scalar_lea.vmem [#allocation4], %s2345_s30 }
  0xa9   : > { %2853 = dma.done.wait (%p3994_p1), %s370_s7, 768  }
  0xaa   : > { %2855 = vsyncadd (%p3994_p1), %s370_s7, 4294966528  ;;  %s378_s22 = sand.u32 1, %s3007_s16   ;;  %s380_s17 = sand.u32 1, %s2886_s10  }
  0xab   : > { %s2346_s9 = smul.u32 48, %s380_s17  ;;  %s379_s12 = scalar_lea.sflag [#allocation8], %s378_s22 }
  0xac   : > { %p3995_p12 = scmp.ne.s32.totalorder %s3971_s19, 0 }
  0xad   : > { %s3262_s21 = scalar_lea.vmem [#allocation7], %s2346_s9 }
  0xae   : > { %2857 = dma.done.wait (%p3995_p12), %s379_s12, 768  }
  0xaf   : > { %2859 = vsyncadd (%p3995_p12), %s379_s12, 4294966528  ;;  %p3996_p0 = scmp.eq.s32.totalorder %s3007_s16, 0 }
  0xb1   : > { %2861 = dma.done.wait (%p3996_p0), [#allocation8], 3072   ;;  %p3997_p3 = pmov %p3996_p0 }
  0xb2   : > { %p3998_p9 = pmov %p3996_p0 }
  0xb3   : > { %2863 = vsyncadd (%p3997_p3), [#allocation8], 4294964224 }
  0xb4   : > { %2865 = dma.done.wait (%p3998_p9), [#allocation11], 3072   ;;  %p3999_p10 = pmov %p3996_p0 }
  0xb5   : > { %s2007_s18 = sshll.u32 %s3248_s14, 5  ;;  %s2008_s20 = sshll.u32 %s380_s17, 5 }
  0xb6   : > { %2867 = vsyncadd (%p3999_p10), [#allocation11], 4294964224  ;;  %s3277_s3 = scalar_lea.vmem [#allocation12], %s2007_s18  ;;  %s3279_s25 = scalar_lea.vmem [#allocation13], %s2008_s20 }
  0xb7   : > { %p4000_p13 = scmp.ne.s32.totalorder %s3007_s16, 0 }
  0xb8   : > { %v2914_v0 = vmov (!%p4000_p13), 0.0  }
  0xb9   : > { %445 = sbr.rel (%p4000_p13) target bundleno = 192 (0xc0), region = 68  ;;  %446 = vst [vmem:[#allocation2] sm:$0xff] (!%p4000_p13), %v2914_v0  ;;  %447 = vst [vmem:[#allocation3] sm:$0xff] (!%p4000_p13), %v2914_v0 }
  0xc0 PF: > { %v3283_v1 = vld [vmem:[#allocation9 + $0x4] ss:$12 sps:$4 sm:$0xff]   ;;  %v3285_v2 = vld [vmem:[#allocation9] ss:$12 sps:$4 sm:$0xff]   ;;  %v3942_v3 = vmov 0.0   ;;  %v3950_v4 = vmov 0  }
  0xc1   : > { %2181 = vmatprep.subr.bf16.mxu1 %v3942_v3  ;;  %697 = vmatprep.mubr.bf16.mxu0 %v3950_v4  ;;  %v3290_v5 = vld [vmem:[#allocation9 + $0x1c] ss:$12 sps:$4 sm:$0xff]   ;;  %vm2917_vm0 = vmmov 0   ;;  %v3295_v6 = vld [vmem:[#allocation9 + $0x18] ss:$12 sps:$4 sm:$0xff]   ;;  %v3352_v24 = vld [vmem:[#allocation2] sm:$0xff] }
  0xc2   : > { %665 = vmatprep.subr.bf16.mxu0 %v3283_v1  ;;  %2197 = vmatprep.mubr.msk.bf16.mxu1 %vm2917_vm0, %v3942_v3  ;;  %v3299_v7 = vld [vmem:[#allocation9 + $0x34] ss:$12 sps:$4 sm:$0xff]   ;;  %v3303_v8 = vld [vmem:[#allocation9 + $0x30] ss:$12 sps:$4 sm:$0xff]   ;;  %v3306_v9 = vld [vmem:[#allocation9 + $0x4c] ss:$12 sps:$4 sm:$0xff]   ;;  %v536_v27 = vpack.c.bf16 %v3352_v24, %v3352_v24 }
  0xc3   : > { %666 = vmatpush1.bf16.msra.mxu0 %v3285_v2  ;;  %2463 = vset.pattern.permute.xlu0 %v3950_v4  ;;  %v3308_v10 = vld [vmem:[#allocation9 + $0x8] ss:$12 sps:$4 sm:$0xff]   ;;  %v3315_v12 = vld [vmem:[#allocation9 + $0x64] ss:$12 sps:$4 sm:$0xff]   ;;  %v3318_v13 = vld [vmem:[#allocation9 + $0x20] ss:$12 sps:$4 sm:$0xff]  }
  0xc4   : > { %667 = vmatprep.subr.bf16.mxu0 %v3290_v5  ;;  %2464 = vset.pattern.permute.xlu1 %v3950_v4  ;;  %v3311_v11 = vld [vmem:[#allocation9 + $0x48] ss:$12 sps:$4 sm:$0xff]   ;;  %v3320_v14 = vld [vmem:[#allocation9 + $0x60] ss:$12 sps:$4 sm:$0xff]   ;;  %v3324_v15 = vld [vmem:[#allocation9 + $0x38] ss:$12 sps:$4 sm:$0xff]  }
  0xc5   : > { %2182 = vmatpush3.bf16.msra.mxu1 %v3308_v10  ;;  %v3327_v16 = vld [vmem:[#allocation9 + $0x7c] ss:$12 sps:$4 sm:$0xff]   ;;  %v3331_v17 = vld [vmem:[#allocation9 + $0x78] ss:$12 sps:$4 sm:$0xff]   ;;  %v3337_v19 = vld [vmem:[#allocation9 + $0x94] ss:$12 sps:$4 sm:$0xff]  }
  0xc6   : > { %2183 = vmatprep.subr.bf16.mxu1 %v3942_v3  ;;  %v3334_v18 = vld [vmem:[#allocation9 + $0x50] ss:$12 sps:$4 sm:$0xff]   ;;  %4001 = vst [vmem:[#allocation29_spill] sm:$0xff] %v3337_v19  ;;  %v3344_v21 = vld [vmem:[#allocation9 + $0x68] ss:$12 sps:$4 sm:$0xff]   ;;  %s516_s19 = ssub.s32 2, %s3007_s16 }
  0xc7   : > { %668 = vmatpush1.bf16.msra.mxu0 %v3295_v6  ;;  %v3340_v20 = vld [vmem:[#allocation9 + $0x90] ss:$12 sps:$4 sm:$0xff]   ;;  %v3347_v22 = vld [vmem:[#allocation9 + $0xac] ss:$12 sps:$4 sm:$0xff]   ;;  %v3350_v23 = vld [vmem:[#allocation9 + $0xa8] ss:$12 sps:$4 sm:$0xff]  }
  0xc8   : > { %669 = vmatprep.subr.bf16.mxu0 %v3299_v7  ;;  %4002 = vst [vmem:[#allocation30_spill] sm:$0xff] %v3340_v20  ;;  %4003 = vst [vmem:[#allocation31_spill] sm:$0xff] %v3347_v22  ;;  %v3356_v25 = vld [vmem:[#allocation9 + $0x80] ss:$12 sps:$4 sm:$0xff]   ;;  %v3360_v26 = vld [vmem:[#allocation10 + $0x4] ss:$12 sps:$4 sm:$0xff]  }
  0xc9   : > { %2184 = vmatpush3.bf16.msra.mxu1 %v3318_v13  ;;  %4004 = vst [vmem:[#allocation32_spill] sm:$0xff] %v3350_v23  ;;  %4005 = vst [vmem:[#allocation33_spill] sm:$0xff] %v3360_v26  ;;  %s3367_s0 = sshll.u32 %s516_s19, 2  ;;  %v3370_v28 = vld [vmem:[#allocation10] ss:$12 sps:$4 sm:$0xff]   ;;  %s3380_s24 = sshll.u32 %s3007_s16, 2 }
  0xca   : > { %2185 = vmatprep.subr.bf16.mxu1 %v3942_v3  ;;  %v3373_v29 = vld [vmem:[#allocation9 + $0x98] ss:$12 sps:$4 sm:$0xff]   ;;  %v3376_v30 = vld [vmem:[#allocation10 + $0x1c] ss:$12 sps:$4 sm:$0xff]   ;;  %s1014_s26 = sadd.s32 3, %s3367_s0  ;;  %v1012_v34 = vstv %s3380_s24  ;;  %s1504_s5 = sadd.s32 2, %s3380_s24 }
  0xcb   : > { %670 = vmatpush1.bf16.msra.mxu0 %v3303_v8  ;;  %4006 = vst [vmem:[#allocation34_spill] sm:$0xff] %v3373_v29  ;;  %v3383_v31 = vld [vmem:[#allocation10 + $0x18] ss:$12 sps:$4 sm:$0xff]   ;;  %v3387_v32 = vld [vmem:[#allocation9 + $0xb0] ss:$12 sps:$4 sm:$0xff]   ;;  %v1015_v35 = vstv %s1014_s26  ;;  %v1505_v41 = vstv %s1504_s5  ;;  %s1750_s17 = sadd.s32 3, %s3380_s24 }
  0xcc   : > { %671 = vmatprep.subr.bf16.mxu0 %v3306_v9  ;;  %4007 = vst [vmem:[#allocation35_spill] sm:$0xff] %v3387_v32  ;;  %v3390_v33 = vld [vmem:[#allocation10 + $0x34] ss:$12 sps:$4 sm:$0xff]   ;;  %v3402_v37 = vld [vmem:[#allocation10 + $0x30] ss:$12 sps:$4 sm:$0xff]   ;;  %v1751_v46 = vstv %s1750_s17  ;;  %s1258_s9 = sadd.s32 1, %s3380_s24 }
  0xcd   : > { %2186 = vmatpush3.bf16.msra.mxu1 %v3324_v15  ;;  %v3399_v36 = vld [vmem:[%s3916_s2] sm:$0xff]  ;;  %v3410_v39 = vld [vmem:[#allocation10 + $0x4c] ss:$12 sps:$4 sm:$0xff]   ;;  %v3438_v50 = vld [vmem:[#allocation10 + $0x7c] ss:$12 sps:$4 sm:$0xff]   ;;  %s1261_s12 = sadd.s32 2, %s3367_s0  ;;  %v1259_v0 = vstv %s1258_s9 }
  0xce   : > { %2187 = vmatprep.subr.bf16.mxu1 %v3942_v3  ;;  %v3405_v38 = vld [vmem:[#allocation10 + $0x8] ss:$12 sps:$4 sm:$0xff]   ;;  %vm1013_vm1 = vcmp.gt.s32.totalorder %v3399_v36, %v1012_v34  ;;  %vm1016_vm2 = vcmp.gt.s32.totalorder %v3399_v36, %v1015_v35  ;;  %v3420_v44 = vld [vmem:[#allocation10 + $0x20] ss:$12 sps:$4 sm:$0xff]   ;;  %vm1506_vm3 = vcmp.gt.s32.totalorder %v3399_v36, %v1505_v41  ;;  %v3424_v45 = vld [vmem:[#allocation10 + $0x64] ss:$12 sps:$4 sm:$0xff]   ;;  %vm1752_vm4 = vcmp.gt.s32.totalorder %v3399_v36, %v1751_v46 }
  0xcf   : > { %672 = vmatpush1.bf16.msra.mxu0 %v3311_v11  ;;  %v1017_v40 = vsel %vm1013_vm1, 1, %v3950_v4  ;;  %v1024_v42 = vsel %vm1016_vm2, 1, %v3950_v4  ;;  %v3417_v43 = vld [vmem:[#allocation10 + $0x48] ss:$12 sps:$4 sm:$0xff]   ;;  %v1510_v47 = vsel %vm1506_vm3, 1, %v3950_v4  ;;  %v1755_v51 = vsel %vm1752_vm4, 1, %v3950_v4 }
  0xd0   : > { %673 = vmatprep.subr.bf16.mxu0 %v3315_v12  ;;  %1019 = vperm.xlu0 %2463, %v1017_v40   ;;  %v3431_v48 = vld [vmem:[#allocation10 + $0x60] ss:$12 sps:$4 sm:$0xff]   ;;  %v3434_v49 = vld [vmem:[#allocation10 + $0x38] ss:$12 sps:$4 sm:$0xff]   ;;  %v3446_v53 = vld [vmem:[#allocation10 + $0x50] ss:$12 sps:$4 sm:$0xff]   ;;  %vm1260_vm5 = vcmp.gt.s32.totalorder %v3399_v36, %v1259_v0  ;;  %v1753_v41 = vstv %s3367_s0 }
  0xd1   : > { %2188 = vmatpush3.bf16.msra.mxu1 %v3334_v18  ;;  %v3443_v52 = vld [vmem:[#allocation10 + $0x78] ss:$12 sps:$4 sm:$0xff]   ;;  %v3449_v54 = vld [vmem:[#allocation10 + $0x94] ss:$12 sps:$4 sm:$0xff]   ;;  %v3453_v55 = vld [vmem:[#allocation10 + $0x90] ss:$12 sps:$4 sm:$0xff]   ;;  %vm1754_vm8 = vcmp.gt.s32.totalorder %v3399_v36, %v1753_v41 }
  0xd2   : > { %2189 = vmatprep.subr.bf16.mxu1 %v3942_v3  ;;  %v3456_v56 = vld [vmem:[#allocation10 + $0x68] ss:$12 sps:$4 sm:$0xff]   ;;  %v3459_v57 = vld [vmem:[#allocation10 + $0xac] ss:$12 sps:$4 sm:$0xff]   ;;  %v3481_v63 = vld [vmem:[#allocation10 + $0xb0] ss:$12 sps:$4 sm:$0xff]  }
  0xd3   : > { %674 = vmatpush1.bf16.msra.mxu0 %v3320_v14  ;;  %v3463_v58 = vld [vmem:[#allocation10 + $0xa8] ss:$12 sps:$4 sm:$0xff]   ;;  %v3465_v59 = vld [vmem:[#allocation3] sm:$0xff]  ;;  %v3468_v60 = vld [vmem:[#allocation10 + $0x80] ss:$12 sps:$4 sm:$0xff]   ;;  %s1507_s18 = sadd.s32 1, %s3367_s0 }
  0xd4   : > { %675 = vmatprep.subr.bf16.mxu0 %v3327_v16  ;;  %1026 = vperm.xlu0 %2463, %v1024_v42   ;;  %v774_v61 = vpack.c.bf16 %v3465_v59, %v3465_v59  ;;  %v3476_v62 = vld [vmem:[#allocation10 + $0x98] ss:$12 sps:$4 sm:$0xff]   ;;  %v1264_v34 = vsel %vm1260_vm5, 1, %v3950_v4  ;;  %v1508_v35 = vstv %s1507_s18  ;;  %v1763_v46 = vsel %vm1754_vm8, 1, %v3950_v4  ;;  %p2096_p2 = scmp.ne.s32.totalorder %s3007_s16, 2 }
  0xd5   : > { %2190 = vmatpush3.bf16.msra.mxu1 %v3344_v21  ;;  %1266 = vperm.xlu1 %2464, %v1264_v34   ;;  %vm1509_vm7 = vcmp.gt.s32.totalorder %v3399_v36, %v1508_v35 }
  0xd6   : > { %2191 = vmatprep.subr.bf16.mxu1 %v3942_v3  ;;  %v1518_v42 = vsel %vm1509_vm7, 1, %v3950_v4 }
  0xd7   : > { %676 = vmatpush1.bf16.msra.mxu0 %v3331_v17 }
  0xd8   : > { %677 = vmatprep.subr.bf16.mxu0 %v3337_v19  ;;  %1512 = vperm.xlu0 %2463, %v1510_v47   ;;  %v523_v47 = vld [vmem:[%s3252_s27] sm:$0xff] }
  0xd9   : > { %2192 = vmatpush3.bf16.msra.mxu1 %v3356_v25  ;;  %v526_v0 = vunpack.c.h.bf16 %v523_v47 }
  0xda   : > { %2193 = vmatprep.subr.bf16.mxu1 %v3942_v3 }
  0xdb   : > { %678 = vmatpush1.bf16.msra.mxu0 %v3340_v20 }
  0xdc   : > { %679 = vmatprep.subr.bf16.mxu0 %v3347_v22  ;;  %1757 = vperm.xlu0 %2463, %v1755_v51   ;;  %v525_v51 = vunpack.c.l.bf16 %v523_v47  ;;  %v3540_v47 = vld [vmem:[%s3252_s27 + $0x8] ss:$12 sps:$4 sm:$0xff]  }
  0xdd   : > { %2194 = vmatpush3.bf16.msra.mxu1 %v3373_v29  ;;  %4009 = vst [vmem:[#allocation37_spill] sm:$0xff] %v3540_v47 }
  0xde   : > { %2195 = vmatprep.subr.bf16.mxu1 %v3942_v3 }
  0xdf   : > { %680 = vmatpush1.bf16.msra.mxu0 %v3350_v23 }
  0xe0   : > { %903 = vmatprep.subr.bf16.mxu0 %v3360_v26 }
  0xe1   : > { %2196 = vmatpush3.bf16.msra.mxu1 %v3387_v32 }
  0xe2   : > { %698 = vmatmul.mubr.bf16.vlgmr.msra.gmra.mrb[0].mxu0 %v536_v27  ;;  %2201 = vmatprep.subr.bf16.mxu1 %v3942_v3 }
  0xe3   : > { %904 = vmatpush1.bf16.msra.mxu0 %v3370_v28  ;;  %935 = vmatprep.mubr.bf16.mxu0 %v3950_v4 }
  0xe4   : > { %905 = vmatprep.subr.bf16.mxu0 %v3376_v30  ;;  %2198 = vmatmul.mubr.bf16.vlgmr.msra.gmra.mrb[0].mxu1 %v536_v27  ;;  %v1262_v27 = vstv %s1261_s12 }
  0xe5   : > { %2202 = vmatpush3.bf16.msra.mxu1 %v3405_v38  ;;  %2217 = vmatprep.mubr.msk.bf16.mxu1 %vm2917_vm0, %v3942_v3  ;;  %vm1263_vm6 = vcmp.gt.s32.totalorder %v3399_v36, %v1262_v27 }
  0xe6   : > { %2203 = vmatprep.subr.bf16.mxu1 %v3942_v3  ;;  %v1272_v40 = vsel %vm1263_vm6, 1, %v3950_v4 }
  0xe7   : > { %906 = vmatpush1.bf16.msra.mxu0 %v3383_v31  ;;  %1274 = vperm.xlu1 %2464, %v1272_v40  }
  0xe8   : > { %907 = vmatprep.subr.bf16.mxu0 %v3390_v33 }
  0xe9   : > { %2204 = vmatpush3.bf16.msra.mxu1 %v3420_v44 }
  0xea   : > { %2205 = vmatprep.subr.bf16.mxu1 %v3942_v3 }
  0xeb   : > { %908 = vmatpush1.bf16.msra.mxu0 %v3402_v37  ;;  %1520 = vperm.xlu1 %2464, %v1518_v42  }
  0xec   : > { %909 = vmatprep.subr.bf16.mxu0 %v3410_v39 }
  0xed   : > { %2206 = vmatpush3.bf16.msra.mxu1 %v3434_v49 }
  0xee   : > { %2207 = vmatprep.subr.bf16.mxu1 %v3942_v3 }
  0xef   : > { %910 = vmatpush1.bf16.msra.mxu0 %v3417_v43  ;;  %1765 = vperm.xlu1 %2464, %v1763_v46  }
  0xf0   : > { %911 = vmatprep.subr.bf16.mxu0 %v3424_v45 }
  0xf1   : > { %2208 = vmatpush3.bf16.msra.mxu1 %v3446_v53 }
  0xf2   : > { %2209 = vmatprep.subr.bf16.mxu1 %v3942_v3 }
  0xf3   : > { %912 = vmatpush1.bf16.msra.mxu0 %v3431_v48 }
  0xf4   : > { %913 = vmatprep.subr.bf16.mxu0 %v3438_v50 }
  0xf5   : > { %2210 = vmatpush3.bf16.msra.mxu1 %v3456_v56 }
  0xf6   : > { %2211 = vmatprep.subr.bf16.mxu1 %v3942_v3 }
  0xf7   : > { %914 = vmatpush1.bf16.msra.mxu0 %v3443_v52 }
  0xf8   : > { %915 = vmatprep.subr.bf16.mxu0 %v3449_v54 }
  0xf9   : > { %2212 = vmatpush3.bf16.msra.mxu1 %v3468_v60 }
  0xfa   : > { %2213 = vmatprep.subr.bf16.mxu1 %v3942_v3 }
  0xfb   : > { %916 = vmatpush1.bf16.msra.mxu0 %v3453_v55 }
  0xfc   : > { %917 = vmatprep.subr.bf16.mxu0 %v3459_v57 }
  0xfd   : > { %2214 = vmatpush3.bf16.msra.mxu1 %v3476_v62 }
  0xfe   : > { %2215 = vmatprep.subr.bf16.mxu1 %v3942_v3 }
  0xff   : > { %918 = vmatpush1.bf16.msra.mxu0 %v3463_v58 }
 0x100   : > { %1051 = vmatprep.subr.bf16.mxu0 %v3283_v1 }
 0x101   : > { %2216 = vmatpush3.bf16.msra.mxu1 %v3481_v63 }
 0x102   : > { %936 = vmatmul.mubr.bf16.vlgmr.msra.gmra.mrb[4].mxu0 %v774_v61  ;;  %2221 = vmatprep.subr.bf16.mxu1 %v3942_v3 }
 0x103   : > { %1052 = vmatpush1.bf16.msra.mxu0 %v3285_v2  ;;  %1083 = vmatprep.mubr.bf16.mxu0 %v3950_v4 }
 0x104   : > { %1053 = vmatprep.subr.bf16.mxu0 %v3290_v5  ;;  %2218 = vmatmul.mubr.bf16.vlgmr.msra.gmra.mrb[4].mxu1 %v774_v61 }
 0x105   : > { %2222 = vmatpush3.bf16.msra.mxu1 %v3308_v10  ;;  %2237 = vmatprep.mubr.msk.bf16.mxu1 %vm2917_vm0, %v3942_v3 }
 0x106   : > { %2223 = vmatprep.subr.bf16.mxu1 %v3942_v3 }
 0x107   : > { %1054 = vmatpush1.bf16.msra.mxu0 %v3295_v6 }
 0x108   : > { %1055 = vmatprep.subr.bf16.mxu0 %v3299_v7 }
 0x109   : > { %2224 = vmatpush3.bf16.msra.mxu1 %v3318_v13 }
 0x10a   : > { %2225 = vmatprep.subr.bf16.mxu1 %v3942_v3 }
 0x10b   : > { %1056 = vmatpush1.bf16.msra.mxu0 %v3303_v8 }
 0x10c   : > { %1057 = vmatprep.subr.bf16.mxu0 %v3306_v9 }
 0x10d   : > { %2226 = vmatpush3.bf16.msra.mxu1 %v3324_v15 }
 0x10e   : > { %2227 = vmatprep.subr.bf16.mxu1 %v3942_v3 }
 0x10f   : > { %1058 = vmatpush1.bf16.msra.mxu0 %v3311_v11 }
 0x110   : > { %1059 = vmatprep.subr.bf16.mxu0 %v3315_v12 }
 0x111   : > { %2228 = vmatpush3.bf16.msra.mxu1 %v3334_v18 }
 0x112   : > { %2229 = vmatprep.subr.bf16.mxu1 %v3942_v3 }
 0x113   : > { %1060 = vmatpush1.bf16.msra.mxu0 %v3320_v14 }
 0x114   : > { %1061 = vmatprep.subr.bf16.mxu0 %v3327_v16 }
 0x115   : > { %2230 = vmatpush3.bf16.msra.mxu1 %v3344_v21 }
 0x116   : > { %2231 = vmatprep.subr.bf16.mxu1 %v3942_v3 }
 0x117   : > { %1062 = vmatpush1.bf16.msra.mxu0 %v3331_v17 }
 0x118   : > { %1063 = vmatprep.subr.bf16.mxu0 %v3337_v19 }
 0x119   : > { %2232 = vmatpush3.bf16.msra.mxu1 %v3356_v25 }
 0x11a   : > { %2233 = vmatprep.subr.bf16.mxu1 %v3942_v3 }
 0x11b   : > { %1064 = vmatpush1.bf16.msra.mxu0 %v3340_v20 }
 0x11c   : > { %1065 = vmatprep.subr.bf16.mxu0 %v3347_v22 }
 0x11d   : > { %2234 = vmatpush3.bf16.msra.mxu1 %v3373_v29 }
 0x11e   : > { %2235 = vmatprep.subr.bf16.mxu1 %v3942_v3 }
 0x11f   : > { %1066 = vmatpush1.bf16.msra.mxu0 %v3350_v23 }
 0x120   : > { %1155 = vmatprep.subr.bf16.mxu0 %v3360_v26 }
 0x121   : > { %2236 = vmatpush3.bf16.msra.mxu1 %v3387_v32 }
 0x122   : > { %2241 = vmatprep.subr.bf16.mxu1 %v3942_v3 }
 0x1b5   : > { %v699_v61 = vpop.f32.mrb[0].mxu0 }
 0x1b6   : > { %v746_v27 = vadd.f32 %v699_v61, %v525_v51  ;;  %v701_v34 = vpop.f32.mrb[1].mxu0  ;;  %v527_v61 = vunpack.c.l.bf16 %v3540_v47 }
 0x1b7   : > { %v703_v3 = vpop.f32.mrb[2].mxu0  ;;  %v753_v32 = vadd.f32 %v701_v34, %v526_v0  ;;  %v740_v23 = vpop.f32.mrb[0].mxu1 }
 0x1b8   : > { %v2038_v26 = vmul.f32 -1.442695, %v746_v27  ;;  %v704_v35 = vpop.f32.mrb[3].mxu0  ;;  %v2199_v36 = vpop.f32.mrb[1].mxu1  ;;  %v3537_v3 = vld [vmem:[%s3918_s4] ss:$0 sm:$0xff] }
 0x1b9   : > { %v2039_v40 = vmul.f32 -1.442695, %v753_v32  ;;  %v743_v41 = vpop.f32.mrb[2].mxu1  ;;  %4008 = vst [vmem:[#allocation36_spill] sm:$0xff] %v3537_v3  ;;  %v2012_v32 = vld [vmem:[%s3262_s21 + $0x24] sm:$0xff] }
 0x1ba   : > { %2529 = vpow2.f32 %v2038_v26  ;;  %v2200_v42 = vpop.f32.mrb[3].mxu1  ;;  %v766_v26 = vadd.f32 %v3537_v3, %v740_v23  ;;  %v533_v34 = vunpack.c.l.bf16 %v2012_v32 }
 0x1bb   : > { %2531 = vpow2.f32 %v2039_v40  ;;  %v534_v40 = vunpack.c.h.bf16 %v2012_v32 }
 0x1c4   : > { %v2530_v46 = vpop.eup %2529 }
 0x1c5   : > { %v750_v4 = vadd.f32 1.0, %v2530_v46  ;;  %v2532_v22 = vpop.eup %2531 }
 0x1c6   : > { %v757_v51 = vadd.f32 1.0, %v2532_v22 }
 0x1c7   : > { %2533 = vrcp.f32 %v750_v4 }
 0x1c8   : > { %2535 = vrcp.f32 %v757_v51 }
 0x1d1   : > { %v2534_v0 = vpop.eup %2533 }
 0x1d2   : > { %v767_v27 = vmul.f32 %v2534_v0, %v766_v26  ;;  %v2536_v22 = vpop.eup %2535 }
 0x1d3   : > { %v770_v19 = vsub.f32 1.0, %v2536_v22  ;;  %v772_v32 = vmul.f32 %v2536_v22, %v3352_v24 }
 0x1d4   : > { %v768_v35 = vadd.f32 %v767_v27, %v527_v61  ;;  %v1020_v27 = vpop.permute.xlu0 %1019 }
 0x1d5   : > { %v937_v4 = vpop.f32.mrb[4].mxu0  ;;  %vm1021_vm9 = vcmp.eq.s32.totalorder %v1020_v27, 1 }
 0x1d6   : > { %2537 = vtanh.f32 %v768_v35  ;;  %v984_v36 = vadd.f32 %v937_v4, %v533_v34  ;;  %v939_v41 = vpop.f32.mrb[5].mxu0 }
 0x1d7   : > { %v941_v42 = vpop.f32.mrb[6].mxu0  ;;  %v991_v20 = vadd.f32 %v939_v41, %v534_v40  ;;  %v978_v3 = vpop.f32.mrb[4].mxu1  ;;  %v3565_v41 = vld [vmem:[%s3262_s21 + $0x20] ss:$12 sps:$4 sm:$0xff]  }
 0x1d8   : > { %v2065_v46 = vmul.f32 -1.442695, %v984_v36  ;;  %v942_v29 = vpop.f32.mrb[7].mxu0  ;;  %v2219_v47 = vpop.f32.mrb[5].mxu1  ;;  %v4011_v36 = vmov 0   ;;  %v535_v22 = vunpack.c.h.bf16 %v3565_v41 }
 0x1d9   : > { %v2066_v23 = vmul.f32 -1.442695, %v991_v20  ;;  %v981_v51 = vpop.f32.mrb[6].mxu1 }
 0x1da   : > { %2539 = vpow2.f32 %v2065_v46  ;;  %v2220_v0 = vpop.f32.mrb[7].mxu1 }
 0x1db   : > { %2541 = vpow2.f32 %v2066_v23 }
 0x1e0   : > { %v2538_v26 = vpop.eup %2537 }
 0x1e1   : > { %v771_v61 = vmul.f32 %v2538_v26, %v770_v19  ;;  %v4010_v19 = vmov 0.0  }
 0x1e3   : > { %v773_v34 = vadd.f32 %v772_v32, %v771_v61 }
 0x1e4   : > { %v2540_v35 = vpop.eup %2539 }
 0x1e5   : > { %v988_v29 = vadd.f32 1.0, %v2540_v35  ;;  %v1022_v4 = vsel %vm1021_vm9, %v773_v34, 0.0  ;;  %v3547_v20 = vsel %vm1021_vm9, %v773_v34, %v3352_v24  ;;  %v2542_v40 = vpop.eup %2541  ;;  %v3559_v24 = vld [vmem:[%s3920_s6] ss:$0 sm:$0xff]  ;;  %v1027_v34 = vpop.permute.xlu0 %1026 }
 0x1e6   : > { %1023 = vst [vmem:[%s3277_s3] sm:$0xff] %v1022_v4  ;;  %v1050_v47 = vpack.c.bf16 %v3547_v20, %v3547_v20  ;;  %v995_v42 = vadd.f32 1.0, %v2542_v40  ;;  %v1004_v46 = vadd.f32 %v3559_v24, %v978_v3  ;;  %vm1028_vm10 = vcmp.eq.s32.totalorder %v1027_v34, 1 }
 0x1e7   : > { %2543 = vrcp.f32 %v988_v29 }
 0x1e8   : > { %1084 = vmatmul.mubr.bf16.vlgmr.msra.gmra.mrb[8].mxu0 %v1050_v47  ;;  %2238 = vmatmul.mubr.bf16.vlgmr.msra.gmra.mrb[8].mxu1 %v1050_v47  ;;  %2545 = vrcp.f32 %v995_v42 }
 0x1e9   : > { %1156 = vmatpush1.bf16.msra.mxu0 %v3370_v28  ;;  %2242 = vmatpush3.bf16.msra.mxu1 %v3405_v38 }
 0x1ea   : > { %1157 = vmatprep.subr.bf16.mxu0 %v3376_v30  ;;  %2243 = vmatprep.subr.bf16.mxu1 %v4010_v19 }
 0x1eb   : > { %1187 = vmatprep.mubr.bf16.mxu0 %v4011_v36  ;;  %2257 = vmatprep.mubr.msk.bf16.mxu1 %vm2917_vm0, %v4010_v19 }
 0x1ed   : > { %1158 = vmatpush1.bf16.msra.mxu0 %v3383_v31  ;;  %2244 = vmatpush3.bf16.msra.mxu1 %v3420_v44 }
 0x1ee   : > { %1159 = vmatprep.subr.bf16.mxu0 %v3390_v33  ;;  %2245 = vmatprep.subr.bf16.mxu1 %v4010_v19 }
 0x1f1   : > { %v2544_v23 = vpop.eup %2543  ;;  %1160 = vmatpush1.bf16.msra.mxu0 %v3402_v37  ;;  %2246 = vmatpush3.bf16.msra.mxu1 %v3434_v49 }
 0x1f2   : > { %v1005_v51 = vmul.f32 %v2544_v23, %v1004_v46  ;;  %1161 = vmatprep.subr.bf16.mxu0 %v3410_v39  ;;  %2247 = vmatprep.subr.bf16.mxu1 %v4010_v19  ;;  %v2546_v3 = vpop.eup %2545 }
 0x1f3   : > { %v1008_v0 = vsub.f32 1.0, %v2546_v3  ;;  %v1010_v32 = vmul.f32 %v2546_v3, %v3465_v59 }
 0x1f4   : > { %v1006_v26 = vadd.f32 %v1005_v51, %v535_v22 }
 0x1f5   : > { %1162 = vmatpush1.bf16.msra.mxu0 %v3417_v43  ;;  %2248 = vmatpush3.bf16.msra.mxu1 %v3446_v53 }
 0x1f6   : > { %2547 = vtanh.f32 %v1006_v26  ;;  %1163 = vmatprep.subr.bf16.mxu0 %v3424_v45  ;;  %2249 = vmatprep.subr.bf16.mxu1 %v4010_v19 }
 0x1f9   : > { %1164 = vmatpush1.bf16.msra.mxu0 %v3431_v48  ;;  %2250 = vmatpush3.bf16.msra.mxu1 %v3456_v56 }
 0x1fa   : > { %1165 = vmatprep.subr.bf16.mxu0 %v3438_v50  ;;  %2251 = vmatprep.subr.bf16.mxu1 %v4010_v19 }
 0x1fd   : > { %1166 = vmatpush1.bf16.msra.mxu0 %v3443_v52  ;;  %2252 = vmatpush3.bf16.msra.mxu1 %v3468_v60 }
 0x1fe   : > { %1167 = vmatprep.subr.bf16.mxu0 %v3449_v54  ;;  %2253 = vmatprep.subr.bf16.mxu1 %v4010_v19 }
 0x200   : > { %v2548_v61 = vpop.eup %2547 }
 0x201   : > { %v1009_v27 = vmul.f32 %v2548_v61, %v1008_v0  ;;  %1168 = vmatpush1.bf16.msra.mxu0 %v3453_v55  ;;  %2254 = vmatpush3.bf16.msra.mxu1 %v3476_v62 }
 0x202   : > { %1169 = vmatprep.subr.bf16.mxu0 %v3459_v57  ;;  %2255 = vmatprep.subr.bf16.mxu1 %v4010_v19 }
 0x203   : > { %v1011_v35 = vadd.f32 %v1010_v32, %v1009_v27 }
 0x205   : > { %1170 = vmatpush1.bf16.msra.mxu0 %v3463_v58  ;;  %2256 = vmatpush3.bf16.msra.mxu1 %v3481_v63  ;;  %v1029_v29 = vsel %vm1028_vm10, %v1011_v35, 0.0  ;;  %v3597_v4 = vsel %vm1028_vm10, %v1011_v35, %v3465_v59 }
 0x206   : > { %2068 = vst [vmem:[%s3279_s25 + $0x18] sm:$0xff] %v1029_v29  ;;  %v1154_v47 = vpack.c.bf16 %v3597_v4, %v3597_v4  ;;  %1297 = vmatprep.subr.bf16.mxu0 %v3283_v1  ;;  %2261 = vmatprep.subr.bf16.mxu1 %v4010_v19  ;;  %v4012_v1 = vld [vmem:[#allocation29_spill] sm:$0xff]  ;;  %v2071_v29 = vld [vmem:[%s3262_s21 + $0x18] sm:$0xff] }
 0x208   : > { %1188 = vmatmul.mubr.bf16.vlgmr.msra.gmra.mrb[12].mxu0 %v1154_v47  ;;  %2258 = vmatmul.mubr.bf16.vlgmr.msra.gmra.mrb[12].mxu1 %v1154_v47  ;;  %v4019_v47 = vld [vmem:[#allocation37_spill] sm:$0xff] }
 0x209   : > { %1298 = vmatpush1.bf16.msra.mxu0 %v3285_v2  ;;  %2262 = vmatpush3.bf16.msra.mxu1 %v3308_v10  ;;  %v4013_v2 = vld [vmem:[#allocation30_spill] sm:$0xff] }
 0x20a   : > { %1299 = vmatprep.subr.bf16.mxu0 %v3290_v5  ;;  %2263 = vmatprep.subr.bf16.mxu1 %v4010_v19  ;;  %v4014_v5 = vld [vmem:[#allocation34_spill] sm:$0xff] }
 0x20b   : > { %1329 = vmatprep.mubr.bf16.mxu0 %v4011_v36  ;;  %2277 = vmatprep.mubr.msk.bf16.mxu1 %vm2917_vm0, %v4010_v19  ;;  %v2069_v10 = vld [vmem:[%s3252_s27 + $0xc] sm:$0xff] }
 0x20c   : > { %v1040_v59 = vunpack.c.h.bf16 %v2069_v10 }
 0x20d   : > { %1300 = vmatpush1.bf16.msra.mxu0 %v3295_v6  ;;  %2264 = vmatpush3.bf16.msra.mxu1 %v3318_v13  ;;  %v4015_v6 = vld [vmem:[#allocation31_spill] sm:$0xff] }
 0x20e   : > { %1301 = vmatprep.subr.bf16.mxu0 %v3299_v7  ;;  %2265 = vmatprep.subr.bf16.mxu1 %v4010_v19  ;;  %v4016_v7 = vld [vmem:[#allocation32_spill] sm:$0xff] }
 0x211   : > { %1302 = vmatpush1.bf16.msra.mxu0 %v3303_v8  ;;  %2266 = vmatpush3.bf16.msra.mxu1 %v3324_v15  ;;  %v4017_v8 = vld [vmem:[#allocation35_spill] sm:$0xff] }
 0x212   : > { %1303 = vmatprep.subr.bf16.mxu0 %v3306_v9  ;;  %2267 = vmatprep.subr.bf16.mxu1 %v4010_v19  ;;  %v4018_v9 = vld [vmem:[#allocation33_spill] sm:$0xff] }
 0x215   : > { %1304 = vmatpush1.bf16.msra.mxu0 %v3311_v11  ;;  %2268 = vmatpush3.bf16.msra.mxu1 %v3334_v18  ;;  %v1039_v11 = vunpack.c.l.bf16 %v2069_v10  ;;  %v1041_v10 = vunpack.c.h.bf16 %v4019_v47 }
 0x216   : > { %1305 = vmatprep.subr.bf16.mxu0 %v3315_v12  ;;  %2269 = vmatprep.subr.bf16.mxu1 %v4010_v19 }
 0x219   : > { %1306 = vmatpush1.bf16.msra.mxu0 %v3320_v14  ;;  %2270 = vmatpush3.bf16.msra.mxu1 %v3344_v21 }
 0x21a   : > { %1307 = vmatprep.subr.bf16.mxu0 %v3327_v16  ;;  %2271 = vmatprep.subr.bf16.mxu1 %v4010_v19 }
 0x21d   : > { %1308 = vmatpush1.bf16.msra.mxu0 %v3331_v17  ;;  %2272 = vmatpush3.bf16.msra.mxu1 %v3356_v25 }
 0x21e   : > { %1309 = vmatprep.subr.bf16.mxu0 %v4012_v1  ;;  %2273 = vmatprep.subr.bf16.mxu1 %v4010_v19 }
 0x221   : > { %1310 = vmatpush1.bf16.msra.mxu0 %v4013_v2  ;;  %2274 = vmatpush3.bf16.msra.mxu1 %v4014_v5 }
 0x222   : > { %1311 = vmatprep.subr.bf16.mxu0 %v4015_v6  ;;  %2275 = vmatprep.subr.bf16.mxu1 %v4010_v19 }
 0x225   : > { %1312 = vmatpush1.bf16.msra.mxu0 %v4016_v7  ;;  %2276 = vmatpush3.bf16.msra.mxu1 %v4017_v8 }
 0x226   : > { %1401 = vmatprep.subr.bf16.mxu0 %v4018_v9  ;;  %2281 = vmatprep.subr.bf16.mxu1 %v4010_v19 }
 0x2bb   : > { %v1085_v12 = vpop.f32.mrb[8].mxu0  ;;  %v1126_v14 = vpop.f32.mrb[8].mxu1 }
 0x2bc   : > { %v1132_v40 = vadd.f32 %v1085_v12, %v1039_v11  ;;  %v1087_v42 = vpop.f32.mrb[9].mxu0  ;;  %v2239_v46 = vpop.f32.mrb[9].mxu1  ;;  %v4020_v11 = vld [vmem:[#allocation36_spill] sm:$0xff] }
 0x2bd   : > { %v1089_v22 = vpop.f32.mrb[10].mxu0  ;;  %v1129_v23 = vpop.f32.mrb[10].mxu1  ;;  %v1139_v0 = vadd.f32 %v1087_v42, %v1040_v59  ;;  %v1146_v12 = vadd.f32 %v4020_v11, %v1126_v14  ;;  %v1048_v42 = vunpack.c.h.bf16 %v2071_v29 }
 0x2be   : > { %v2073_v51 = vmul.f32 -1.442695, %v1132_v40  ;;  %v1090_v26 = vpop.f32.mrb[11].mxu0  ;;  %v2240_v3 = vpop.f32.mrb[11].mxu1  ;;  %v1047_v40 = vunpack.c.l.bf16 %v2071_v29 }
 0x2bf   : > { %v2074_v61 = vmul.f32 -1.442695, %v1139_v0 }
 0x2c0   : > { %2549 = vpow2.f32 %v2073_v51 }
 0x2c1   : > { %2551 = vpow2.f32 %v2074_v61 }
 0x2ca   : > { %v2550_v32 = vpop.eup %2549 }
 0x2cb   : > { %v1136_v27 = vadd.f32 1.0, %v2550_v32  ;;  %v2552_v34 = vpop.eup %2551 }
 0x2cc   : > { %v1143_v35 = vadd.f32 1.0, %v2552_v34 }
 0x2cd   : > { %2553 = vrcp.f32 %v1136_v27 }
 0x2ce   : > { %2555 = vrcp.f32 %v1143_v35 }
 0x2d7   : > { %v2554_v46 = vpop.eup %2553 }
 0x2d8   : > { %v1147_v22 = vmul.f32 %v2554_v46, %v1146_v12  ;;  %v2556_v14 = vpop.eup %2555 }
 0x2d9   : > { %v1150_v35 = vsub.f32 1.0, %v2556_v14  ;;  %v1152_v29 = vmul.f32 %v2556_v14, %v3547_v20 }
 0x2da   : > { %v1148_v23 = vadd.f32 %v1147_v22, %v1041_v10  ;;  %v1267_v10 = vpop.permute.xlu1 %1266 }
 0x2db   : > { %v1189_v26 = vpop.f32.mrb[12].mxu0  ;;  %v1230_v59 = vpop.f32.mrb[12].mxu1  ;;  %vm1268_vm11 = vcmp.eq.s32.totalorder %v1267_v10, 1  ;;  %v2613_v10 = vld [vmem:[#allocation9 + $0x18] ss:$12 sps:$4 sm:$0xff]  }
 0x2dc   : > { %2557 = vtanh.f32 %v1148_v23  ;;  %v1236_v51 = vadd.f32 %v1189_v26, %v1047_v40  ;;  %v1191_v3 = vpop.f32.mrb[13].mxu0  ;;  %v2259_v0 = vpop.f32.mrb[13].mxu1 }
 0x2dd   : > { %v1193_v61 = vpop.f32.mrb[14].mxu0  ;;  %v1233_v32 = vpop.f32.mrb[14].mxu1  ;;  %v1243_v47 = vadd.f32 %v1191_v3, %v1048_v42 }
 0x2de   : > { %v2075_v27 = vmul.f32 -1.442695, %v1236_v51  ;;  %v1194_v34 = vpop.f32.mrb[15].mxu0  ;;  %v2260_v9 = vpop.f32.mrb[15].mxu1 }
 0x2df   : > { %v2076_v12 = vmul.f32 -1.442695, %v1243_v47  ;;  %v1275_v32 = vpop.permute.xlu1 %1274 }
 0x2e0   : > { %2559 = vpow2.f32 %v2075_v27  ;;  %vm1276_vm12 = vcmp.eq.s32.totalorder %v1275_v32, 1 }
 0x2e1   : > { %2561 = vpow2.f32 %v2076_v12  ;;  %v2609_v12 = vld [vmem:[#allocation9 + $0x4] ss:$12 sps:$4 sm:$0xff]  }
 0x2e6   : > { %v2558_v46 = vpop.eup %2557 }
 0x2e7   : > { %v1151_v22 = vmul.f32 %v2558_v46, %v1150_v35  ;;  %v2610_v35 = vld [vmem:[#allocation9] ss:$12 sps:$4 sm:$0xff]   ;;  %v2611_v46 = vld [vmem:[#allocation9 + $0x8] ss:$12 sps:$4 sm:$0xff]  }
 0x2e9   : > { %v1153_v40 = vadd.f32 %v1152_v29, %v1151_v22  ;;  %v2614_v22 = vld [vmem:[#allocation9 + $0x34] ss:$12 sps:$4 sm:$0xff]   ;;  %v2615_v29 = vld [vmem:[#allocation9 + $0x30] ss:$12 sps:$4 sm:$0xff]  }
 0x2ea   : > { %v2560_v23 = vpop.eup %2559 }
 0x2eb   : > { %v1240_v26 = vadd.f32 1.0, %v2560_v23  ;;  %v1269_v0 = vsel %vm1268_vm11, %v1153_v40, 0.0  ;;  %v3645_v51 = vsel %vm1268_vm11, %v1153_v40, %v3547_v20  ;;  %v2562_v42 = vpop.eup %2561  ;;  %v2616_v40 = vld [vmem:[#allocation9 + $0x4c] ss:$12 sps:$4 sm:$0xff]   ;;  %v2617_v23 = vld [vmem:[#allocation9 + $0x48] ss:$12 sps:$4 sm:$0xff]  }
 0x2ec   : > { %2077 = vst [vmem:[%s3277_s3 + $0x8] sm:$0xff] %v1269_v0  ;;  %v1296_v9 = vpack.c.bf16 %v3645_v51, %v3645_v51  ;;  %v1247_v20 = vadd.f32 1.0, %v2562_v42 }
 0x2ed   : > { %2563 = vrcp.f32 %v1240_v26  ;;  %v2618_v26 = vld [vmem:[#allocation9 + $0x64] ss:$12 sps:$4 sm:$0xff]  }
 0x2ee   : > { %1330 = vmatmul.mubr.bf16.vlgmr.msra.gmra.mrb[16].mxu0 %v1296_v9  ;;  %2278 = vmatmul.mubr.bf16.vlgmr.msra.gmra.mrb[16].mxu1 %v1296_v9  ;;  %2565 = vrcp.f32 %v1247_v20 }
 0x2ef   : > { %1402 = vmatpush1.bf16.msra.mxu0 %v3370_v28  ;;  %2282 = vmatpush3.bf16.msra.mxu1 %v3405_v38  ;;  %v1049_v28 = vunpack.c.l.bf16 %v3565_v41 }
 0x2f0   : > { %1403 = vmatprep.subr.bf16.mxu0 %v3376_v30  ;;  %2283 = vmatprep.subr.bf16.mxu1 %v4010_v19  ;;  %v1250_v30 = vadd.f32 %v3559_v24, %v1230_v59 }
 0x2f1   : > { %1433 = vmatprep.mubr.bf16.mxu0 %v4011_v36  ;;  %2297 = vmatprep.mubr.msk.bf16.mxu1 %vm2917_vm0, %v4010_v19 }
 0x2f3   : > { %1404 = vmatpush1.bf16.msra.mxu0 %v3383_v31  ;;  %2284 = vmatpush3.bf16.msra.mxu1 %v3420_v44 }
 0x2f4   : > { %1405 = vmatprep.subr.bf16.mxu0 %v3390_v33  ;;  %2285 = vmatprep.subr.bf16.mxu1 %v4010_v19 }
 0x2f7   : > { %v2564_v3 = vpop.eup %2563  ;;  %1406 = vmatpush1.bf16.msra.mxu0 %v3402_v37  ;;  %2286 = vmatpush3.bf16.msra.mxu1 %v3434_v49 }
 0x2f8   : > { %v1251_v61 = vmul.f32 %v2564_v3, %v1250_v30  ;;  %1407 = vmatprep.subr.bf16.mxu0 %v3410_v39  ;;  %2287 = vmatprep.subr.bf16.mxu1 %v4010_v19  ;;  %v2566_v33 = vpop.eup %2565 }
 0x2f9   : > { %v1254_v37 = vsub.f32 1.0, %v2566_v33  ;;  %v1256_v59 = vmul.f32 %v2566_v33, %v3597_v4  ;;  %v2081_v33 = vld [vmem:[%s3262_s21 + $0xc] sm:$0xff] }
 0x2fa   : > { %v1252_v31 = vadd.f32 %v1251_v61, %v1049_v28  ;;  %v3720_v61 = vld [vmem:[%s3252_s27 + $0x20] ss:$12 sps:$4 sm:$0xff]   ;;  %v1293_v32 = vunpack.c.l.bf16 %v2081_v33 }
 0x2fb   : > { %1408 = vmatpush1.bf16.msra.mxu0 %v3417_v43  ;;  %2288 = vmatpush3.bf16.msra.mxu1 %v3446_v53 }
 0x2fc   : > { %2567 = vtanh.f32 %v1252_v31  ;;  %1409 = vmatprep.subr.bf16.mxu0 %v3424_v45  ;;  %2289 = vmatprep.subr.bf16.mxu1 %v4010_v19 }
 0x2ff   : > { %1410 = vmatpush1.bf16.msra.mxu0 %v3431_v48  ;;  %2290 = vmatpush3.bf16.msra.mxu1 %v3456_v56 }
 0x300   : > { %1411 = vmatprep.subr.bf16.mxu0 %v3438_v50  ;;  %2291 = vmatprep.subr.bf16.mxu1 %v4010_v19 }
 0x303   : > { %1412 = vmatpush1.bf16.msra.mxu0 %v3443_v52  ;;  %2292 = vmatpush3.bf16.msra.mxu1 %v3468_v60 }
 0x304   : > { %1413 = vmatprep.subr.bf16.mxu0 %v3449_v54  ;;  %2293 = vmatprep.subr.bf16.mxu1 %v4010_v19 }
 0x306   : > { %v2568_v39 = vpop.eup %2567 }
 0x307   : > { %v1255_v41 = vmul.f32 %v2568_v39, %v1254_v37  ;;  %1414 = vmatpush1.bf16.msra.mxu0 %v3453_v55  ;;  %2294 = vmatpush3.bf16.msra.mxu1 %v3476_v62  ;;  %v1288_v37 = vunpack.c.l.bf16 %v3720_v61 }
 0x308   : > { %1415 = vmatprep.subr.bf16.mxu0 %v3459_v57  ;;  %2295 = vmatprep.subr.bf16.mxu1 %v4010_v19 }
 0x309   : > { %v1257_v27 = vadd.f32 %v1256_v59, %v1255_v41 }
 0x30b   : > { %v1277_v34 = vsel %vm1276_vm12, %v1257_v27, 0.0  ;;  %v3685_v47 = vsel %vm1276_vm12, %v1257_v27, %v3597_v4  ;;  %1416 = vmatpush1.bf16.msra.mxu0 %v3463_v58  ;;  %2296 = vmatpush3.bf16.msra.mxu1 %v3481_v63  ;;  %v2612_v4 = vld [vmem:[#allocation9 + $0x1c] ss:$12 sps:$4 sm:$0xff]  }
 0x30c   : > { %2078 = vst [vmem:[%s3279_s25 + $0x10] sm:$0xff] %v1277_v34  ;;  %v1400_v14 = vpack.c.bf16 %v3685_v47, %v3685_v47  ;;  %1543 = vmatprep.subr.bf16.mxu0 %v2609_v12  ;;  %2301 = vmatprep.subr.bf16.mxu1 %v4010_v19  ;;  %v1294_v12 = vunpack.c.h.bf16 %v2081_v33 }
 0x30e   : > { %1434 = vmatmul.mubr.bf16.vlgmr.msra.gmra.mrb[20].mxu0 %v1400_v14  ;;  %2298 = vmatmul.mubr.bf16.vlgmr.msra.gmra.mrb[20].mxu1 %v1400_v14 }
 0x30f   : > { %1544 = vmatpush1.bf16.msra.mxu0 %v2610_v35  ;;  %2302 = vmatpush3.bf16.msra.mxu1 %v2611_v46 }
 0x310   : > { %1545 = vmatprep.subr.bf16.mxu0 %v2612_v4  ;;  %2303 = vmatprep.subr.bf16.mxu1 %v4010_v19 }
 0x311   : > { %1575 = vmatprep.mubr.bf16.mxu0 %v4011_v36  ;;  %2317 = vmatprep.mubr.msk.bf16.mxu1 %vm2917_vm0, %v4010_v19 }
 0x313   : > { %1546 = vmatpush1.bf16.msra.mxu0 %v2613_v10  ;;  %2304 = vmatpush3.bf16.msra.mxu1 %v3318_v13  ;;  %v2619_v13 = vld [vmem:[#allocation9 + $0x60] ss:$12 sps:$4 sm:$0xff]  }
 0x314   : > { %1547 = vmatprep.subr.bf16.mxu0 %v2614_v22  ;;  %2305 = vmatprep.subr.bf16.mxu1 %v4010_v19 }
 0x317   : > { %1548 = vmatpush1.bf16.msra.mxu0 %v2615_v29  ;;  %2306 = vmatpush3.bf16.msra.mxu1 %v3324_v15  ;;  %v4021_v15 = vld [vmem:[#allocation33_spill] sm:$0xff] }
 0x318   : > { %1549 = vmatprep.subr.bf16.mxu0 %v2616_v40  ;;  %2307 = vmatprep.subr.bf16.mxu1 %v4010_v19 }
 0x31b   : > { %1550 = vmatpush1.bf16.msra.mxu0 %v2617_v23  ;;  %2308 = vmatpush3.bf16.msra.mxu1 %v3334_v18 }
 0x31c   : > { %1551 = vmatprep.subr.bf16.mxu0 %v2618_v26  ;;  %2309 = vmatprep.subr.bf16.mxu1 %v4010_v19 }
 0x31f   : > { %1552 = vmatpush1.bf16.msra.mxu0 %v2619_v13  ;;  %2310 = vmatpush3.bf16.msra.mxu1 %v3344_v21 }
 0x320   : > { %1553 = vmatprep.subr.bf16.mxu0 %v3327_v16  ;;  %2311 = vmatprep.subr.bf16.mxu1 %v4010_v19  ;;  %v2079_v16 = vld [vmem:[%s3252_s27 + $0x18] sm:$0xff] }
 0x323   : > { %1554 = vmatpush1.bf16.msra.mxu0 %v3331_v17  ;;  %2312 = vmatpush3.bf16.msra.mxu1 %v3356_v25  ;;  %v1286_v17 = vunpack.c.l.bf16 %v2079_v16  ;;  %v1287_v25 = vunpack.c.h.bf16 %v2079_v16 }
 0x324   : > { %1555 = vmatprep.subr.bf16.mxu0 %v4012_v1  ;;  %2313 = vmatprep.subr.bf16.mxu1 %v4010_v19 }
 0x327   : > { %1556 = vmatpush1.bf16.msra.mxu0 %v4013_v2  ;;  %2314 = vmatpush3.bf16.msra.mxu1 %v4014_v5 }
 0x328   : > { %1557 = vmatprep.subr.bf16.mxu0 %v4015_v6  ;;  %2315 = vmatprep.subr.bf16.mxu1 %v4010_v19 }
 0x32b   : > { %1558 = vmatpush1.bf16.msra.mxu0 %v4016_v7  ;;  %2316 = vmatpush3.bf16.msra.mxu1 %v4017_v8 }
 0x32c   : > { %1647 = vmatprep.subr.bf16.mxu0 %v4021_v15  ;;  %2321 = vmatprep.subr.bf16.mxu1 %v4010_v19 }
 0x3c1   : > { %v1331_v18 = vpop.f32.mrb[16].mxu0  ;;  %v1372_v21 = vpop.f32.mrb[16].mxu1 }
 0x3c2   : > { %v1378_v1 = vadd.f32 %v1331_v18, %v1286_v17  ;;  %v1333_v2 = vpop.f32.mrb[17].mxu0  ;;  %v2279_v5 = vpop.f32.mrb[17].mxu1  ;;  %v1392_v39 = vadd.f32 %v4020_v11, %v1372_v21 }
 0x3c3   : > { %v1335_v6 = vpop.f32.mrb[18].mxu0  ;;  %v1375_v0 = vpop.f32.mrb[18].mxu1  ;;  %v1385_v8 = vadd.f32 %v1333_v2, %v1287_v25 }
 0x3c4   : > { %v2083_v9 = vmul.f32 -1.442695, %v1378_v1  ;;  %v1336_v7 = vpop.f32.mrb[19].mxu0  ;;  %v2280_v42 = vpop.f32.mrb[19].mxu1 }
 0x3c5   : > { %v2084_v20 = vmul.f32 -1.442695, %v1385_v8  ;;  %v1513_v25 = vpop.permute.xlu0 %1512  ;;  %v2620_v7 = vld [vmem:[#allocation10] ss:$12 sps:$4 sm:$0xff]   ;;  %v2621_v42 = vld [vmem:[#allocation10 + $0x1c] ss:$12 sps:$4 sm:$0xff]  }
 0x3c6   : > { %2569 = vpow2.f32 %v2083_v9  ;;  %vm1514_vm13 = vcmp.eq.s32.totalorder %v1513_v25, 1 }
 0x3c7   : > { %2571 = vpow2.f32 %v2084_v20  ;;  %v2622_v20 = vld [vmem:[#allocation10 + $0x18] ss:$12 sps:$4 sm:$0xff]  }
 0x3d0   : > { %v2570_v28 = vpop.eup %2569 }
 0x3d1   : > { %v1382_v30 = vadd.f32 1.0, %v2570_v28  ;;  %v2572_v3 = vpop.eup %2571 }
 0x3d2   : > { %v1389_v31 = vadd.f32 1.0, %v2572_v3 }
 0x3d3   : > { %2573 = vrcp.f32 %v1382_v30  ;;  %v2623_v30 = vld [vmem:[#allocation10 + $0x34] ss:$12 sps:$4 sm:$0xff]  }
 0x3d4   : > { %2575 = vrcp.f32 %v1389_v31 }
 0x3dd   : > { %v2574_v41 = vpop.eup %2573 }
 0x3de   : > { %v1393_v59 = vmul.f32 %v2574_v41, %v1392_v39  ;;  %v2576_v13 = vpop.eup %2575 }
 0x3df   : > { %v1396_v16 = vsub.f32 1.0, %v2576_v13  ;;  %v1398_v18 = vmul.f32 %v2576_v13, %v3645_v51 }
 0x3e0   : > { %v1394_v27 = vadd.f32 %v1393_v59, %v1288_v37  ;;  %v2625_v37 = vld [vmem:[#allocation10 + $0x4c] ss:$12 sps:$4 sm:$0xff]  }
 0x3e1   : > { %v1435_v34 = vpop.f32.mrb[20].mxu0  ;;  %v1476_v14 = vpop.f32.mrb[20].mxu1 }
 0x3e2   : > { %2577 = vtanh.f32 %v1394_v27  ;;  %v1482_v35 = vadd.f32 %v1435_v34, %v1293_v32  ;;  %v1437_v46 = vpop.f32.mrb[21].mxu0  ;;  %v2299_v4 = vpop.f32.mrb[21].mxu1  ;;  %v1496_v3 = vadd.f32 %v3559_v24, %v1476_v14 }
 0x3e3   : > { %v1439_v10 = vpop.f32.mrb[22].mxu0  ;;  %v1479_v22 = vpop.f32.mrb[22].mxu1  ;;  %v1489_v26 = vadd.f32 %v1437_v46, %v1294_v12 }
 0x3e4   : > { %v2085_v29 = vmul.f32 -1.442695, %v1482_v35  ;;  %v1440_v40 = vpop.f32.mrb[23].mxu0  ;;  %v2300_v23 = vpop.f32.mrb[23].mxu1  ;;  %v1537_v22 = vld [vmem:[%s3262_s21] sm:$0xff] }
 0x3e5   : > { %v2086_v15 = vmul.f32 -1.442695, %v1489_v26  ;;  %v1539_v13 = vunpack.c.l.bf16 %v1537_v22 }
 0x3e6   : > { %2579 = vpow2.f32 %v2085_v29  ;;  %v1534_v29 = vunpack.c.h.bf16 %v3720_v61 }
 0x3e7   : > { %2581 = vpow2.f32 %v2086_v15 }
 0x3ec   : > { %v2578_v17 = vpop.eup %2577 }
 0x3ed   : > { %v1397_v21 = vmul.f32 %v2578_v17, %v1396_v16 }
 0x3ef   : > { %v1399_v1 = vadd.f32 %v1398_v18, %v1397_v21  ;;  %v1540_v18 = vunpack.c.h.bf16 %v1537_v22 }
 0x3f0   : > { %v2580_v2 = vpop.eup %2579 }
 0x3f1   : > { %v1486_v5 = vadd.f32 1.0, %v2580_v2  ;;  %v1515_v6 = vsel %vm1514_vm13, %v1399_v1, 0.0  ;;  %v3727_v0 = vsel %vm1514_vm13, %v1399_v1, %v3645_v51  ;;  %v2582_v8 = vpop.eup %2581  ;;  %v3738_v51 = vld [vmem:[%s3262_s21 + $0x8] ss:$12 sps:$4 sm:$0xff]  }
 0x3f2   : > { %2087 = vst [vmem:[%s3277_s3 + $0x10] sm:$0xff] %v1515_v6  ;;  %v1542_v9 = vpack.c.bf16 %v3727_v0, %v3727_v0  ;;  %v1493_v28 = vadd.f32 1.0, %v2582_v8 }
 0x3f3   : > { %2583 = vrcp.f32 %v1486_v5 }
 0x3f4   : > { %1576 = vmatmul.mubr.bf16.vlgmr.msra.gmra.mrb[24].mxu0 %v1542_v9  ;;  %2318 = vmatmul.mubr.bf16.vlgmr.msra.gmra.mrb[24].mxu1 %v1542_v9  ;;  %2585 = vrcp.f32 %v1493_v28  ;;  %v1758_v28 = vpop.permute.xlu0 %1757 }
 0x3f5   : > { %1648 = vmatpush1.bf16.msra.mxu0 %v2620_v7  ;;  %2322 = vmatpush3.bf16.msra.mxu1 %v3405_v38  ;;  %v1295_v38 = vunpack.c.h.bf16 %v3738_v51  ;;  %vm1759_vm15 = vcmp.eq.s32.totalorder %v1758_v28, 1 }
 0x3f6   : > { %1649 = vmatprep.subr.bf16.mxu0 %v2621_v42  ;;  %2323 = vmatprep.subr.bf16.mxu1 %v4010_v19 }
 0x3f7   : > { %1679 = vmatprep.mubr.bf16.mxu0 %v4011_v36  ;;  %2337 = vmatprep.mubr.msk.bf16.mxu1 %vm2917_vm0, %v4010_v19  ;;  %v2624_v36 = vld [vmem:[#allocation10 + $0x30] ss:$12 sps:$4 sm:$0xff]  }
 0x3f9   : > { %1650 = vmatpush1.bf16.msra.mxu0 %v2622_v20  ;;  %2324 = vmatpush3.bf16.msra.mxu1 %v3420_v44 }
 0x3fa   : > { %1651 = vmatprep.subr.bf16.mxu0 %v2623_v30  ;;  %2325 = vmatprep.subr.bf16.mxu1 %v4010_v19 }
 0x3fd   : > { %v2584_v31 = vpop.eup %2583  ;;  %1652 = vmatpush1.bf16.msra.mxu0 %v2624_v36  ;;  %2326 = vmatpush3.bf16.msra.mxu1 %v3434_v49 }
 0x3fe   : > { %v1497_v33 = vmul.f32 %v2584_v31, %v1496_v3  ;;  %1653 = vmatprep.subr.bf16.mxu0 %v2625_v37  ;;  %2327 = vmatprep.subr.bf16.mxu1 %v4010_v19  ;;  %v2586_v49 = vpop.eup %2585 }
 0x400   : > { %v1498_v44 = vadd.f32 %v1497_v33, %v1295_v38 }
 0x401   : > { %1654 = vmatpush1.bf16.msra.mxu0 %v3417_v43  ;;  %2328 = vmatpush3.bf16.msra.mxu1 %v3446_v53  ;;  %v1500_v43 = vsub.f32 1.0, %v2586_v49 }
 0x402   : > { %2587 = vtanh.f32 %v1498_v44  ;;  %1655 = vmatprep.subr.bf16.mxu0 %v3424_v45  ;;  %2329 = vmatprep.subr.bf16.mxu1 %v4010_v19 }
 0x405   : > { %1656 = vmatpush1.bf16.msra.mxu0 %v3431_v48  ;;  %2330 = vmatpush3.bf16.msra.mxu1 %v3456_v56  ;;  %v1502_v48 = vmul.f32 %v2586_v49, %v3685_v47 }
 0x406   : > { %1657 = vmatprep.subr.bf16.mxu0 %v3438_v50  ;;  %2331 = vmatprep.subr.bf16.mxu1 %v4010_v19 }
 0x409   : > { %1658 = vmatpush1.bf16.msra.mxu0 %v3443_v52  ;;  %2332 = vmatpush3.bf16.msra.mxu1 %v3468_v60  ;;  %v1521_v52 = vpop.permute.xlu1 %1520 }
 0x40a   : > { %1659 = vmatprep.subr.bf16.mxu0 %v3449_v54  ;;  %2333 = vmatprep.subr.bf16.mxu1 %v4010_v19  ;;  %vm1522_vm14 = vcmp.eq.s32.totalorder %v1521_v52, 1 }
 0x40c   : > { %v2588_v45 = vpop.eup %2587 }
 0x40d   : > { %1660 = vmatpush1.bf16.msra.mxu0 %v3453_v55  ;;  %2334 = vmatpush3.bf16.msra.mxu1 %v3476_v62  ;;  %v1501_v50 = vmul.f32 %v2588_v45, %v1500_v43  ;;  %v1541_v43 = vunpack.c.l.bf16 %v3738_v51 }
 0x40e   : > { %1661 = vmatprep.subr.bf16.mxu0 %v3459_v57  ;;  %2335 = vmatprep.subr.bf16.mxu1 %v4010_v19  ;;  %v2089_v57 = vld [vmem:[%s3252_s27 + $0x24] sm:$0xff] }
 0x40f   : > { %v1503_v53 = vadd.f32 %v1502_v48, %v1501_v50  ;;  %v1532_v60 = vunpack.c.l.bf16 %v2089_v57  ;;  %v1533_v39 = vunpack.c.h.bf16 %v2089_v57 }
 0x411   : > { %1662 = vmatpush1.bf16.msra.mxu0 %v3463_v58  ;;  %2336 = vmatpush3.bf16.msra.mxu1 %v3481_v63  ;;  %v1523_v54 = vsel %vm1522_vm14, %v1503_v53, 0.0  ;;  %v3766_v56 = vsel %vm1522_vm14, %v1503_v53, %v3685_v47 }
 0x412   : > { %2088 = vst [vmem:[%s3279_s25 + $0x8] sm:$0xff] %v1523_v54  ;;  %v1646_v55 = vpack.c.bf16 %v3766_v56, %v3766_v56 }
 0x414   : > { %1680 = vmatmul.mubr.bf16.vlgmr.msra.gmra.mrb[28].mxu0 %v1646_v55  ;;  %2338 = vmatmul.mubr.bf16.vlgmr.msra.gmra.mrb[28].mxu1 %v1646_v55 }
 0x4c7   : > { %v1577_v62 = vpop.f32.mrb[24].mxu0  ;;  %v1618_v19 = vpop.f32.mrb[24].mxu1 }
 0x4c8   : > { %v1624_v41 = vadd.f32 %v1577_v62, %v1532_v60  ;;  %v1579_v59 = vpop.f32.mrb[25].mxu0  ;;  %v2319_v58 = vpop.f32.mrb[25].mxu1  ;;  %v1638_v40 = vadd.f32 %v4020_v11, %v1618_v19 }
 0x4c9   : > { %v1581_v63 = vpop.f32.mrb[26].mxu0  ;;  %v1621_v32 = vpop.f32.mrb[26].mxu1  ;;  %v1631_v14 = vadd.f32 %v1579_v59, %v1533_v39 }
 0x4ca   : > { %v2091_v27 = vmul.f32 -1.442695, %v1624_v41  ;;  %v1582_v47 = vpop.f32.mrb[27].mxu0  ;;  %v2320_v34 = vpop.f32.mrb[27].mxu1 }
 0x4cb   : > { %v2092_v12 = vmul.f32 -1.442695, %v1631_v14 }
 0x4cc   : > { %2589 = vpow2.f32 %v2091_v27 }
 0x4cd   : > { %2591 = vpow2.f32 %v2092_v12 }
 0x4d6   : > { %v2590_v35 = vpop.eup %2589 }
 0x4d7   : > { %v1628_v46 = vadd.f32 1.0, %v2590_v35  ;;  %v2592_v4 = vpop.eup %2591 }
 0x4d8   : > { %v1635_v10 = vadd.f32 1.0, %v2592_v4 }
 0x4d9   : > { %2593 = vrcp.f32 %v1628_v46 }
 0x4da   : > { %2595 = vrcp.f32 %v1635_v10 }
 0x4e3   : > { %v2594_v23 = vpop.eup %2593 }
 0x4e4   : > { %v1639_v26 = vmul.f32 %v2594_v23, %v1638_v40  ;;  %v2596_v11 = vpop.eup %2595 }
 0x4e5   : > { %v1642_v8 = vsub.f32 1.0, %v2596_v11  ;;  %v1644_v38 = vmul.f32 %v2596_v11, %v3727_v0 }
 0x4e6   : > { %v1640_v15 = vadd.f32 %v1639_v26, %v1534_v29 }
 0x4e7   : > { %v1681_v16 = vpop.f32.mrb[28].mxu0  ;;  %v1722_v17 = vpop.f32.mrb[28].mxu1 }
 0x4e8   : > { %2597 = vtanh.f32 %v1640_v15  ;;  %v1728_v21 = vadd.f32 %v1681_v16, %v1539_v13  ;;  %v1683_v25 = vpop.f32.mrb[29].mxu0  ;;  %v2339_v1 = vpop.f32.mrb[29].mxu1  ;;  %v1742_v45 = vadd.f32 %v3559_v24, %v1722_v17 }
 0x4e9   : > { %v1685_v2 = vpop.f32.mrb[30].mxu0  ;;  %v1725_v5 = vpop.f32.mrb[30].mxu1  ;;  %v1735_v61 = vadd.f32 %v1683_v25, %v1540_v18 }
 0x4ea   : > { %v2093_v6 = vmul.f32 -1.442695, %v1728_v21  ;;  %v1686_v9 = vpop.f32.mrb[31].mxu0  ;;  %v2340_v7 = vpop.f32.mrb[31].mxu1 }
 0x4eb   : > { %v2094_v42 = vmul.f32 -1.442695, %v1735_v61 }
 0x4ec   : > { %2599 = vpow2.f32 %v2093_v6 }
 0x4ed   : > { %2601 = vpow2.f32 %v2094_v42 }
 0x4f2   : > { %v2598_v20 = vpop.eup %2597 }
 0x4f3   : > { %v1643_v30 = vmul.f32 %v2598_v20, %v1642_v8 }
 0x4f5   : > { %v1645_v3 = vadd.f32 %v1644_v38, %v1643_v30 }
 0x4f6   : > { %v2600_v31 = vpop.eup %2599 }
 0x4f7   : > { %v1760_v36 = vsel %vm1759_vm15, %v1645_v3, 0.0  ;;  %v1770_v33 = vsel %vm1759_vm15, %v1645_v3, %v3727_v0  ;;  %v1732_v37 = vadd.f32 1.0, %v2600_v31  ;;  %v2602_v44 = vpop.eup %2601  ;;  %v1766_v0 = vpop.permute.xlu1 %1765 }
 0x4f8   : > { %2095 = vst [vmem:[%s3277_s3 + $0x18] sm:$0xff] %v1760_v36  ;;  %1772 = vst [vmem:[#allocation2] sm:$0xff] %v1770_v33  ;;  %v1739_v49 = vadd.f32 1.0, %v2602_v44  ;;  %vm1767_vm0 = vcmp.eq.s32.totalorder %v1766_v0, 1 }
 0x4f9   : > { %2603 = vrcp.f32 %v1732_v37  ;;  %1778 = vst [vmem:[#allocation15] sm:$0xff] (!%p2096_p2), %v1770_v33 }
 0x4fa   : > { %2605 = vrcp.f32 %v1739_v49 }
 0x503   : > { %v2604_v48 = vpop.eup %2603 }
 0x504   : > { %v1743_v50 = vmul.f32 %v2604_v48, %v1742_v45  ;;  %v2606_v53 = vpop.eup %2605 }
 0x505   : > { %v1746_v54 = vsub.f32 1.0, %v2606_v53  ;;  %v1748_v60 = vmul.f32 %v2606_v53, %v3766_v56 }
 0x506   : > { %v1744_v52 = vadd.f32 %v1743_v50, %v1541_v43 }
 0x508   : > { %2607 = vtanh.f32 %v1744_v52 }
 0x512   : > { %v2608_v55 = vpop.eup %2607  ;;  %1777 = sbr.rel (%p2096_p2) target bundleno = 1306 (0x51a), region = 72 }
 0x513   : > { %v1747_v57 = vmul.f32 %v2608_v55, %v1746_v54 }
 0x515   : > { %v1749_v62 = vadd.f32 %v1748_v60, %v1747_v57 }
 0x517   : > { %v1768_v19 = vsel %vm1767_vm0, %v1749_v62, 0.0  ;;  %v1771_v51 = vsel %vm1767_vm0, %v1749_v62, %v3766_v56 }
 0x518   : > { %1769 = vst [vmem:[%s3279_s25] sm:$0xff] %v1768_v19  ;;  %1773 = vst [vmem:[#allocation3] sm:$0xff] %v1771_v51 }
 0x519   : > { %1780 = vst [vmem:[#allocation15 + $0x8] sm:$0xff] %v1771_v51 }
 0x51a PF: > { %s2108_s27 = sshll.u32 %s516_s19, 9  ;;  %s1817_s7 = sshll.u32 %s3279_s25, 4  ;;  %s3792_s7 = int_to_ptr.vmem [resolvable:$true] %s1817_s7 }
 0x51b   : > { %s3789_s30 = scalar_lea.hbm %s3922_s8, %s2108_s27  ;;  %s3796_s17 = scalar_lea.sflag [#allocation14], %s378_s22 }
 0x51c   : > { %s2742_s9 = scalar_lea.vmem %s3792_s7, 512  ;;  %p4022_p7 = scmp.ne.s32.totalorder %s3991_s23, 0 }
 0x51d   : > { %p2743_p11 = scmp.ne.s32.totalorder %s3792_s7, %s2742_s9  ;;  %s2918_s19 = smov [#allocation13]  }
 0x51e   : > { %s2746_s12 = sshll.u32 %s2918_s19, 4  ;;  %s2747_s12 = int_to_ptr.vmem [resolvable:$false] %s2746_s12 }
 0x51f   : > { %p2744_p5 = pnand %p2743_p11, %p4022_p7  ;;  %s2748_s18 = scalar_lea.vmem %s2747_s12, 1024 }
 0x520   : > { %p2749_p6 = scmp.lt.s32.totalorder %s3792_s7, %s2747_s12  ;;  %p2750_p8 = scmp.lt.s32.totalorder %s2748_s18, %s2742_s9 }
 0x521   : > { %p2745_p4 = pneg %p2744_p5 }
 0x522   : > { %p2751_p1 = por %p2750_p8, %p2749_p6 }
 0x524   : > { %p2752_p12 = pnand %p2751_p1, %p2745_p4 }
 0x526   : > { %2755 = shalt.err (!%p2752_p12)
}
 0x527   : > { %s2756_s22 = scalar_lea.hbm %s3789_s30, 512  ;;  %s2760_s0 = scalar_lea.hbm %s3922_s8, 1536 }
 0x528   : > { %p2757_p0 = scmp.ne.s32.totalorder %s3789_s30, %s2756_s22  ;;  %p2761_p10 = scmp.lt.u32.totalorder %s3789_s30, %s3922_s8 }
 0x529   : > { %p2762_p13 = scmp.lt.u32.totalorder %s2760_s0, %s2756_s22  ;;  %p2764_p11 = scmp.lt.u32.totalorder %s2756_s22, %s3789_s30 }
 0x52a   : > { %p2758_p3 = pnand %p2757_p0, %p4022_p7 }
 0x52b   : > { %p2763_p2 = por %p2762_p13, %p2761_p10 }
 0x52c   : > { %p2759_p9 = pneg %p2758_p3 }
 0x52d   : > { %p2765_p5 = por %p2764_p11, %p2763_p2 }
 0x52f   : > { %p2766_p4 = pnand %p2765_p5, %p2759_p9 }
 0x531   : > { %2769 = shalt.err (!%p2766_p4)
}
 0x532   : > { %s2919_s27 = smov 128   ;;  %s2920_s21 = smov 8  }
 0x533   : > { %2360 = dma.vmem_to_hbm [thread:$0]  (%p4022_p7), %s3792_s7, 512, %s3789_s30, %s3796_s17, %s2919_s27, %s2919_s27, %s2920_s21  }
 0x534   : > { %s2107_s5 = sshll.u32 %s3007_s16, 9  ;;  %s1800_s9 = sshll.u32 %s3277_s3, 4  ;;  %s3830_s9 = int_to_ptr.vmem [resolvable:$true] %s1800_s9 }
 0x535   : > { %s4023_s18 = sld [smem:[#allocation41_spill]]  ;;  %s1782_s25 = scalar_lea.sflag [#allocation6], %s3248_s14 }
 0x536   : > { %s2770_s20 = scalar_lea.vmem %s3830_s9, 512  ;;  %p4024_p8 = scmp.ne.s32.totalorder %s3981_s28, 0 }
 0x537   : > { %p2771_p6 = scmp.ne.s32.totalorder %s3830_s9, %s2770_s20  ;;  %s2921_s23 = smov [#allocation12]  }
 0x538   : > { %s2774_s30 = sshll.u32 %s2921_s23, 4  ;;  %s2775_s30 = int_to_ptr.vmem [resolvable:$false] %s2774_s30 }
 0x539   : > { %p2772_p1 = pnand %p2771_p6, %p4024_p8  ;;  %s2776_s3 = scalar_lea.vmem %s2775_s30, 1024 }
 0x53a   : > { %p2777_p7 = scmp.lt.s32.totalorder %s3830_s9, %s2775_s30  ;;  %p2778_p0 = scmp.lt.s32.totalorder %s2776_s3, %s2770_s20 }
 0x53b   : > { %s3828_s22 = scalar_lea.hbm %s4023_s18, %s2107_s5  ;;  %p2773_p12 = pneg %p2772_p1 }
 0x53c   : > { %p2779_p3 = por %p2778_p0, %p2777_p7 }
 0x53e   : > { %p2780_p9 = pnand %p2779_p3, %p2773_p12 }
 0x540   : > { %2783 = shalt.err (!%p2780_p9)
}
 0x541   : > { %s2784_s7 = scalar_lea.hbm %s3828_s22, 512  ;;  %s2788_s24 = scalar_lea.hbm %s4023_s18, 1536 }
 0x542   : > { %p2785_p10 = scmp.ne.s32.totalorder %s3828_s22, %s2784_s7  ;;  %p2789_p11 = scmp.lt.u32.totalorder %s3828_s22, %s4023_s18 }
 0x543   : > { %p2790_p5 = scmp.lt.u32.totalorder %s2788_s24, %s2784_s7  ;;  %p2792_p6 = scmp.lt.u32.totalorder %s2784_s7, %s3828_s22 }
 0x544   : > { %p2786_p13 = pnand %p2785_p10, %p4024_p8 }
 0x545   : > { %p2791_p4 = por %p2790_p5, %p2789_p11 }
 0x546   : > { %p2787_p2 = pneg %p2786_p13 }
 0x547   : > { %p2793_p1 = por %p2792_p6, %p2791_p4 }
 0x549   : > { %p2794_p12 = pnand %p2793_p1, %p2787_p2 }
 0x54b   : > { %2797 = shalt.err (!%p2794_p12)
}
 0x54c   : > { %2359 = dma.vmem_to_hbm [thread:$0]  (%p4024_p8), %s3830_s9, 512, %s3828_s22, %s1782_s25, %s2919_s27, %s2919_s27, %s2920_s21  }
 0x54d   : > { %s2922_s19 = smov [#allocation15]   ;;  %p4025_p0 = scmp.eq.s32.totalorder %s3007_s16, 2 }
 0x54e   : > { %s1830_s12 = sshll.u32 %s2922_s19, 4  ;;  %s1831_s12 = int_to_ptr.vmem [resolvable:$true] %s1830_s12 }
 0x54f   : > { %s2798_s20 = scalar_lea.vmem %s1831_s12, 256  ;;  %p2805_p10 = scmp.lt.s32.totalorder %s1831_s12, %s1831_s12 }
 0x550   : > { %p2799_p7 = scmp.ne.s32.totalorder %s1831_s12, %s2798_s20  ;;  %p2806_p13 = scmp.lt.s32.totalorder %s2798_s20, %s2798_s20 }
 0x552   : > { %p2800_p3 = pnand %p2799_p7, %p4025_p0  ;;  %p2807_p2 = por %p2806_p13, %p2805_p10 }
 0x554   : > { %p2801_p9 = pneg %p2800_p3 }
 0x556   : > { %p2808_p11 = pnand %p2807_p2, %p2801_p9 }
 0x558   : > { %2811 = shalt.err (!%p2808_p11)
}
 0x559   : > { %s4026_s14 = sld [smem:[#allocation42_spill]]  ;;  %p4028_p5 = pmov %p4025_p0 }
 0x55f   : > { %s4027_s3 = smov %s4026_s14  ;;  %s2812_s30 = scalar_lea.hbm %s4026_s14, 256 }
 0x560   : > { %p2813_p8 = scmp.ne.s32.totalorder %s4027_s3, %s2812_s30  ;;  %p2818_p1 = scmp.lt.u32.totalorder %s2812_s30, %s4027_s3 }
 0x562   : > { %p2814_p4 = pnand %p2813_p8, %p4028_p5 }
 0x564   : > { %p2815_p6 = pneg %p2814_p4 }
 0x566   : > { %p2820_p12 = pnand %p2818_p1, %p2815_p6 }
 0x568   : > { %2823 = shalt.err (!%p2820_p12)
}
 0x569   : > { %p4029_p7 = pmov %p4025_p0 }
 0x56b   : > { %2362 = dma.vmem_to_hbm [thread:$0]  (%p4029_p7), %s1831_s12, 256, %s4027_s3, [#allocation14], %s2919_s27, %s2919_s27, %s2920_s21  }
 0x56c   : > { %2869 = dma.done.wait (%p4025_p0), [#allocation14], 256   ;;  %p4030_p3 = pmov %p4025_p0 }
 0x56e   : > { %2871 = vsyncadd (%p4030_p3), [#allocation14], 4294967040 }
 0x56f PF: > { %s4031_s24 = sld [smem:[#allocation23_spill]]  ;;  %s4032_s26 = sld [smem:[#allocation25_spill]] }
 0x570   : > { %p2395_p9 = scmp.ge.s32.totalorder %s2906_s15, 2 }
 0x575   : > { %s1849_s5 = sand.u32 1, %s4031_s24   ;;  %p4033_p10 = scmp.ne.s32.totalorder %s4032_s26, 0 }
 0x576   : > { %s1850_s19 = scalar_lea.sflag [#allocation6], %s1849_s5 }
 0x577   : > { %p2382_p13 = pnand %p2395_p9, %p4033_p10 }
 0x579   : > { %2873 = dma.done.wait (!%p2382_p13), %s1850_s19, 512  }
 0x57a   : > { %2875 = vsyncadd (!%p2382_p13), %s1850_s19, 4294966784  ;;  %s4034_s20 = sadd.s32 4294967294, %s2906_s15   ;;  %s4035_s28 = sld [smem:[#allocation26_spill]] }
 0x57b   : > { %s1858_s27 = sand.u32 1, %s4034_s20  }
 0x57c   : > { %s1859_s21 = scalar_lea.sflag [#allocation14], %s1858_s27 }
 0x580   : > { %p4036_p2 = scmp.ne.s32.totalorder %s4035_s28, 0 }
 0x582   : > { %p2385_p11 = pnand %p2395_p9, %p4036_p2 }
 0x584   : > { %2877 = dma.done.wait (!%p2385_p11), %s1859_s21, 512  }
 0x585   : > { %2879 = vsyncadd (!%p2385_p11), %s1859_s21, 4294966784  ;;  %s4037_s16 = sld [smem:[#allocation28_spill]]  ;;  %s4038_s23 = sld [smem:[#allocation24_spill]] }
 0x586   : > { %s4039_s14 = sld [smem:[#allocation27_spill]]  ;;  %p30_p8 = scmp.ge.s32.totalorder %s3174_s29, 5  }
 0x587   : > { %s4040_s30 = smov %s2886_s10  ;;  %s4041_s10 = smov %s2890_s11 }
 0x588   : > { %s4043_s12 = smov %s2898_s13  ;;  %s4045_s15 = smov %s3174_s29 }
 0x589   :  { %32 = sbr.rel (!%p30_p8) target bundleno = 18 (0x12), region = 162 }
 0x58b   : > { %s4042_s11 = smov %s4037_s16  ;;  %s4044_s13 = smov %s4038_s23 }
 0x590   :  { %1864 = vsyncpa [#allocation5], 1 }
 0x591   :  { %1866 = vsyncpa [#allocation5 + $0x1], 1 }
 0x592   :  { %1867 = vsyncpa [#allocation8], 1 }
 0x593   :  { %1869 = vsyncpa [#allocation8 + $0x1], 1 }
 0x594   :  { %1870 = vsyncpa [#allocation11], 1 }
 0x595   :  { %1871 = vsyncpa [#allocation6], 1 }
 0x596   :  { %1873 = vsyncpa [#allocation6 + $0x1], 1 }
 0x597   :  { %1874 = vsyncpa [#allocation14], 1 }
 0x598   :  { %1876 = vsyncpa [#allocation14 + $0x1], 1 }

</bundles_post_ra>
